<compile_context>
chip_gen: v5e
topology: v5e:2x2
jax: 0.10.0
libtpu: 0.0.40
codegen_flags: <defaults>
</compile_context>

<pallas_src>
import functools

import jax
import jax.numpy as jnp
from jax.experimental import pallas as pl
from jax.experimental.pallas import tpu as pltpu


def _mac(w, x):
    """(M, K) @ (K, R) as an unrolled VPU broadcast-MAC (K is a small static int)."""
    K = w.shape[1]
    acc = w[:, 0:1] * x[0:1, :]
    for k in range(1, K):
        acc = acc + w[:, k:k + 1] * x[k:k + 1, :]
    return acc


def _bn(x, gamma, beta, inv_n, eps=1e-5):
    """BatchNorm2d training mode on (C, R), folded to per-channel scale+shift.

    Sum and sum-of-squares come from a single cross-lane reduce of the
    sublane-stacked [x; x*x] (one XLU dispatch instead of two).
    """
    C = x.shape[0]
    red = jnp.sum(jnp.concatenate([x, x * x], axis=0), axis=1, keepdims=True)  # (2C, 1)
    mean = red[0:C, :] * inv_n
    # TODO(synk): switch to a shifted / two-pass variance for production-size R.
    var = jnp.maximum(red[C:, :] * inv_n - mean * mean, 0.0)
    scale = gamma * jax.lax.rsqrt(var + eps)
    shift = beta - mean * scale
    return x * scale + shift


def _mbconv_kernel(N, H, W, Cin, Cmid, Cr, Cout, skip, offs,
                   x_ref, p_ref, m_ref, drop_ref, o_ref):
    R = N * H * W
    hw = H * W
    inv_r = 1.0 / R
    inv_hw = 1.0 / hw

    # ---- unpack the packed parameter blob (static, 8-row-aligned slices) ----
    w1 = p_ref[offs["w1"]:offs["w1"] + Cmid, 0:Cin]          # (Cmid, Cin)
    wdw = p_ref[offs["wdw"]:offs["wdw"] + Cmid, 0:9]         # (Cmid, 9)
    wfc1 = p_ref[offs["wfc1"]:offs["wfc1"] + Cr, 0:Cmid]     # (Cr, Cmid)
    wfc2 = p_ref[offs["wfc2"]:offs["wfc2"] + Cmid, 0:Cr]     # (Cmid, Cr)
    w4 = p_ref[offs["w4"]:offs["w4"] + Cout, 0:Cmid]         # (Cout, Cmid)
    gbm = p_ref[offs["gbm"]:offs["gbm"] + Cmid, 0:4]         # cols: g1, b1, g2, b2
    gbo = p_ref[offs["gbo"]:offs["gbo"] + Cout, 0:2]         # cols: g3, b3

    # ---- Conv_1x1 #1 (VPU MAC) + BN(train) + ReLU ----
    h = _mac(w1, x_ref[...])                                  # (Cmid, R)
    h = jnp.maximum(_bn(h, gbm[:, 0:1], gbm[:, 1:2], inv_r), 0.0)

    # ---- DepthwiseConv 3x3 / stride 1 / pad 1: 8 masked lane rolls + center ----
    masks = m_ref[...]                                        # (8, R) host-precomputed
    acc = h * wdw[:, 4:5]                                     # center tap
    for i, t in enumerate((0, 1, 2, 3, 5, 6, 7, 8)):
        dh = t // 3 - 1
        dw = t % 3 - 1
        s = dh * W + dw                                       # flat source offset
        shifted = pltpu.roll(h, shift=(-s) % R, axis=1)       # shifted[:, i] = h[:, i+s]
        acc = acc + (shifted * masks[i:i + 1, :]) * wdw[:, t:t + 1]

    h = _bn(acc, gbm[:, 2:3], gbm[:, 3:4], inv_r)
    h = h * jnp.clip(h + 3.0, 0.0, 6.0) * (1.0 / 6.0)         # Hardswish

    # ---- SEModule: per-sample lane-reduce pool, FCs batched across samples ----
    pooled = jnp.concatenate(
        [jnp.sum(h[:, n * hw:(n + 1) * hw], axis=1, keepdims=True) for n in range(N)],
        axis=1) * inv_hw                                      # (Cmid, N)
    z = _mac(wfc1, pooled)                                    # (Cr, N)
    z = z * jax.nn.sigmoid(z)                                 # Swish
    z = _mac(wfc2, z)                                         # (Cmid, N)
    z = z * jax.nn.sigmoid(z)                                 # Swish: per-sample scale

    # ---- Conv_1x1 #2 with the SE channel scale folded into the weights ----
    # out_n = (w4 * z_n) @ h_n ; BN3 batch stats accumulated per sample.
    ys = []
    red = jnp.zeros((2 * Cout, 1), jnp.float32)
    for n in range(N):
        hn = h[:, n * hw:(n + 1) * hw]                        # (Cmid, hw)
        zn = z[:, n:n + 1]                                    # (Cmid, 1)
        y = (w4[:, 0:1] * zn[0:1, :]) * hn[0:1, :]
        for k in range(1, Cmid):
            y = y + (w4[:, k:k + 1] * zn[k:k + 1, :]) * hn[k:k + 1, :]
        ys.append(y)                                          # (Cout, hw)
        red = red + jnp.sum(jnp.concatenate([y, y * y], axis=0),
                            axis=1, keepdims=True)

    mean = red[0:Cout, :] * inv_r
    var = jnp.maximum(red[Cout:, :] * inv_r - mean * mean, 0.0)
    scale = gbo[:, 0:1] * jax.lax.rsqrt(var + 1e-5)
    shift = gbo[:, 1:2] - mean * scale

    # ---- BN + ReLU + DropPath + residual, stored per-sample lane-dense slab ----
    for n in range(N):
        y = jnp.maximum(ys[n] * scale + shift, 0.0)
        s0 = n * hw
        if skip:
            o_ref[:, s0:s0 + hw] = x_ref[:, s0:s0 + hw] + y * drop_ref[n]
        else:
            o_ref[:, s0:s0 + hw] = y


def _pack_params(params, Cin, Cmid, Cr, Cout):
    """Pack the 11 tiny parameter arrays into one (rows, width) VMEM blob."""
    width = max(Cin, Cmid, 9, 4, 2)

    def pad_block(arr):
        r = ((arr.shape[0] + 7) // 8) * 8
        out = jnp.zeros((r, width), jnp.float32)
        return out.at[:arr.shape[0], :arr.shape[1]].set(arr.astype(jnp.float32))

    entries = [
        ("w1", params["w1t"]),
        ("wdw", params["wdw"]),
        ("wfc1", params["wfc1"]),
        ("wfc2", params["wfc2"]),
        ("w4", params["w4t"]),
        ("gbm", jnp.concatenate([params["g1"], params["b1"],
                                 params["g2"], params["b2"]], axis=1)),
        ("gbo", jnp.concatenate([params["g3"], params["b3"]], axis=1)),
    ]
    offs, blocks, cur = {}, [], 0
    for name, arr in entries:
        offs[name] = cur
        blk = pad_block(arr)
        blocks.append(blk)
        cur += blk.shape[0]
    return jnp.concatenate(blocks, axis=0), offs


def _make_tap_masks(N, H, W):
    """Host-precomputed (8, N*H*W) validity masks for the 8 non-center taps."""
    idx = jnp.arange(N * H * W)
    hh = (idx // W) % H
    ww = idx % W
    rows = []
    for t in (0, 1, 2, 3, 5, 6, 7, 8):
        dh = t // 3 - 1
        dw = t % 3 - 1
        m = jnp.ones_like(idx, dtype=jnp.float32)
        if dh == -1:
            m = m * (hh >= 1).astype(jnp.float32)
        if dh == 1:
            m = m * (hh <= H - 2).astype(jnp.float32)
        if dw == -1:
            m = m * (ww >= 1).astype(jnp.float32)
        if dw == 1:
            m = m * (ww <= W - 2).astype(jnp.float32)
        rows.append(m)
    return jnp.stack(rows, axis=0)                            # (8, R)


def mbconv_forward(x_nchw, params, drop_mask):
    """x_nchw: (N, Cin, H, W) f32.  drop_mask: (N,) {0.,1.} DropPath mask."""
    N, Cin, H, W = x_nchw.shape
    Cmid = params["w1t"].shape[0]
    Cr = params["wfc1"].shape[0]
    Cout = params["w4t"].shape[0]
    R = N * H * W
    skip = (Cin == Cout)

    # (C, R) kernel-native layout.  For a chain of MBConv blocks, stay in this
    # layout between blocks instead of transposing around every pallas_call.
    x2d = jnp.transpose(x_nchw, (1, 0, 2, 3)).reshape(Cin, R)
    blob, offs = _pack_params(params, Cin, Cmid, Cr, Cout)
    masks = _make_tap_masks(N, H, W)
    drop_scale = (drop_mask / 0.5).astype(jnp.float32)        # mask / keep_prob, (N,)

    vmem = pl.BlockSpec(memory_space=pltpu.MemorySpace.VMEM)
    smem = pl.BlockSpec(memory_space=pltpu.MemorySpace.SMEM)
    kernel = functools.partial(_mbconv_kernel, N, H, W, Cin, Cmid, Cr, Cout,
                               skip, offs)

    out2d = pl.pallas_call(
        kernel,
        out_shape=jax.ShapeDtypeStruct((Cout, R), jnp.float32),
        in_specs=[vmem, vmem, vmem, smem],
        out_specs=vmem,
        compiler_params=pltpu.CompilerParams(vmem_limit_bytes=32 * 1024 * 1024),
    )(x2d, blob, masks, drop_scale)

    return jnp.transpose(out2d.reshape(Cout, N, H, W), (1, 0, 2, 3))


def mbconv_reference(x_nchw, params, drop_mask):
    """Pure-JAX reference (XLA conv path) for verification."""
    x = jnp.transpose(x_nchw, (0, 2, 3, 1))                   # NHWC
    Cmid = params["w1t"].shape[0]

    def bn(h, g, b, eps=1e-5):
        m = jnp.mean(h, axis=(0, 1, 2), keepdims=True)
        v = jnp.mean((h - m) ** 2, axis=(0, 1, 2), keepdims=True)
        return (g.reshape(1, 1, 1, -1) * (h - m) / jnp.sqrt(v + eps)
                + b.reshape(1, 1, 1, -1))

    h = jnp.einsum("nhwc,dc->nhwd", x, params["w1t"])
    h = jnp.maximum(bn(h, params["g1"], params["b1"]), 0.0)

    wdw = jnp.transpose(params["wdw"].reshape(Cmid, 3, 3), (1, 2, 0)).reshape(3, 3, 1, Cmid)
    h = jax.lax.conv_general_dilated(
        h, wdw, window_strides=(1, 1), padding="SAME",
        dimension_numbers=("NHWC", "HWIO", "NHWC"),
        feature_group_count=Cmid)
    h = bn(h, params["g2"], params["b2"])
    h = h * jnp.clip(h + 3.0, 0.0, 6.0) / 6.0

    pooled = jnp.mean(h, axis=(1, 2))                         # (N, Cmid)
    z = pooled @ params["wfc1"].T
    z = z * jax.nn.sigmoid(z)
    z = z @ params["wfc2"].T
    z = z * jax.nn.sigmoid(z)
    h = h * z[:, None, None, :]

    h = jnp.einsum("nhwc,dc->nhwd", h, params["w4t"])
    h = jnp.maximum(bn(h, params["g3"], params["b3"]), 0.0)

    out = x + h * (drop_mask / 0.5)[:, None, None, None]
    return jnp.transpose(out, (0, 3, 1, 2))


if __name__ == "__main__":
    key = jax.random.PRNGKey(0)
    ks = jax.random.split(key, 8)

    # MBConv(in=8, mid=16, out=8, kernel_size=3, stride=1, padding=0, reduction=4)
    N, Cin, H, W = 2, 8, 16, 16
    Cmid, Cout, reduction = 16, 8, 4
    Cr = Cmid // reduction

    x = jax.random.normal(ks[0], (N, Cin, H, W), dtype=jnp.float32)

    params = {
        # Conv_1x1 #1 weight: PyTorch (Cmid, Cin, 1, 1) -> stored (Cmid, Cin)
        "w1t": 0.1 * jax.random.normal(ks[1], (Cmid, Cin), dtype=jnp.float32),
        "g1": jnp.ones((Cmid, 1), jnp.float32), "b1": jnp.zeros((Cmid, 1), jnp.float32),
        # Depthwise weight: PyTorch (Cmid, 1, 3, 3) -> stored (Cmid, 9), tap = kh*3+kw
        "wdw": 0.1 * jax.random.normal(ks[2], (Cmid, 9), dtype=jnp.float32),
        "g2": jnp.ones((Cmid, 1), jnp.float32), "b2": jnp.zeros((Cmid, 1), jnp.float32),
        # SE fc weights (no bias), stored PyTorch-style (out, in)
        "wfc1": 0.1 * jax.random.normal(ks[3], (Cr, Cmid), dtype=jnp.float32),
        "wfc2": 0.1 * jax.random.normal(ks[4], (Cmid, Cr), dtype=jnp.float32),
        # Conv_1x1 #2 weight: PyTorch (Cout, Cmid, 1, 1) -> stored (Cout, Cmid)
        "w4t": 0.1 * jax.random.normal(ks[5], (Cout, Cmid), dtype=jnp.float32),
        "g3": jnp.ones((Cout, 1), jnp.float32), "b3": jnp.zeros((Cout, 1), jnp.float32),
    }

    # DropPath(0.5): per-sample mask = floor(keep + U[0,1)) with keep = 0.5
    u = jax.random.uniform(ks[6], (N,), dtype=jnp.float32)
    drop_mask = (u >= 0.5).astype(jnp.float32)

    out = mbconv_forward(x, params, drop_mask)
    out = jax.block_until_ready(out)

    ref = mbconv_reference(x, params, drop_mask)
    assert out.shape == (N, Cout, H, W), out.shape
    max_err = float(jnp.max(jnp.abs(out - ref)))
    assert jnp.allclose(out, ref, atol=1e-3, rtol=1e-3), max_err

    print("KERNEL_OK")
</pallas_src>

<mosaic_0001>
module attributes {stable_mosaic.version = 11 : i64} {
  func.func @_mbconv_kernel(%arg0: memref<8x512xf32, #tpu.memory_space<vmem>>, %arg1: memref<88x16xf32, #tpu.memory_space<vmem>>, %arg2: memref<8x512xf32, #tpu.memory_space<vmem>>, %arg3: memref<2xf32, #tpu.memory_space<smem>>, %arg4: memref<8x512xf32, #tpu.memory_space<vmem>>) attributes {dimension_semantics = [], scalar_prefetch = 0 : i64, scratch_operands = 0 : i64, tpu.core_type = #tpu.core_type<tc>} {
    %c0 = arith.constant 0 : index
    %c0_0 = arith.constant 0 : index
    %0 = vector.load %arg1[%c0, %c0_0] : memref<88x16xf32, #tpu.memory_space<vmem>>, vector<16x8xf32>
    %c16 = arith.constant 16 : index
    %c0_1 = arith.constant 0 : index
    %1 = vector.load %arg1[%c16, %c0_1] : memref<88x16xf32, #tpu.memory_space<vmem>>, vector<16x9xf32>
    %c32 = arith.constant 32 : index
    %c0_2 = arith.constant 0 : index
    %2 = vector.load %arg1[%c32, %c0_2] : memref<88x16xf32, #tpu.memory_space<vmem>>, vector<4x16xf32>
    %c40 = arith.constant 40 : index
    %c0_3 = arith.constant 0 : index
    %3 = vector.load %arg1[%c40, %c0_3] : memref<88x16xf32, #tpu.memory_space<vmem>>, vector<16x4xf32>
    %c56 = arith.constant 56 : index
    %c0_4 = arith.constant 0 : index
    %4 = vector.load %arg1[%c56, %c0_4] : memref<88x16xf32, #tpu.memory_space<vmem>>, vector<8x16xf32>
    %c64 = arith.constant 64 : index
    %c0_5 = arith.constant 0 : index
    %5 = vector.load %arg1[%c64, %c0_5] : memref<88x16xf32, #tpu.memory_space<vmem>>, vector<16x4xf32>
    %c80 = arith.constant 80 : index
    %c0_6 = arith.constant 0 : index
    %6 = vector.load %arg1[%c80, %c0_6] : memref<88x16xf32, #tpu.memory_space<vmem>>, vector<8x2xf32>
    %c0_7 = arith.constant 0 : index
    %c0_8 = arith.constant 0 : index
    %7 = vector.load %arg0[%c0_7, %c0_8] : memref<8x512xf32, #tpu.memory_space<vmem>>, vector<8x512xf32>
    %8 = vector.extract_strided_slice %0 {offsets = [0, 0], sizes = [16, 1], strides = [1, 1]} : vector<16x8xf32> to vector<16x1xf32>
    %9 = vector.extract_strided_slice %7 {offsets = [0, 0], sizes = [1, 512], strides = [1, 1]} : vector<8x512xf32> to vector<1x512xf32>
    %10 = vector.broadcast %8 : vector<16x1xf32> to vector<16x512xf32>
    %11 = vector.broadcast %9 : vector<1x512xf32> to vector<16x512xf32>
    %12 = arith.mulf %10, %11 : vector<16x512xf32>
    %13 = vector.extract_strided_slice %0 {offsets = [0, 1], sizes = [16, 1], strides = [1, 1]} : vector<16x8xf32> to vector<16x1xf32>
    %14 = vector.extract_strided_slice %7 {offsets = [1, 0], sizes = [1, 512], strides = [1, 1]} : vector<8x512xf32> to vector<1x512xf32>
    %15 = vector.broadcast %13 : vector<16x1xf32> to vector<16x512xf32>
    %16 = vector.broadcast %14 : vector<1x512xf32> to vector<16x512xf32>
    %17 = arith.mulf %15, %16 : vector<16x512xf32>
    %18 = arith.addf %12, %17 : vector<16x512xf32>
    %19 = vector.extract_strided_slice %0 {offsets = [0, 2], sizes = [16, 1], strides = [1, 1]} : vector<16x8xf32> to vector<16x1xf32>
    %20 = vector.extract_strided_slice %7 {offsets = [2, 0], sizes = [1, 512], strides = [1, 1]} : vector<8x512xf32> to vector<1x512xf32>
    %21 = vector.broadcast %19 : vector<16x1xf32> to vector<16x512xf32>
    %22 = vector.broadcast %20 : vector<1x512xf32> to vector<16x512xf32>
    %23 = arith.mulf %21, %22 : vector<16x512xf32>
    %24 = arith.addf %18, %23 : vector<16x512xf32>
    %25 = vector.extract_strided_slice %0 {offsets = [0, 3], sizes = [16, 1], strides = [1, 1]} : vector<16x8xf32> to vector<16x1xf32>
    %26 = vector.extract_strided_slice %7 {offsets = [3, 0], sizes = [1, 512], strides = [1, 1]} : vector<8x512xf32> to vector<1x512xf32>
    %27 = vector.broadcast %25 : vector<16x1xf32> to vector<16x512xf32>
    %28 = vector.broadcast %26 : vector<1x512xf32> to vector<16x512xf32>
    %29 = arith.mulf %27, %28 : vector<16x512xf32>
    %30 = arith.addf %24, %29 : vector<16x512xf32>
    %31 = vector.extract_strided_slice %0 {offsets = [0, 4], sizes = [16, 1], strides = [1, 1]} : vector<16x8xf32> to vector<16x1xf32>
    %32 = vector.extract_strided_slice %7 {offsets = [4, 0], sizes = [1, 512], strides = [1, 1]} : vector<8x512xf32> to vector<1x512xf32>
    %33 = vector.broadcast %31 : vector<16x1xf32> to vector<16x512xf32>
    %34 = vector.broadcast %32 : vector<1x512xf32> to vector<16x512xf32>
    %35 = arith.mulf %33, %34 : vector<16x512xf32>
    %36 = arith.addf %30, %35 : vector<16x512xf32>
    %37 = vector.extract_strided_slice %0 {offsets = [0, 5], sizes = [16, 1], strides = [1, 1]} : vector<16x8xf32> to vector<16x1xf32>
    %38 = vector.extract_strided_slice %7 {offsets = [5, 0], sizes = [1, 512], strides = [1, 1]} : vector<8x512xf32> to vector<1x512xf32>
    %39 = vector.broadcast %37 : vector<16x1xf32> to vector<16x512xf32>
    %40 = vector.broadcast %38 : vector<1x512xf32> to vector<16x512xf32>
    %41 = arith.mulf %39, %40 : vector<16x512xf32>
    %42 = arith.addf %36, %41 : vector<16x512xf32>
    %43 = vector.extract_strided_slice %0 {offsets = [0, 6], sizes = [16, 1], strides = [1, 1]} : vector<16x8xf32> to vector<16x1xf32>
    %44 = vector.extract_strided_slice %7 {offsets = [6, 0], sizes = [1, 512], strides = [1, 1]} : vector<8x512xf32> to vector<1x512xf32>
    %45 = vector.broadcast %43 : vector<16x1xf32> to vector<16x512xf32>
    %46 = vector.broadcast %44 : vector<1x512xf32> to vector<16x512xf32>
    %47 = arith.mulf %45, %46 : vector<16x512xf32>
    %48 = arith.addf %42, %47 : vector<16x512xf32>
    %49 = vector.extract_strided_slice %0 {offsets = [0, 7], sizes = [16, 1], strides = [1, 1]} : vector<16x8xf32> to vector<16x1xf32>
    %50 = vector.extract_strided_slice %7 {offsets = [7, 0], sizes = [1, 512], strides = [1, 1]} : vector<8x512xf32> to vector<1x512xf32>
    %51 = vector.broadcast %49 : vector<16x1xf32> to vector<16x512xf32>
    %52 = vector.broadcast %50 : vector<1x512xf32> to vector<16x512xf32>
    %53 = arith.mulf %51, %52 : vector<16x512xf32>
    %54 = arith.addf %48, %53 : vector<16x512xf32>
    %55 = vector.extract_strided_slice %5 {offsets = [0, 0], sizes = [16, 1], strides = [1, 1]} : vector<16x4xf32> to vector<16x1xf32>
    %56 = vector.extract_strided_slice %5 {offsets = [0, 1], sizes = [16, 1], strides = [1, 1]} : vector<16x4xf32> to vector<16x1xf32>
    %57 = arith.mulf %54, %54 : vector<16x512xf32>
    %58 = tpu.concatenate %54, %57 in 0 : vector<16x512xf32>, vector<16x512xf32> -> vector<32x512xf32>
    %cst = arith.constant dense<0.000000e+00> : vector<32xf32>
    %59 = vector.multi_reduction <add>, %58, %cst [1] : vector<32x512xf32> to vector<32xf32>
    %60 = vector.shape_cast %59 : vector<32xf32> to vector<32x1xf32>
    %61 = vector.extract_strided_slice %60 {offsets = [0, 0], sizes = [16, 1], strides = [1, 1]} : vector<32x1xf32> to vector<16x1xf32>
    %cst_9 = arith.constant 0.001953125 : f32
    %62 = vector.broadcast %cst_9 : f32 to vector<16x1xf32>
    %63 = arith.mulf %61, %62 : vector<16x1xf32>
    %64 = vector.extract_strided_slice %60 {offsets = [16, 0], sizes = [16, 1], strides = [1, 1]} : vector<32x1xf32> to vector<16x1xf32>
    %cst_10 = arith.constant 0.001953125 : f32
    %65 = vector.broadcast %cst_10 : f32 to vector<16x1xf32>
    %66 = arith.mulf %64, %65 : vector<16x1xf32>
    %67 = arith.mulf %63, %63 : vector<16x1xf32>
    %68 = arith.subf %66, %67 : vector<16x1xf32>
    %cst_11 = arith.constant 0.000000e+00 : f32
    %69 = vector.broadcast %cst_11 : f32 to vector<16x1xf32>
    %70 = arith.maximumf %68, %69 : vector<16x1xf32>
    %cst_12 = arith.constant 9.99999974E-6 : f32
    %71 = vector.broadcast %cst_12 : f32 to vector<16x1xf32>
    %72 = arith.addf %70, %71 : vector<16x1xf32>
    %73 = math.rsqrt %72 : vector<16x1xf32>
    %74 = arith.mulf %55, %73 : vector<16x1xf32>
    %75 = arith.mulf %63, %74 : vector<16x1xf32>
    %76 = arith.subf %56, %75 : vector<16x1xf32>
    %77 = vector.broadcast %74 : vector<16x1xf32> to vector<16x512xf32>
    %78 = arith.mulf %54, %77 : vector<16x512xf32>
    %79 = vector.broadcast %76 : vector<16x1xf32> to vector<16x512xf32>
    %80 = arith.addf %78, %79 : vector<16x512xf32>
    %cst_13 = arith.constant 0.000000e+00 : f32
    %81 = vector.broadcast %cst_13 : f32 to vector<16x512xf32>
    %82 = arith.maximumf %80, %81 : vector<16x512xf32>
    %c0_14 = arith.constant 0 : index
    %c0_15 = arith.constant 0 : index
    %83 = vector.load %arg2[%c0_14, %c0_15] : memref<8x512xf32, #tpu.memory_space<vmem>>, vector<8x512xf32>
    %84 = vector.extract_strided_slice %1 {offsets = [0, 4], sizes = [16, 1], strides = [1, 1]} : vector<16x9xf32> to vector<16x1xf32>
    %85 = vector.broadcast %84 : vector<16x1xf32> to vector<16x512xf32>
    %86 = arith.mulf %82, %85 : vector<16x512xf32>
    %c17_i32 = arith.constant 17 : i32
    %87 = tpu.dynamic_rotate %82 by %c17_i32 dim 1 : vector<16x512xf32>, i32 -> vector<16x512xf32>
    %88 = vector.extract_strided_slice %83 {offsets = [0, 0], sizes = [1, 512], strides = [1, 1]} : vector<8x512xf32> to vector<1x512xf32>
    %89 = vector.broadcast %88 : vector<1x512xf32> to vector<16x512xf32>
    %90 = arith.mulf %87, %89 : vector<16x512xf32>
    %91 = vector.extract_strided_slice %1 {offsets = [0, 0], sizes = [16, 1], strides = [1, 1]} : vector<16x9xf32> to vector<16x1xf32>
    %92 = vector.broadcast %91 : vector<16x1xf32> to vector<16x512xf32>
    %93 = arith.mulf %90, %92 : vector<16x512xf32>
    %94 = arith.addf %86, %93 : vector<16x512xf32>
    %c16_i32 = arith.constant 16 : i32
    %95 = tpu.dynamic_rotate %82 by %c16_i32 dim 1 : vector<16x512xf32>, i32 -> vector<16x512xf32>
    %96 = vector.extract_strided_slice %83 {offsets = [1, 0], sizes = [1, 512], strides = [1, 1]} : vector<8x512xf32> to vector<1x512xf32>
    %97 = vector.broadcast %96 : vector<1x512xf32> to vector<16x512xf32>
    %98 = arith.mulf %95, %97 : vector<16x512xf32>
    %99 = vector.extract_strided_slice %1 {offsets = [0, 1], sizes = [16, 1], strides = [1, 1]} : vector<16x9xf32> to vector<16x1xf32>
    %100 = vector.broadcast %99 : vector<16x1xf32> to vector<16x512xf32>
    %101 = arith.mulf %98, %100 : vector<16x512xf32>
    %102 = arith.addf %94, %101 : vector<16x512xf32>
    %c15_i32 = arith.constant 15 : i32
    %103 = tpu.dynamic_rotate %82 by %c15_i32 dim 1 : vector<16x512xf32>, i32 -> vector<16x512xf32>
    %104 = vector.extract_strided_slice %83 {offsets = [2, 0], sizes = [1, 512], strides = [1, 1]} : vector<8x512xf32> to vector<1x512xf32>
    %105 = vector.broadcast %104 : vector<1x512xf32> to vector<16x512xf32>
    %106 = arith.mulf %103, %105 : vector<16x512xf32>
    %107 = vector.extract_strided_slice %1 {offsets = [0, 2], sizes = [16, 1], strides = [1, 1]} : vector<16x9xf32> to vector<16x1xf32>
    %108 = vector.broadcast %107 : vector<16x1xf32> to vector<16x512xf32>
    %109 = arith.mulf %106, %108 : vector<16x512xf32>
    %110 = arith.addf %102, %109 : vector<16x512xf32>
    %c1_i32 = arith.constant 1 : i32
    %111 = tpu.dynamic_rotate %82 by %c1_i32 dim 1 : vector<16x512xf32>, i32 -> vector<16x512xf32>
    %112 = vector.extract_strided_slice %83 {offsets = [3, 0], sizes = [1, 512], strides = [1, 1]} : vector<8x512xf32> to vector<1x512xf32>
    %113 = vector.broadcast %112 : vector<1x512xf32> to vector<16x512xf32>
    %114 = arith.mulf %111, %113 : vector<16x512xf32>
    %115 = vector.extract_strided_slice %1 {offsets = [0, 3], sizes = [16, 1], strides = [1, 1]} : vector<16x9xf32> to vector<16x1xf32>
    %116 = vector.broadcast %115 : vector<16x1xf32> to vector<16x512xf32>
    %117 = arith.mulf %114, %116 : vector<16x512xf32>
    %118 = arith.addf %110, %117 : vector<16x512xf32>
    %c511_i32 = arith.constant 511 : i32
    %119 = tpu.dynamic_rotate %82 by %c511_i32 dim 1 : vector<16x512xf32>, i32 -> vector<16x512xf32>
    %120 = vector.extract_strided_slice %83 {offsets = [4, 0], sizes = [1, 512], strides = [1, 1]} : vector<8x512xf32> to vector<1x512xf32>
    %121 = vector.broadcast %120 : vector<1x512xf32> to vector<16x512xf32>
    %122 = arith.mulf %119, %121 : vector<16x512xf32>
    %123 = vector.extract_strided_slice %1 {offsets = [0, 5], sizes = [16, 1], strides = [1, 1]} : vector<16x9xf32> to vector<16x1xf32>
    %124 = vector.broadcast %123 : vector<16x1xf32> to vector<16x512xf32>
    %125 = arith.mulf %122, %124 : vector<16x512xf32>
    %126 = arith.addf %118, %125 : vector<16x512xf32>
    %c497_i32 = arith.constant 497 : i32
    %127 = tpu.dynamic_rotate %82 by %c497_i32 dim 1 : vector<16x512xf32>, i32 -> vector<16x512xf32>
    %128 = vector.extract_strided_slice %83 {offsets = [5, 0], sizes = [1, 512], strides = [1, 1]} : vector<8x512xf32> to vector<1x512xf32>
    %129 = vector.broadcast %128 : vector<1x512xf32> to vector<16x512xf32>
    %130 = arith.mulf %127, %129 : vector<16x512xf32>
    %131 = vector.extract_strided_slice %1 {offsets = [0, 6], sizes = [16, 1], strides = [1, 1]} : vector<16x9xf32> to vector<16x1xf32>
    %132 = vector.broadcast %131 : vector<16x1xf32> to vector<16x512xf32>
    %133 = arith.mulf %130, %132 : vector<16x512xf32>
    %134 = arith.addf %126, %133 : vector<16x512xf32>
    %c496_i32 = arith.constant 496 : i32
    %135 = tpu.dynamic_rotate %82 by %c496_i32 dim 1 : vector<16x512xf32>, i32 -> vector<16x512xf32>
    %136 = vector.extract_strided_slice %83 {offsets = [6, 0], sizes = [1, 512], strides = [1, 1]} : vector<8x512xf32> to vector<1x512xf32>
    %137 = vector.broadcast %136 : vector<1x512xf32> to vector<16x512xf32>
    %138 = arith.mulf %135, %137 : vector<16x512xf32>
    %139 = vector.extract_strided_slice %1 {offsets = [0, 7], sizes = [16, 1], strides = [1, 1]} : vector<16x9xf32> to vector<16x1xf32>
    %140 = vector.broadcast %139 : vector<16x1xf32> to vector<16x512xf32>
    %141 = arith.mulf %138, %140 : vector<16x512xf32>
    %142 = arith.addf %134, %141 : vector<16x512xf32>
    %c495_i32 = arith.constant 495 : i32
    %143 = tpu.dynamic_rotate %82 by %c495_i32 dim 1 : vector<16x512xf32>, i32 -> vector<16x512xf32>
    %144 = vector.extract_strided_slice %83 {offsets = [7, 0], sizes = [1, 512], strides = [1, 1]} : vector<8x512xf32> to vector<1x512xf32>
    %145 = vector.broadcast %144 : vector<1x512xf32> to vector<16x512xf32>
    %146 = arith.mulf %143, %145 : vector<16x512xf32>
    %147 = vector.extract_strided_slice %1 {offsets = [0, 8], sizes = [16, 1], strides = [1, 1]} : vector<16x9xf32> to vector<16x1xf32>
    %148 = vector.broadcast %147 : vector<16x1xf32> to vector<16x512xf32>
    %149 = arith.mulf %146, %148 : vector<16x512xf32>
    %150 = arith.addf %142, %149 : vector<16x512xf32>
    %151 = vector.extract_strided_slice %5 {offsets = [0, 2], sizes = [16, 1], strides = [1, 1]} : vector<16x4xf32> to vector<16x1xf32>
    %152 = vector.extract_strided_slice %5 {offsets = [0, 3], sizes = [16, 1], strides = [1, 1]} : vector<16x4xf32> to vector<16x1xf32>
    %153 = arith.mulf %150, %150 : vector<16x512xf32>
    %154 = tpu.concatenate %150, %153 in 0 : vector<16x512xf32>, vector<16x512xf32> -> vector<32x512xf32>
    %cst_16 = arith.constant dense<0.000000e+00> : vector<32xf32>
    %155 = vector.multi_reduction <add>, %154, %cst_16 [1] : vector<32x512xf32> to vector<32xf32>
    %156 = vector.shape_cast %155 : vector<32xf32> to vector<32x1xf32>
    %157 = vector.extract_strided_slice %156 {offsets = [0, 0], sizes = [16, 1], strides = [1, 1]} : vector<32x1xf32> to vector<16x1xf32>
    %cst_17 = arith.constant 0.001953125 : f32
    %158 = vector.broadcast %cst_17 : f32 to vector<16x1xf32>
    %159 = arith.mulf %157, %158 : vector<16x1xf32>
    %160 = vector.extract_strided_slice %156 {offsets = [16, 0], sizes = [16, 1], strides = [1, 1]} : vector<32x1xf32> to vector<16x1xf32>
    %cst_18 = arith.constant 0.001953125 : f32
    %161 = vector.broadcast %cst_18 : f32 to vector<16x1xf32>
    %162 = arith.mulf %160, %161 : vector<16x1xf32>
    %163 = arith.mulf %159, %159 : vector<16x1xf32>
    %164 = arith.subf %162, %163 : vector<16x1xf32>
    %cst_19 = arith.constant 0.000000e+00 : f32
    %165 = vector.broadcast %cst_19 : f32 to vector<16x1xf32>
    %166 = arith.maximumf %164, %165 : vector<16x1xf32>
    %cst_20 = arith.constant 9.99999974E-6 : f32
    %167 = vector.broadcast %cst_20 : f32 to vector<16x1xf32>
    %168 = arith.addf %166, %167 : vector<16x1xf32>
    %169 = math.rsqrt %168 : vector<16x1xf32>
    %170 = arith.mulf %151, %169 : vector<16x1xf32>
    %171 = arith.mulf %159, %170 : vector<16x1xf32>
    %172 = arith.subf %152, %171 : vector<16x1xf32>
    %173 = vector.broadcast %170 : vector<16x1xf32> to vector<16x512xf32>
    %174 = arith.mulf %150, %173 : vector<16x512xf32>
    %175 = vector.broadcast %172 : vector<16x1xf32> to vector<16x512xf32>
    %176 = arith.addf %174, %175 : vector<16x512xf32>
    %cst_21 = arith.constant 3.000000e+00 : f32
    %177 = vector.broadcast %cst_21 : f32 to vector<16x512xf32>
    %178 = arith.addf %176, %177 : vector<16x512xf32>
    %cst_22 = arith.constant 0.000000e+00 : f32
    %cst_23 = arith.constant 6.000000e+00 : f32
    %179 = vector.broadcast %cst_22 : f32 to vector<16x512xf32>
    %180 = arith.maximumf %179, %178 : vector<16x512xf32>
    %181 = vector.broadcast %cst_23 : f32 to vector<16x512xf32>
    %182 = arith.minimumf %181, %180 : vector<16x512xf32>
    %183 = arith.mulf %176, %182 : vector<16x512xf32>
    %cst_24 = arith.constant 0.166666672 : f32
    %184 = vector.broadcast %cst_24 : f32 to vector<16x512xf32>
    %185 = arith.mulf %183, %184 : vector<16x512xf32>
    %186 = vector.extract_strided_slice %185 {offsets = [0, 0], sizes = [16, 256], strides = [1, 1]} : vector<16x512xf32> to vector<16x256xf32>
    %cst_25 = arith.constant dense<0.000000e+00> : vector<16xf32>
    %187 = vector.multi_reduction <add>, %186, %cst_25 [1] : vector<16x256xf32> to vector<16xf32>
    %188 = vector.shape_cast %187 : vector<16xf32> to vector<16x1xf32>
    %189 = vector.extract_strided_slice %185 {offsets = [0, 256], sizes = [16, 256], strides = [1, 1]} : vector<16x512xf32> to vector<16x256xf32>
    %cst_26 = arith.constant dense<0.000000e+00> : vector<16xf32>
    %190 = vector.multi_reduction <add>, %189, %cst_26 [1] : vector<16x256xf32> to vector<16xf32>
    %191 = vector.shape_cast %190 : vector<16xf32> to vector<16x1xf32>
    %192 = tpu.concatenate %188, %191 in 1 : vector<16x1xf32>, vector<16x1xf32> -> vector<16x2xf32>
    %cst_27 = arith.constant 3.906250e-03 : f32
    %193 = vector.broadcast %cst_27 : f32 to vector<16x2xf32>
    %194 = arith.mulf %192, %193 : vector<16x2xf32>
    %195 = vector.extract_strided_slice %2 {offsets = [0, 0], sizes = [4, 1], strides = [1, 1]} : vector<4x16xf32> to vector<4x1xf32>
    %196 = vector.extract_strided_slice %194 {offsets = [0, 0], sizes = [1, 2], strides = [1, 1]} : vector<16x2xf32> to vector<1x2xf32>
    %197 = vector.broadcast %195 : vector<4x1xf32> to vector<4x2xf32>
    %198 = vector.broadcast %196 : vector<1x2xf32> to vector<4x2xf32>
    %199 = arith.mulf %197, %198 : vector<4x2xf32>
    %200 = vector.extract_strided_slice %2 {offsets = [0, 1], sizes = [4, 1], strides = [1, 1]} : vector<4x16xf32> to vector<4x1xf32>
    %201 = vector.extract_strided_slice %194 {offsets = [1, 0], sizes = [1, 2], strides = [1, 1]} : vector<16x2xf32> to vector<1x2xf32>
    %202 = vector.broadcast %200 : vector<4x1xf32> to vector<4x2xf32>
    %203 = vector.broadcast %201 : vector<1x2xf32> to vector<4x2xf32>
    %204 = arith.mulf %202, %203 : vector<4x2xf32>
    %205 = arith.addf %199, %204 : vector<4x2xf32>
    %206 = vector.extract_strided_slice %2 {offsets = [0, 2], sizes = [4, 1], strides = [1, 1]} : vector<4x16xf32> to vector<4x1xf32>
    %207 = vector.extract_strided_slice %194 {offsets = [2, 0], sizes = [1, 2], strides = [1, 1]} : vector<16x2xf32> to vector<1x2xf32>
    %208 = vector.broadcast %206 : vector<4x1xf32> to vector<4x2xf32>
    %209 = vector.broadcast %207 : vector<1x2xf32> to vector<4x2xf32>
    %210 = arith.mulf %208, %209 : vector<4x2xf32>
    %211 = arith.addf %205, %210 : vector<4x2xf32>
    %212 = vector.extract_strided_slice %2 {offsets = [0, 3], sizes = [4, 1], strides = [1, 1]} : vector<4x16xf32> to vector<4x1xf32>
    %213 = vector.extract_strided_slice %194 {offsets = [3, 0], sizes = [1, 2], strides = [1, 1]} : vector<16x2xf32> to vector<1x2xf32>
    %214 = vector.broadcast %212 : vector<4x1xf32> to vector<4x2xf32>
    %215 = vector.broadcast %213 : vector<1x2xf32> to vector<4x2xf32>
    %216 = arith.mulf %214, %215 : vector<4x2xf32>
    %217 = arith.addf %211, %216 : vector<4x2xf32>
    %218 = vector.extract_strided_slice %2 {offsets = [0, 4], sizes = [4, 1], strides = [1, 1]} : vector<4x16xf32> to vector<4x1xf32>
    %219 = vector.extract_strided_slice %194 {offsets = [4, 0], sizes = [1, 2], strides = [1, 1]} : vector<16x2xf32> to vector<1x2xf32>
    %220 = vector.broadcast %218 : vector<4x1xf32> to vector<4x2xf32>
    %221 = vector.broadcast %219 : vector<1x2xf32> to vector<4x2xf32>
    %222 = arith.mulf %220, %221 : vector<4x2xf32>
    %223 = arith.addf %217, %222 : vector<4x2xf32>
    %224 = vector.extract_strided_slice %2 {offsets = [0, 5], sizes = [4, 1], strides = [1, 1]} : vector<4x16xf32> to vector<4x1xf32>
    %225 = vector.extract_strided_slice %194 {offsets = [5, 0], sizes = [1, 2], strides = [1, 1]} : vector<16x2xf32> to vector<1x2xf32>
    %226 = vector.broadcast %224 : vector<4x1xf32> to vector<4x2xf32>
    %227 = vector.broadcast %225 : vector<1x2xf32> to vector<4x2xf32>
    %228 = arith.mulf %226, %227 : vector<4x2xf32>
    %229 = arith.addf %223, %228 : vector<4x2xf32>
    %230 = vector.extract_strided_slice %2 {offsets = [0, 6], sizes = [4, 1], strides = [1, 1]} : vector<4x16xf32> to vector<4x1xf32>
    %231 = vector.extract_strided_slice %194 {offsets = [6, 0], sizes = [1, 2], strides = [1, 1]} : vector<16x2xf32> to vector<1x2xf32>
    %232 = vector.broadcast %230 : vector<4x1xf32> to vector<4x2xf32>
    %233 = vector.broadcast %231 : vector<1x2xf32> to vector<4x2xf32>
    %234 = arith.mulf %232, %233 : vector<4x2xf32>
    %235 = arith.addf %229, %234 : vector<4x2xf32>
    %236 = vector.extract_strided_slice %2 {offsets = [0, 7], sizes = [4, 1], strides = [1, 1]} : vector<4x16xf32> to vector<4x1xf32>
    %237 = vector.extract_strided_slice %194 {offsets = [7, 0], sizes = [1, 2], strides = [1, 1]} : vector<16x2xf32> to vector<1x2xf32>
    %238 = vector.broadcast %236 : vector<4x1xf32> to vector<4x2xf32>
    %239 = vector.broadcast %237 : vector<1x2xf32> to vector<4x2xf32>
    %240 = arith.mulf %238, %239 : vector<4x2xf32>
    %241 = arith.addf %235, %240 : vector<4x2xf32>
    %242 = vector.extract_strided_slice %2 {offsets = [0, 8], sizes = [4, 1], strides = [1, 1]} : vector<4x16xf32> to vector<4x1xf32>
    %243 = vector.extract_strided_slice %194 {offsets = [8, 0], sizes = [1, 2], strides = [1, 1]} : vector<16x2xf32> to vector<1x2xf32>
    %244 = vector.broadcast %242 : vector<4x1xf32> to vector<4x2xf32>
    %245 = vector.broadcast %243 : vector<1x2xf32> to vector<4x2xf32>
    %246 = arith.mulf %244, %245 : vector<4x2xf32>
    %247 = arith.addf %241, %246 : vector<4x2xf32>
    %248 = vector.extract_strided_slice %2 {offsets = [0, 9], sizes = [4, 1], strides = [1, 1]} : vector<4x16xf32> to vector<4x1xf32>
    %249 = vector.extract_strided_slice %194 {offsets = [9, 0], sizes = [1, 2], strides = [1, 1]} : vector<16x2xf32> to vector<1x2xf32>
    %250 = vector.broadcast %248 : vector<4x1xf32> to vector<4x2xf32>
    %251 = vector.broadcast %249 : vector<1x2xf32> to vector<4x2xf32>
    %252 = arith.mulf %250, %251 : vector<4x2xf32>
    %253 = arith.addf %247, %252 : vector<4x2xf32>
    %254 = vector.extract_strided_slice %2 {offsets = [0, 10], sizes = [4, 1], strides = [1, 1]} : vector<4x16xf32> to vector<4x1xf32>
    %255 = vector.extract_strided_slice %194 {offsets = [10, 0], sizes = [1, 2], strides = [1, 1]} : vector<16x2xf32> to vector<1x2xf32>
    %256 = vector.broadcast %254 : vector<4x1xf32> to vector<4x2xf32>
    %257 = vector.broadcast %255 : vector<1x2xf32> to vector<4x2xf32>
    %258 = arith.mulf %256, %257 : vector<4x2xf32>
    %259 = arith.addf %253, %258 : vector<4x2xf32>
    %260 = vector.extract_strided_slice %2 {offsets = [0, 11], sizes = [4, 1], strides = [1, 1]} : vector<4x16xf32> to vector<4x1xf32>
    %261 = vector.extract_strided_slice %194 {offsets = [11, 0], sizes = [1, 2], strides = [1, 1]} : vector<16x2xf32> to vector<1x2xf32>
    %262 = vector.broadcast %260 : vector<4x1xf32> to vector<4x2xf32>
    %263 = vector.broadcast %261 : vector<1x2xf32> to vector<4x2xf32>
    %264 = arith.mulf %262, %263 : vector<4x2xf32>
    %265 = arith.addf %259, %264 : vector<4x2xf32>
    %266 = vector.extract_strided_slice %2 {offsets = [0, 12], sizes = [4, 1], strides = [1, 1]} : vector<4x16xf32> to vector<4x1xf32>
    %267 = vector.extract_strided_slice %194 {offsets = [12, 0], sizes = [1, 2], strides = [1, 1]} : vector<16x2xf32> to vector<1x2xf32>
    %268 = vector.broadcast %266 : vector<4x1xf32> to vector<4x2xf32>
    %269 = vector.broadcast %267 : vector<1x2xf32> to vector<4x2xf32>
    %270 = arith.mulf %268, %269 : vector<4x2xf32>
    %271 = arith.addf %265, %270 : vector<4x2xf32>
    %272 = vector.extract_strided_slice %2 {offsets = [0, 13], sizes = [4, 1], strides = [1, 1]} : vector<4x16xf32> to vector<4x1xf32>
    %273 = vector.extract_strided_slice %194 {offsets = [13, 0], sizes = [1, 2], strides = [1, 1]} : vector<16x2xf32> to vector<1x2xf32>
    %274 = vector.broadcast %272 : vector<4x1xf32> to vector<4x2xf32>
    %275 = vector.broadcast %273 : vector<1x2xf32> to vector<4x2xf32>
    %276 = arith.mulf %274, %275 : vector<4x2xf32>
    %277 = arith.addf %271, %276 : vector<4x2xf32>
    %278 = vector.extract_strided_slice %2 {offsets = [0, 14], sizes = [4, 1], strides = [1, 1]} : vector<4x16xf32> to vector<4x1xf32>
    %279 = vector.extract_strided_slice %194 {offsets = [14, 0], sizes = [1, 2], strides = [1, 1]} : vector<16x2xf32> to vector<1x2xf32>
    %280 = vector.broadcast %278 : vector<4x1xf32> to vector<4x2xf32>
    %281 = vector.broadcast %279 : vector<1x2xf32> to vector<4x2xf32>
    %282 = arith.mulf %280, %281 : vector<4x2xf32>
    %283 = arith.addf %277, %282 : vector<4x2xf32>
    %284 = vector.extract_strided_slice %2 {offsets = [0, 15], sizes = [4, 1], strides = [1, 1]} : vector<4x16xf32> to vector<4x1xf32>
    %285 = vector.extract_strided_slice %194 {offsets = [15, 0], sizes = [1, 2], strides = [1, 1]} : vector<16x2xf32> to vector<1x2xf32>
    %286 = vector.broadcast %284 : vector<4x1xf32> to vector<4x2xf32>
    %287 = vector.broadcast %285 : vector<1x2xf32> to vector<4x2xf32>
    %288 = arith.mulf %286, %287 : vector<4x2xf32>
    %289 = arith.addf %283, %288 : vector<4x2xf32>
    %290 = arith.negf %289 : vector<4x2xf32>
    %291 = math.exp %290 : vector<4x2xf32>
    %cst_28 = arith.constant 1.000000e+00 : f32
    %292 = vector.broadcast %cst_28 : f32 to vector<4x2xf32>
    %293 = arith.addf %292, %291 : vector<4x2xf32>
    %294 = arith.divf %292, %293 : vector<4x2xf32>
    %295 = arith.mulf %289, %294 : vector<4x2xf32>
    %296 = vector.extract_strided_slice %3 {offsets = [0, 0], sizes = [16, 1], strides = [1, 1]} : vector<16x4xf32> to vector<16x1xf32>
    %297 = vector.extract_strided_slice %295 {offsets = [0, 0], sizes = [1, 2], strides = [1, 1]} : vector<4x2xf32> to vector<1x2xf32>
    %298 = vector.broadcast %296 : vector<16x1xf32> to vector<16x2xf32>
    %299 = vector.broadcast %297 : vector<1x2xf32> to vector<16x2xf32>
    %300 = arith.mulf %298, %299 : vector<16x2xf32>
    %301 = vector.extract_strided_slice %3 {offsets = [0, 1], sizes = [16, 1], strides = [1, 1]} : vector<16x4xf32> to vector<16x1xf32>
    %302 = vector.extract_strided_slice %295 {offsets = [1, 0], sizes = [1, 2], strides = [1, 1]} : vector<4x2xf32> to vector<1x2xf32>
    %303 = vector.broadcast %301 : vector<16x1xf32> to vector<16x2xf32>
    %304 = vector.broadcast %302 : vector<1x2xf32> to vector<16x2xf32>
    %305 = arith.mulf %303, %304 : vector<16x2xf32>
    %306 = arith.addf %300, %305 : vector<16x2xf32>
    %307 = vector.extract_strided_slice %3 {offsets = [0, 2], sizes = [16, 1], strides = [1, 1]} : vector<16x4xf32> to vector<16x1xf32>
    %308 = vector.extract_strided_slice %295 {offsets = [2, 0], sizes = [1, 2], strides = [1, 1]} : vector<4x2xf32> to vector<1x2xf32>
    %309 = vector.broadcast %307 : vector<16x1xf32> to vector<16x2xf32>
    %310 = vector.broadcast %308 : vector<1x2xf32> to vector<16x2xf32>
    %311 = arith.mulf %309, %310 : vector<16x2xf32>
    %312 = arith.addf %306, %311 : vector<16x2xf32>
    %313 = vector.extract_strided_slice %3 {offsets = [0, 3], sizes = [16, 1], strides = [1, 1]} : vector<16x4xf32> to vector<16x1xf32>
    %314 = vector.extract_strided_slice %295 {offsets = [3, 0], sizes = [1, 2], strides = [1, 1]} : vector<4x2xf32> to vector<1x2xf32>
    %315 = vector.broadcast %313 : vector<16x1xf32> to vector<16x2xf32>
    %316 = vector.broadcast %314 : vector<1x2xf32> to vector<16x2xf32>
    %317 = arith.mulf %315, %316 : vector<16x2xf32>
    %318 = arith.addf %312, %317 : vector<16x2xf32>
    %319 = arith.negf %318 : vector<16x2xf32>
    %320 = math.exp %319 : vector<16x2xf32>
    %cst_29 = arith.constant 1.000000e+00 : f32
    %321 = vector.broadcast %cst_29 : f32 to vector<16x2xf32>
    %322 = arith.addf %321, %320 : vector<16x2xf32>
    %323 = arith.divf %321, %322 : vector<16x2xf32>
    %324 = arith.mulf %318, %323 : vector<16x2xf32>
    %cst_30 = arith.constant 0.000000e+00 : f32
    %325 = vector.broadcast %cst_30 : f32 to vector<16x1xf32>
    %326 = vector.extract_strided_slice %185 {offsets = [0, 0], sizes = [16, 256], strides = [1, 1]} : vector<16x512xf32> to vector<16x256xf32>
    %327 = vector.extract_strided_slice %324 {offsets = [0, 0], sizes = [16, 1], strides = [1, 1]} : vector<16x2xf32> to vector<16x1xf32>
    %328 = vector.extract_strided_slice %4 {offsets = [0, 0], sizes = [8, 1], strides = [1, 1]} : vector<8x16xf32> to vector<8x1xf32>
    %329 = vector.extract_strided_slice %327 {offsets = [0, 0], sizes = [1, 1], strides = [1, 1]} : vector<16x1xf32> to vector<1x1xf32>
    %330 = vector.broadcast %329 : vector<1x1xf32> to vector<8x1xf32>
    %331 = arith.mulf %328, %330 : vector<8x1xf32>
    %332 = vector.extract_strided_slice %326 {offsets = [0, 0], sizes = [1, 256], strides = [1, 1]} : vector<16x256xf32> to vector<1x256xf32>
    %333 = vector.broadcast %331 : vector<8x1xf32> to vector<8x256xf32>
    %334 = vector.broadcast %332 : vector<1x256xf32> to vector<8x256xf32>
    %335 = arith.mulf %333, %334 : vector<8x256xf32>
    %336 = vector.extract_strided_slice %4 {offsets = [0, 1], sizes = [8, 1], strides = [1, 1]} : vector<8x16xf32> to vector<8x1xf32>
    %337 = vector.extract_strided_slice %327 {offsets = [1, 0], sizes = [1, 1], strides = [1, 1]} : vector<16x1xf32> to vector<1x1xf32>
    %338 = vector.broadcast %337 : vector<1x1xf32> to vector<8x1xf32>
    %339 = arith.mulf %336, %338 : vector<8x1xf32>
    %340 = vector.extract_strided_slice %326 {offsets = [1, 0], sizes = [1, 256], strides = [1, 1]} : vector<16x256xf32> to vector<1x256xf32>
    %341 = vector.broadcast %339 : vector<8x1xf32> to vector<8x256xf32>
    %342 = vector.broadcast %340 : vector<1x256xf32> to vector<8x256xf32>
    %343 = arith.mulf %341, %342 : vector<8x256xf32>
    %344 = arith.addf %335, %343 : vector<8x256xf32>
    %345 = vector.extract_strided_slice %4 {offsets = [0, 2], sizes = [8, 1], strides = [1, 1]} : vector<8x16xf32> to vector<8x1xf32>
    %346 = vector.extract_strided_slice %327 {offsets = [2, 0], sizes = [1, 1], strides = [1, 1]} : vector<16x1xf32> to vector<1x1xf32>
    %347 = vector.broadcast %346 : vector<1x1xf32> to vector<8x1xf32>
    %348 = arith.mulf %345, %347 : vector<8x1xf32>
    %349 = vector.extract_strided_slice %326 {offsets = [2, 0], sizes = [1, 256], strides = [1, 1]} : vector<16x256xf32> to vector<1x256xf32>
    %350 = vector.broadcast %348 : vector<8x1xf32> to vector<8x256xf32>
    %351 = vector.broadcast %349 : vector<1x256xf32> to vector<8x256xf32>
    %352 = arith.mulf %350, %351 : vector<8x256xf32>
    %353 = arith.addf %344, %352 : vector<8x256xf32>
    %354 = vector.extract_strided_slice %4 {offsets = [0, 3], sizes = [8, 1], strides = [1, 1]} : vector<8x16xf32> to vector<8x1xf32>
    %355 = vector.extract_strided_slice %327 {offsets = [3, 0], sizes = [1, 1], strides = [1, 1]} : vector<16x1xf32> to vector<1x1xf32>
    %356 = vector.broadcast %355 : vector<1x1xf32> to vector<8x1xf32>
    %357 = arith.mulf %354, %356 : vector<8x1xf32>
    %358 = vector.extract_strided_slice %326 {offsets = [3, 0], sizes = [1, 256], strides = [1, 1]} : vector<16x256xf32> to vector<1x256xf32>
    %359 = vector.broadcast %357 : vector<8x1xf32> to vector<8x256xf32>
    %360 = vector.broadcast %358 : vector<1x256xf32> to vector<8x256xf32>
    %361 = arith.mulf %359, %360 : vector<8x256xf32>
    %362 = arith.addf %353, %361 : vector<8x256xf32>
    %363 = vector.extract_strided_slice %4 {offsets = [0, 4], sizes = [8, 1], strides = [1, 1]} : vector<8x16xf32> to vector<8x1xf32>
    %364 = vector.extract_strided_slice %327 {offsets = [4, 0], sizes = [1, 1], strides = [1, 1]} : vector<16x1xf32> to vector<1x1xf32>
    %365 = vector.broadcast %364 : vector<1x1xf32> to vector<8x1xf32>
    %366 = arith.mulf %363, %365 : vector<8x1xf32>
    %367 = vector.extract_strided_slice %326 {offsets = [4, 0], sizes = [1, 256], strides = [1, 1]} : vector<16x256xf32> to vector<1x256xf32>
    %368 = vector.broadcast %366 : vector<8x1xf32> to vector<8x256xf32>
    %369 = vector.broadcast %367 : vector<1x256xf32> to vector<8x256xf32>
    %370 = arith.mulf %368, %369 : vector<8x256xf32>
    %371 = arith.addf %362, %370 : vector<8x256xf32>
    %372 = vector.extract_strided_slice %4 {offsets = [0, 5], sizes = [8, 1], strides = [1, 1]} : vector<8x16xf32> to vector<8x1xf32>
    %373 = vector.extract_strided_slice %327 {offsets = [5, 0], sizes = [1, 1], strides = [1, 1]} : vector<16x1xf32> to vector<1x1xf32>
    %374 = vector.broadcast %373 : vector<1x1xf32> to vector<8x1xf32>
    %375 = arith.mulf %372, %374 : vector<8x1xf32>
    %376 = vector.extract_strided_slice %326 {offsets = [5, 0], sizes = [1, 256], strides = [1, 1]} : vector<16x256xf32> to vector<1x256xf32>
    %377 = vector.broadcast %375 : vector<8x1xf32> to vector<8x256xf32>
    %378 = vector.broadcast %376 : vector<1x256xf32> to vector<8x256xf32>
    %379 = arith.mulf %377, %378 : vector<8x256xf32>
    %380 = arith.addf %371, %379 : vector<8x256xf32>
    %381 = vector.extract_strided_slice %4 {offsets = [0, 6], sizes = [8, 1], strides = [1, 1]} : vector<8x16xf32> to vector<8x1xf32>
    %382 = vector.extract_strided_slice %327 {offsets = [6, 0], sizes = [1, 1], strides = [1, 1]} : vector<16x1xf32> to vector<1x1xf32>
    %383 = vector.broadcast %382 : vector<1x1xf32> to vector<8x1xf32>
    %384 = arith.mulf %381, %383 : vector<8x1xf32>
    %385 = vector.extract_strided_slice %326 {offsets = [6, 0], sizes = [1, 256], strides = [1, 1]} : vector<16x256xf32> to vector<1x256xf32>
    %386 = vector.broadcast %384 : vector<8x1xf32> to vector<8x256xf32>
    %387 = vector.broadcast %385 : vector<1x256xf32> to vector<8x256xf32>
    %388 = arith.mulf %386, %387 : vector<8x256xf32>
    %389 = arith.addf %380, %388 : vector<8x256xf32>
    %390 = vector.extract_strided_slice %4 {offsets = [0, 7], sizes = [8, 1], strides = [1, 1]} : vector<8x16xf32> to vector<8x1xf32>
    %391 = vector.extract_strided_slice %327 {offsets = [7, 0], sizes = [1, 1], strides = [1, 1]} : vector<16x1xf32> to vector<1x1xf32>
    %392 = vector.broadcast %391 : vector<1x1xf32> to vector<8x1xf32>
    %393 = arith.mulf %390, %392 : vector<8x1xf32>
    %394 = vector.extract_strided_slice %326 {offsets = [7, 0], sizes = [1, 256], strides = [1, 1]} : vector<16x256xf32> to vector<1x256xf32>
    %395 = vector.broadcast %393 : vector<8x1xf32> to vector<8x256xf32>
    %396 = vector.broadcast %394 : vector<1x256xf32> to vector<8x256xf32>
    %397 = arith.mulf %395, %396 : vector<8x256xf32>
    %398 = arith.addf %389, %397 : vector<8x256xf32>
    %399 = vector.extract_strided_slice %4 {offsets = [0, 8], sizes = [8, 1], strides = [1, 1]} : vector<8x16xf32> to vector<8x1xf32>
    %400 = vector.extract_strided_slice %327 {offsets = [8, 0], sizes = [1, 1], strides = [1, 1]} : vector<16x1xf32> to vector<1x1xf32>
    %401 = vector.broadcast %400 : vector<1x1xf32> to vector<8x1xf32>
    %402 = arith.mulf %399, %401 : vector<8x1xf32>
    %403 = vector.extract_strided_slice %326 {offsets = [8, 0], sizes = [1, 256], strides = [1, 1]} : vector<16x256xf32> to vector<1x256xf32>
    %404 = vector.broadcast %402 : vector<8x1xf32> to vector<8x256xf32>
    %405 = vector.broadcast %403 : vector<1x256xf32> to vector<8x256xf32>
    %406 = arith.mulf %404, %405 : vector<8x256xf32>
    %407 = arith.addf %398, %406 : vector<8x256xf32>
    %408 = vector.extract_strided_slice %4 {offsets = [0, 9], sizes = [8, 1], strides = [1, 1]} : vector<8x16xf32> to vector<8x1xf32>
    %409 = vector.extract_strided_slice %327 {offsets = [9, 0], sizes = [1, 1], strides = [1, 1]} : vector<16x1xf32> to vector<1x1xf32>
    %410 = vector.broadcast %409 : vector<1x1xf32> to vector<8x1xf32>
    %411 = arith.mulf %408, %410 : vector<8x1xf32>
    %412 = vector.extract_strided_slice %326 {offsets = [9, 0], sizes = [1, 256], strides = [1, 1]} : vector<16x256xf32> to vector<1x256xf32>
    %413 = vector.broadcast %411 : vector<8x1xf32> to vector<8x256xf32>
    %414 = vector.broadcast %412 : vector<1x256xf32> to vector<8x256xf32>
    %415 = arith.mulf %413, %414 : vector<8x256xf32>
    %416 = arith.addf %407, %415 : vector<8x256xf32>
    %417 = vector.extract_strided_slice %4 {offsets = [0, 10], sizes = [8, 1], strides = [1, 1]} : vector<8x16xf32> to vector<8x1xf32>
    %418 = vector.extract_strided_slice %327 {offsets = [10, 0], sizes = [1, 1], strides = [1, 1]} : vector<16x1xf32> to vector<1x1xf32>
    %419 = vector.broadcast %418 : vector<1x1xf32> to vector<8x1xf32>
    %420 = arith.mulf %417, %419 : vector<8x1xf32>
    %421 = vector.extract_strided_slice %326 {offsets = [10, 0], sizes = [1, 256], strides = [1, 1]} : vector<16x256xf32> to vector<1x256xf32>
    %422 = vector.broadcast %420 : vector<8x1xf32> to vector<8x256xf32>
    %423 = vector.broadcast %421 : vector<1x256xf32> to vector<8x256xf32>
    %424 = arith.mulf %422, %423 : vector<8x256xf32>
    %425 = arith.addf %416, %424 : vector<8x256xf32>
    %426 = vector.extract_strided_slice %4 {offsets = [0, 11], sizes = [8, 1], strides = [1, 1]} : vector<8x16xf32> to vector<8x1xf32>
    %427 = vector.extract_strided_slice %327 {offsets = [11, 0], sizes = [1, 1], strides = [1, 1]} : vector<16x1xf32> to vector<1x1xf32>
    %428 = vector.broadcast %427 : vector<1x1xf32> to vector<8x1xf32>
    %429 = arith.mulf %426, %428 : vector<8x1xf32>
    %430 = vector.extract_strided_slice %326 {offsets = [11, 0], sizes = [1, 256], strides = [1, 1]} : vector<16x256xf32> to vector<1x256xf32>
    %431 = vector.broadcast %429 : vector<8x1xf32> to vector<8x256xf32>
    %432 = vector.broadcast %430 : vector<1x256xf32> to vector<8x256xf32>
    %433 = arith.mulf %431, %432 : vector<8x256xf32>
    %434 = arith.addf %425, %433 : vector<8x256xf32>
    %435 = vector.extract_strided_slice %4 {offsets = [0, 12], sizes = [8, 1], strides = [1, 1]} : vector<8x16xf32> to vector<8x1xf32>
    %436 = vector.extract_strided_slice %327 {offsets = [12, 0], sizes = [1, 1], strides = [1, 1]} : vector<16x1xf32> to vector<1x1xf32>
    %437 = vector.broadcast %436 : vector<1x1xf32> to vector<8x1xf32>
    %438 = arith.mulf %435, %437 : vector<8x1xf32>
    %439 = vector.extract_strided_slice %326 {offsets = [12, 0], sizes = [1, 256], strides = [1, 1]} : vector<16x256xf32> to vector<1x256xf32>
    %440 = vector.broadcast %438 : vector<8x1xf32> to vector<8x256xf32>
    %441 = vector.broadcast %439 : vector<1x256xf32> to vector<8x256xf32>
    %442 = arith.mulf %440, %441 : vector<8x256xf32>
    %443 = arith.addf %434, %442 : vector<8x256xf32>
    %444 = vector.extract_strided_slice %4 {offsets = [0, 13], sizes = [8, 1], strides = [1, 1]} : vector<8x16xf32> to vector<8x1xf32>
    %445 = vector.extract_strided_slice %327 {offsets = [13, 0], sizes = [1, 1], strides = [1, 1]} : vector<16x1xf32> to vector<1x1xf32>
    %446 = vector.broadcast %445 : vector<1x1xf32> to vector<8x1xf32>
    %447 = arith.mulf %444, %446 : vector<8x1xf32>
    %448 = vector.extract_strided_slice %326 {offsets = [13, 0], sizes = [1, 256], strides = [1, 1]} : vector<16x256xf32> to vector<1x256xf32>
    %449 = vector.broadcast %447 : vector<8x1xf32> to vector<8x256xf32>
    %450 = vector.broadcast %448 : vector<1x256xf32> to vector<8x256xf32>
    %451 = arith.mulf %449, %450 : vector<8x256xf32>
    %452 = arith.addf %443, %451 : vector<8x256xf32>
    %453 = vector.extract_strided_slice %4 {offsets = [0, 14], sizes = [8, 1], strides = [1, 1]} : vector<8x16xf32> to vector<8x1xf32>
    %454 = vector.extract_strided_slice %327 {offsets = [14, 0], sizes = [1, 1], strides = [1, 1]} : vector<16x1xf32> to vector<1x1xf32>
    %455 = vector.broadcast %454 : vector<1x1xf32> to vector<8x1xf32>
    %456 = arith.mulf %453, %455 : vector<8x1xf32>
    %457 = vector.extract_strided_slice %326 {offsets = [14, 0], sizes = [1, 256], strides = [1, 1]} : vector<16x256xf32> to vector<1x256xf32>
    %458 = vector.broadcast %456 : vector<8x1xf32> to vector<8x256xf32>
    %459 = vector.broadcast %457 : vector<1x256xf32> to vector<8x256xf32>
    %460 = arith.mulf %458, %459 : vector<8x256xf32>
    %461 = arith.addf %452, %460 : vector<8x256xf32>
    %462 = vector.extract_strided_slice %4 {offsets = [0, 15], sizes = [8, 1], strides = [1, 1]} : vector<8x16xf32> to vector<8x1xf32>
    %463 = vector.extract_strided_slice %327 {offsets = [15, 0], sizes = [1, 1], strides = [1, 1]} : vector<16x1xf32> to vector<1x1xf32>
    %464 = vector.broadcast %463 : vector<1x1xf32> to vector<8x1xf32>
    %465 = arith.mulf %462, %464 : vector<8x1xf32>
    %466 = vector.extract_strided_slice %326 {offsets = [15, 0], sizes = [1, 256], strides = [1, 1]} : vector<16x256xf32> to vector<1x256xf32>
    %467 = vector.broadcast %465 : vector<8x1xf32> to vector<8x256xf32>
    %468 = vector.broadcast %466 : vector<1x256xf32> to vector<8x256xf32>
    %469 = arith.mulf %467, %468 : vector<8x256xf32>
    %470 = arith.addf %461, %469 : vector<8x256xf32>
    %471 = arith.mulf %470, %470 : vector<8x256xf32>
    %472 = tpu.concatenate %470, %471 in 0 : vector<8x256xf32>, vector<8x256xf32> -> vector<16x256xf32>
    %cst_31 = arith.constant dense<0.000000e+00> : vector<16xf32>
    %473 = vector.multi_reduction <add>, %472, %cst_31 [1] : vector<16x256xf32> to vector<16xf32>
    %474 = vector.shape_cast %473 : vector<16xf32> to vector<16x1xf32>
    %475 = arith.addf %325, %474 : vector<16x1xf32>
    %476 = vector.extract_strided_slice %185 {offsets = [0, 256], sizes = [16, 256], strides = [1, 1]} : vector<16x512xf32> to vector<16x256xf32>
    %477 = vector.extract_strided_slice %324 {offsets = [0, 1], sizes = [16, 1], strides = [1, 1]} : vector<16x2xf32> to vector<16x1xf32>
    %478 = vector.extract_strided_slice %4 {offsets = [0, 0], sizes = [8, 1], strides = [1, 1]} : vector<8x16xf32> to vector<8x1xf32>
    %479 = vector.extract_strided_slice %477 {offsets = [0, 0], sizes = [1, 1], strides = [1, 1]} : vector<16x1xf32> to vector<1x1xf32>
    %480 = vector.broadcast %479 : vector<1x1xf32> to vector<8x1xf32>
    %481 = arith.mulf %478, %480 : vector<8x1xf32>
    %482 = vector.extract_strided_slice %476 {offsets = [0, 0], sizes = [1, 256], strides = [1, 1]} : vector<16x256xf32> to vector<1x256xf32>
    %483 = vector.broadcast %481 : vector<8x1xf32> to vector<8x256xf32>
    %484 = vector.broadcast %482 : vector<1x256xf32> to vector<8x256xf32>
    %485 = arith.mulf %483, %484 : vector<8x256xf32>
    %486 = vector.extract_strided_slice %4 {offsets = [0, 1], sizes = [8, 1], strides = [1, 1]} : vector<8x16xf32> to vector<8x1xf32>
    %487 = vector.extract_strided_slice %477 {offsets = [1, 0], sizes = [1, 1], strides = [1, 1]} : vector<16x1xf32> to vector<1x1xf32>
    %488 = vector.broadcast %487 : vector<1x1xf32> to vector<8x1xf32>
    %489 = arith.mulf %486, %488 : vector<8x1xf32>
    %490 = vector.extract_strided_slice %476 {offsets = [1, 0], sizes = [1, 256], strides = [1, 1]} : vector<16x256xf32> to vector<1x256xf32>
    %491 = vector.broadcast %489 : vector<8x1xf32> to vector<8x256xf32>
    %492 = vector.broadcast %490 : vector<1x256xf32> to vector<8x256xf32>
    %493 = arith.mulf %491, %492 : vector<8x256xf32>
    %494 = arith.addf %485, %493 : vector<8x256xf32>
    %495 = vector.extract_strided_slice %4 {offsets = [0, 2], sizes = [8, 1], strides = [1, 1]} : vector<8x16xf32> to vector<8x1xf32>
    %496 = vector.extract_strided_slice %477 {offsets = [2, 0], sizes = [1, 1], strides = [1, 1]} : vector<16x1xf32> to vector<1x1xf32>
    %497 = vector.broadcast %496 : vector<1x1xf32> to vector<8x1xf32>
    %498 = arith.mulf %495, %497 : vector<8x1xf32>
    %499 = vector.extract_strided_slice %476 {offsets = [2, 0], sizes = [1, 256], strides = [1, 1]} : vector<16x256xf32> to vector<1x256xf32>
    %500 = vector.broadcast %498 : vector<8x1xf32> to vector<8x256xf32>
    %501 = vector.broadcast %499 : vector<1x256xf32> to vector<8x256xf32>
    %502 = arith.mulf %500, %501 : vector<8x256xf32>
    %503 = arith.addf %494, %502 : vector<8x256xf32>
    %504 = vector.extract_strided_slice %4 {offsets = [0, 3], sizes = [8, 1], strides = [1, 1]} : vector<8x16xf32> to vector<8x1xf32>
    %505 = vector.extract_strided_slice %477 {offsets = [3, 0], sizes = [1, 1], strides = [1, 1]} : vector<16x1xf32> to vector<1x1xf32>
    %506 = vector.broadcast %505 : vector<1x1xf32> to vector<8x1xf32>
    %507 = arith.mulf %504, %506 : vector<8x1xf32>
    %508 = vector.extract_strided_slice %476 {offsets = [3, 0], sizes = [1, 256], strides = [1, 1]} : vector<16x256xf32> to vector<1x256xf32>
    %509 = vector.broadcast %507 : vector<8x1xf32> to vector<8x256xf32>
    %510 = vector.broadcast %508 : vector<1x256xf32> to vector<8x256xf32>
    %511 = arith.mulf %509, %510 : vector<8x256xf32>
    %512 = arith.addf %503, %511 : vector<8x256xf32>
    %513 = vector.extract_strided_slice %4 {offsets = [0, 4], sizes = [8, 1], strides = [1, 1]} : vector<8x16xf32> to vector<8x1xf32>
    %514 = vector.extract_strided_slice %477 {offsets = [4, 0], sizes = [1, 1], strides = [1, 1]} : vector<16x1xf32> to vector<1x1xf32>
    %515 = vector.broadcast %514 : vector<1x1xf32> to vector<8x1xf32>
    %516 = arith.mulf %513, %515 : vector<8x1xf32>
    %517 = vector.extract_strided_slice %476 {offsets = [4, 0], sizes = [1, 256], strides = [1, 1]} : vector<16x256xf32> to vector<1x256xf32>
    %518 = vector.broadcast %516 : vector<8x1xf32> to vector<8x256xf32>
    %519 = vector.broadcast %517 : vector<1x256xf32> to vector<8x256xf32>
    %520 = arith.mulf %518, %519 : vector<8x256xf32>
    %521 = arith.addf %512, %520 : vector<8x256xf32>
    %522 = vector.extract_strided_slice %4 {offsets = [0, 5], sizes = [8, 1], strides = [1, 1]} : vector<8x16xf32> to vector<8x1xf32>
    %523 = vector.extract_strided_slice %477 {offsets = [5, 0], sizes = [1, 1], strides = [1, 1]} : vector<16x1xf32> to vector<1x1xf32>
    %524 = vector.broadcast %523 : vector<1x1xf32> to vector<8x1xf32>
    %525 = arith.mulf %522, %524 : vector<8x1xf32>
    %526 = vector.extract_strided_slice %476 {offsets = [5, 0], sizes = [1, 256], strides = [1, 1]} : vector<16x256xf32> to vector<1x256xf32>
    %527 = vector.broadcast %525 : vector<8x1xf32> to vector<8x256xf32>
    %528 = vector.broadcast %526 : vector<1x256xf32> to vector<8x256xf32>
    %529 = arith.mulf %527, %528 : vector<8x256xf32>
    %530 = arith.addf %521, %529 : vector<8x256xf32>
    %531 = vector.extract_strided_slice %4 {offsets = [0, 6], sizes = [8, 1], strides = [1, 1]} : vector<8x16xf32> to vector<8x1xf32>
    %532 = vector.extract_strided_slice %477 {offsets = [6, 0], sizes = [1, 1], strides = [1, 1]} : vector<16x1xf32> to vector<1x1xf32>
    %533 = vector.broadcast %532 : vector<1x1xf32> to vector<8x1xf32>
    %534 = arith.mulf %531, %533 : vector<8x1xf32>
    %535 = vector.extract_strided_slice %476 {offsets = [6, 0], sizes = [1, 256], strides = [1, 1]} : vector<16x256xf32> to vector<1x256xf32>
    %536 = vector.broadcast %534 : vector<8x1xf32> to vector<8x256xf32>
    %537 = vector.broadcast %535 : vector<1x256xf32> to vector<8x256xf32>
    %538 = arith.mulf %536, %537 : vector<8x256xf32>
    %539 = arith.addf %530, %538 : vector<8x256xf32>
    %540 = vector.extract_strided_slice %4 {offsets = [0, 7], sizes = [8, 1], strides = [1, 1]} : vector<8x16xf32> to vector<8x1xf32>
    %541 = vector.extract_strided_slice %477 {offsets = [7, 0], sizes = [1, 1], strides = [1, 1]} : vector<16x1xf32> to vector<1x1xf32>
    %542 = vector.broadcast %541 : vector<1x1xf32> to vector<8x1xf32>
    %543 = arith.mulf %540, %542 : vector<8x1xf32>
    %544 = vector.extract_strided_slice %476 {offsets = [7, 0], sizes = [1, 256], strides = [1, 1]} : vector<16x256xf32> to vector<1x256xf32>
    %545 = vector.broadcast %543 : vector<8x1xf32> to vector<8x256xf32>
    %546 = vector.broadcast %544 : vector<1x256xf32> to vector<8x256xf32>
    %547 = arith.mulf %545, %546 : vector<8x256xf32>
    %548 = arith.addf %539, %547 : vector<8x256xf32>
    %549 = vector.extract_strided_slice %4 {offsets = [0, 8], sizes = [8, 1], strides = [1, 1]} : vector<8x16xf32> to vector<8x1xf32>
    %550 = vector.extract_strided_slice %477 {offsets = [8, 0], sizes = [1, 1], strides = [1, 1]} : vector<16x1xf32> to vector<1x1xf32>
    %551 = vector.broadcast %550 : vector<1x1xf32> to vector<8x1xf32>
    %552 = arith.mulf %549, %551 : vector<8x1xf32>
    %553 = vector.extract_strided_slice %476 {offsets = [8, 0], sizes = [1, 256], strides = [1, 1]} : vector<16x256xf32> to vector<1x256xf32>
    %554 = vector.broadcast %552 : vector<8x1xf32> to vector<8x256xf32>
    %555 = vector.broadcast %553 : vector<1x256xf32> to vector<8x256xf32>
    %556 = arith.mulf %554, %555 : vector<8x256xf32>
    %557 = arith.addf %548, %556 : vector<8x256xf32>
    %558 = vector.extract_strided_slice %4 {offsets = [0, 9], sizes = [8, 1], strides = [1, 1]} : vector<8x16xf32> to vector<8x1xf32>
    %559 = vector.extract_strided_slice %477 {offsets = [9, 0], sizes = [1, 1], strides = [1, 1]} : vector<16x1xf32> to vector<1x1xf32>
    %560 = vector.broadcast %559 : vector<1x1xf32> to vector<8x1xf32>
    %561 = arith.mulf %558, %560 : vector<8x1xf32>
    %562 = vector.extract_strided_slice %476 {offsets = [9, 0], sizes = [1, 256], strides = [1, 1]} : vector<16x256xf32> to vector<1x256xf32>
    %563 = vector.broadcast %561 : vector<8x1xf32> to vector<8x256xf32>
    %564 = vector.broadcast %562 : vector<1x256xf32> to vector<8x256xf32>
    %565 = arith.mulf %563, %564 : vector<8x256xf32>
    %566 = arith.addf %557, %565 : vector<8x256xf32>
    %567 = vector.extract_strided_slice %4 {offsets = [0, 10], sizes = [8, 1], strides = [1, 1]} : vector<8x16xf32> to vector<8x1xf32>
    %568 = vector.extract_strided_slice %477 {offsets = [10, 0], sizes = [1, 1], strides = [1, 1]} : vector<16x1xf32> to vector<1x1xf32>
    %569 = vector.broadcast %568 : vector<1x1xf32> to vector<8x1xf32>
    %570 = arith.mulf %567, %569 : vector<8x1xf32>
    %571 = vector.extract_strided_slice %476 {offsets = [10, 0], sizes = [1, 256], strides = [1, 1]} : vector<16x256xf32> to vector<1x256xf32>
    %572 = vector.broadcast %570 : vector<8x1xf32> to vector<8x256xf32>
    %573 = vector.broadcast %571 : vector<1x256xf32> to vector<8x256xf32>
    %574 = arith.mulf %572, %573 : vector<8x256xf32>
    %575 = arith.addf %566, %574 : vector<8x256xf32>
    %576 = vector.extract_strided_slice %4 {offsets = [0, 11], sizes = [8, 1], strides = [1, 1]} : vector<8x16xf32> to vector<8x1xf32>
    %577 = vector.extract_strided_slice %477 {offsets = [11, 0], sizes = [1, 1], strides = [1, 1]} : vector<16x1xf32> to vector<1x1xf32>
    %578 = vector.broadcast %577 : vector<1x1xf32> to vector<8x1xf32>
    %579 = arith.mulf %576, %578 : vector<8x1xf32>
    %580 = vector.extract_strided_slice %476 {offsets = [11, 0], sizes = [1, 256], strides = [1, 1]} : vector<16x256xf32> to vector<1x256xf32>
    %581 = vector.broadcast %579 : vector<8x1xf32> to vector<8x256xf32>
    %582 = vector.broadcast %580 : vector<1x256xf32> to vector<8x256xf32>
    %583 = arith.mulf %581, %582 : vector<8x256xf32>
    %584 = arith.addf %575, %583 : vector<8x256xf32>
    %585 = vector.extract_strided_slice %4 {offsets = [0, 12], sizes = [8, 1], strides = [1, 1]} : vector<8x16xf32> to vector<8x1xf32>
    %586 = vector.extract_strided_slice %477 {offsets = [12, 0], sizes = [1, 1], strides = [1, 1]} : vector<16x1xf32> to vector<1x1xf32>
    %587 = vector.broadcast %586 : vector<1x1xf32> to vector<8x1xf32>
    %588 = arith.mulf %585, %587 : vector<8x1xf32>
    %589 = vector.extract_strided_slice %476 {offsets = [12, 0], sizes = [1, 256], strides = [1, 1]} : vector<16x256xf32> to vector<1x256xf32>
    %590 = vector.broadcast %588 : vector<8x1xf32> to vector<8x256xf32>
    %591 = vector.broadcast %589 : vector<1x256xf32> to vector<8x256xf32>
    %592 = arith.mulf %590, %591 : vector<8x256xf32>
    %593 = arith.addf %584, %592 : vector<8x256xf32>
    %594 = vector.extract_strided_slice %4 {offsets = [0, 13], sizes = [8, 1], strides = [1, 1]} : vector<8x16xf32> to vector<8x1xf32>
    %595 = vector.extract_strided_slice %477 {offsets = [13, 0], sizes = [1, 1], strides = [1, 1]} : vector<16x1xf32> to vector<1x1xf32>
    %596 = vector.broadcast %595 : vector<1x1xf32> to vector<8x1xf32>
    %597 = arith.mulf %594, %596 : vector<8x1xf32>
    %598 = vector.extract_strided_slice %476 {offsets = [13, 0], sizes = [1, 256], strides = [1, 1]} : vector<16x256xf32> to vector<1x256xf32>
    %599 = vector.broadcast %597 : vector<8x1xf32> to vector<8x256xf32>
    %600 = vector.broadcast %598 : vector<1x256xf32> to vector<8x256xf32>
    %601 = arith.mulf %599, %600 : vector<8x256xf32>
    %602 = arith.addf %593, %601 : vector<8x256xf32>
    %603 = vector.extract_strided_slice %4 {offsets = [0, 14], sizes = [8, 1], strides = [1, 1]} : vector<8x16xf32> to vector<8x1xf32>
    %604 = vector.extract_strided_slice %477 {offsets = [14, 0], sizes = [1, 1], strides = [1, 1]} : vector<16x1xf32> to vector<1x1xf32>
    %605 = vector.broadcast %604 : vector<1x1xf32> to vector<8x1xf32>
    %606 = arith.mulf %603, %605 : vector<8x1xf32>
    %607 = vector.extract_strided_slice %476 {offsets = [14, 0], sizes = [1, 256], strides = [1, 1]} : vector<16x256xf32> to vector<1x256xf32>
    %608 = vector.broadcast %606 : vector<8x1xf32> to vector<8x256xf32>
    %609 = vector.broadcast %607 : vector<1x256xf32> to vector<8x256xf32>
    %610 = arith.mulf %608, %609 : vector<8x256xf32>
    %611 = arith.addf %602, %610 : vector<8x256xf32>
    %612 = vector.extract_strided_slice %4 {offsets = [0, 15], sizes = [8, 1], strides = [1, 1]} : vector<8x16xf32> to vector<8x1xf32>
    %613 = vector.extract_strided_slice %477 {offsets = [15, 0], sizes = [1, 1], strides = [1, 1]} : vector<16x1xf32> to vector<1x1xf32>
    %614 = vector.broadcast %613 : vector<1x1xf32> to vector<8x1xf32>
    %615 = arith.mulf %612, %614 : vector<8x1xf32>
    %616 = vector.extract_strided_slice %476 {offsets = [15, 0], sizes = [1, 256], strides = [1, 1]} : vector<16x256xf32> to vector<1x256xf32>
    %617 = vector.broadcast %615 : vector<8x1xf32> to vector<8x256xf32>
    %618 = vector.broadcast %616 : vector<1x256xf32> to vector<8x256xf32>
    %619 = arith.mulf %617, %618 : vector<8x256xf32>
    %620 = arith.addf %611, %619 : vector<8x256xf32>
    %621 = arith.mulf %620, %620 : vector<8x256xf32>
    %622 = tpu.concatenate %620, %621 in 0 : vector<8x256xf32>, vector<8x256xf32> -> vector<16x256xf32>
    %cst_32 = arith.constant dense<0.000000e+00> : vector<16xf32>
    %623 = vector.multi_reduction <add>, %622, %cst_32 [1] : vector<16x256xf32> to vector<16xf32>
    %624 = vector.shape_cast %623 : vector<16xf32> to vector<16x1xf32>
    %625 = arith.addf %475, %624 : vector<16x1xf32>
    %626 = vector.extract_strided_slice %625 {offsets = [0, 0], sizes = [8, 1], strides = [1, 1]} : vector<16x1xf32> to vector<8x1xf32>
    %cst_33 = arith.constant 0.001953125 : f32
    %627 = vector.broadcast %cst_33 : f32 to vector<8x1xf32>
    %628 = arith.mulf %626, %627 : vector<8x1xf32>
    %629 = vector.extract_strided_slice %625 {offsets = [8, 0], sizes = [8, 1], strides = [1, 1]} : vector<16x1xf32> to vector<8x1xf32>
    %cst_34 = arith.constant 0.001953125 : f32
    %630 = vector.broadcast %cst_34 : f32 to vector<8x1xf32>
    %631 = arith.mulf %629, %630 : vector<8x1xf32>
    %632 = arith.mulf %628, %628 : vector<8x1xf32>
    %633 = arith.subf %631, %632 : vector<8x1xf32>
    %cst_35 = arith.constant 0.000000e+00 : f32
    %634 = vector.broadcast %cst_35 : f32 to vector<8x1xf32>
    %635 = arith.maximumf %633, %634 : vector<8x1xf32>
    %636 = vector.extract_strided_slice %6 {offsets = [0, 0], sizes = [8, 1], strides = [1, 1]} : vector<8x2xf32> to vector<8x1xf32>
    %cst_36 = arith.constant 9.99999974E-6 : f32
    %637 = vector.broadcast %cst_36 : f32 to vector<8x1xf32>
    %638 = arith.addf %635, %637 : vector<8x1xf32>
    %639 = math.rsqrt %638 : vector<8x1xf32>
    %640 = arith.mulf %636, %639 : vector<8x1xf32>
    %641 = vector.extract_strided_slice %6 {offsets = [0, 1], sizes = [8, 1], strides = [1, 1]} : vector<8x2xf32> to vector<8x1xf32>
    %642 = arith.mulf %628, %640 : vector<8x1xf32>
    %643 = arith.subf %641, %642 : vector<8x1xf32>
    %644 = vector.broadcast %640 : vector<8x1xf32> to vector<8x256xf32>
    %645 = arith.mulf %470, %644 : vector<8x256xf32>
    %646 = vector.broadcast %643 : vector<8x1xf32> to vector<8x256xf32>
    %647 = arith.addf %645, %646 : vector<8x256xf32>
    %cst_37 = arith.constant 0.000000e+00 : f32
    %648 = vector.broadcast %cst_37 : f32 to vector<8x256xf32>
    %649 = arith.maximumf %647, %648 : vector<8x256xf32>
    %c0_38 = arith.constant 0 : index
    %c0_39 = arith.constant 0 : index
    %650 = vector.load %arg0[%c0_38, %c0_39] : memref<8x512xf32, #tpu.memory_space<vmem>>, vector<8x256xf32>
    %c0_40 = arith.constant 0 : index
    %651 = memref.load %arg3[%c0_40] : memref<2xf32, #tpu.memory_space<smem>>
    %652 = vector.broadcast %651 : f32 to vector<8x256xf32>
    %653 = arith.mulf %649, %652 : vector<8x256xf32>
    %654 = arith.addf %650, %653 : vector<8x256xf32>
    %c0_41 = arith.constant 0 : index
    %c0_42 = arith.constant 0 : index
    %655 = vector.load %arg4[%c0_41, %c0_42] : memref<8x512xf32, #tpu.memory_space<vmem>>, vector<8x256xf32>
    tpu.vector_store %arg4[%c0_41, %c0_42], %654 {strides = array<i32>} : memref<8x512xf32, #tpu.memory_space<vmem>>, vector<8x256xf32>,
    %656 = vector.broadcast %640 : vector<8x1xf32> to vector<8x256xf32>
    %657 = arith.mulf %620, %656 : vector<8x256xf32>
    %658 = vector.broadcast %643 : vector<8x1xf32> to vector<8x256xf32>
    %659 = arith.addf %657, %658 : vector<8x256xf32>
    %cst_43 = arith.constant 0.000000e+00 : f32
    %660 = vector.broadcast %cst_43 : f32 to vector<8x256xf32>
    %661 = arith.maximumf %659, %660 : vector<8x256xf32>
    %c0_44 = arith.constant 0 : index
    %c256 = arith.constant 256 : index
    %662 = vector.load %arg0[%c0_44, %c256] : memref<8x512xf32, #tpu.memory_space<vmem>>, vector<8x256xf32>
    %c1 = arith.constant 1 : index
    %663 = memref.load %arg3[%c1] : memref<2xf32, #tpu.memory_space<smem>>
    %664 = vector.broadcast %663 : f32 to vector<8x256xf32>
    %665 = arith.mulf %661, %664 : vector<8x256xf32>
    %666 = arith.addf %662, %665 : vector<8x256xf32>
    %c0_45 = arith.constant 0 : index
    %c256_46 = arith.constant 256 : index
    %667 = vector.load %arg4[%c0_45, %c256_46] : memref<8x512xf32, #tpu.memory_space<vmem>>, vector<8x256xf32>
    tpu.vector_store %arg4[%c0_45, %c256_46], %666 {strides = array<i32>} : memref<8x512xf32, #tpu.memory_space<vmem>>, vector<8x256xf32>,
    return
  }
}

</mosaic_0001>

<bundles_post_ra>
// kernel: tpu_custom_call.1
= control target key start
LH: loop header
LB: loop body
LE: loop exit
PB: predicated region body
PF: predicated region fallthrough
CT: control target
= control target key end

     0   :  { %9 = vsyncpa [#allocation4], 0  ;;  %s3593_s0 = inlined_call_operand.vmem [shape: f32[8,512], index: 0, kind: input, shape index: {}]   ;;  %s3594_s1 = inlined_call_operand.vmem [shape: f32[88,16], index: 1, kind: input, shape index: {}]   ;;  %s3595_s2 = inlined_call_operand.vmem [shape: f32[8,512], index: 2, kind: input, shape index: {}]   ;;  %s3596_s3 = inlined_call_operand.vmem [shape: f32[2], index: 3, kind: input, shape index: {}]   ;;  %s3597_s4 = inlined_call_operand.hbm [shape: f32[8,512], index: 4, kind: output, shape index: {}]  }
   0x1   :  { %10 = vsyncpa [#allocation3], 0  ;;  %s22_s17 = sshll.u32 %s3596_s3, 4  ;;  %s2092_s18 = smov [#allocation2]   ;;  %s23_s17 = int_to_ptr.vmem [resolvable:$true] %s22_s17 }
   0x2   :  { %25 = dma.vmem_to_smem %s23_s17, 16, %s2092_s18, [#allocation4]  }
   0x3   :  { %2088 = dma.done.wait [#allocation4], 16  }
   0x4   :  { %2089 = vsyncadd [#allocation4], 4294967280 }
   0x5   :  { %30 = sfence }
   0x6   :  { %v31_v0 = vld [vmem:[%s3594_s1] sm:$0xff]  ;;  %v3608_v1 = vmov 1   ;;  %v3610_v2 = vmov 0   ;;  %v3606_v3 = vmov 2   ;;  %v32_v4 = vld [vmem:[%s3594_s1 + $0x8] sm:$0xff]  ;;  %v3600_v5 = vmov 3  }
   0x7   :  { %1933 = vset.pattern.permute.xlu1 %v3608_v1  ;;  %1932 = vset.pattern.permute.xlu0 %v3610_v2  ;;  %v3598_v6 = vmov 5   ;;  %v3604_v7 = vmov 4   ;;  %v2174_v8 = vld [vmem:[%s3594_s1 + $0x18] sm:$0xff]  ;;  %v3602_v9 = vmov 6   ;;  %v3612_v10 = vmov 7   ;;  %v2190_v11 = vld [vmem:[%s3594_s1 + $0x10] sm:$0xff] }
   0x8   :  { %69 = vperm.xlu1 %1933, %v31_v0   ;;  %48 = vperm.xlu0 %1932, %v31_v0   ;;  %v2228_v20 = vld [vmem:[%s3593_s0] sm:$0xff]  ;;  %v2233_v21 = vld [vmem:[%s3593_s0 + $0x8] sm:$0xff]  ;;  %v2238_v22 = vld [vmem:[%s3593_s0 + $0x10] sm:$0xff]  ;;  %s2102_s12 = smov 1   ;;  %s2103_s13 = smov 17  }
   0x9   :  { %1934 = vset.pattern.permute.xlu2 %v3606_v3  ;;  %v2243_v23 = vld [vmem:[%s3593_s0 + $0x18] sm:$0xff]  ;;  %v104_v24 = vperm.slane %v2228_v20, 2  ;;  %v105_v25 = vperm.slane %v2233_v21, 2  ;;  %v106_v26 = vperm.slane %v2238_v22, 2  ;;  %v76_v28 = vperm.slane %v2228_v20, 1  ;;  %s2104_s14 = smov 16  }
   0xa   :  { %97 = vperm.xlu2 %1934, %v31_v0   ;;  %v107_v27 = vperm.slane %v2243_v23, 2  ;;  %v77_v29 = vperm.slane %v2233_v21, 1  ;;  %v78_v30 = vperm.slane %v2238_v22, 1  ;;  %v79_v31 = vperm.slane %v2243_v23, 1  ;;  %s2105_s15 = smov 15   ;;  %s2106_s16 = smov 127  }
   0xb   :  { %v56_v32 = vperm.slane %v2228_v20, 0  ;;  %v57_v33 = vperm.slane %v2233_v21, 0  ;;  %v58_v34 = vperm.slane %v2238_v22, 0  ;;  %v59_v35 = vperm.slane %v2243_v23, 0  ;;  %s2107_s17 = smov 113   ;;  %s2108_s18 = smov 112  }
   0xc   :  { %v160_v36 = vperm.slane %v2228_v20, 4  ;;  %v161_v37 = vperm.slane %v2233_v21, 4  ;;  %v162_v47 = vperm.slane %v2238_v22, 4  ;;  %v163_v48 = vperm.slane %v2243_v23, 4  ;;  %s2109_s19 = smov 111   ;;  %s2122_s20 = smov 7  }
   0xd   :  { %v188_v49 = vperm.slane %v2228_v20, 5  ;;  %v3622_v50 = vperm.slane %v2233_v21, 5  ;;  %v3617_v53 = vperm.slane %v2228_v20, 3  ;;  %v3616_v54 = vperm.slane %v2233_v21, 3  ;;  %s2124_s3 = smov 8   ;;  %s2125_s21 = smov 12  }
   0xe   :  { %v3615_v55 = vperm.slane %v2238_v22, 3  ;;  %v3614_v56 = vperm.slane %v2243_v23, 3  ;;  %s2126_s22 = smov 10   ;;  %s2127_s23 = smov 11  }
   0xf   :  { %s2128_s24 = smov 13   ;;  %s1848_s28 = sld [smem:[#allocation2]] }
  0x10   :  { %73 = vperm.xlu1 %1933, %v32_v4   ;;  %53 = vperm.xlu0 %1932, %v32_v4   ;;  %s1892_s29 = sld [smem:[#allocation2 + $0x1]]  ;;  %s2130_s10 = smov [#allocation5]  }
  0x11   :  { %s1877_s11 = sshll.u32 %s2130_s10, 4  ;;  %s1878_s11 = int_to_ptr.vmem [resolvable:$true] %s1877_s11 }
  0x12   :  { %101 = vperm.xlu2 %1934, %v32_v4  }
  0x18   :  { %1935 = vset.pattern.permute.xlu1 %v3600_v5  ;;  %1939 = vset.pattern.permute.xlu0 %v3598_v6 }
  0x19   :  { %129 = vperm.xlu1 %1935, %v32_v4   ;;  %185 = vperm.xlu0 %1939, %v32_v4  }
  0x1a   :  { %1936 = vset.pattern.permute.xlu2 %v3604_v7 }
  0x1b   :  { %153 = vperm.xlu2 %1936, %v31_v0  }
  0x21   :  { %1937 = vset.pattern.permute.xlu1 %v3604_v7  ;;  %1945 = vset.pattern.permute.xlu0 %v3604_v7 }
  0x22   :  { %157 = vperm.xlu1 %1937, %v32_v4   ;;  %393 = vperm.xlu0 %1945, %v2174_v8  }
  0x23   :  { %1938 = vset.pattern.permute.xlu2 %v3598_v6 }
  0x24   :  { %181 = vperm.xlu2 %1938, %v31_v0  }
  0x2a   :  { %1949 = vset.pattern.permute.xlu0 %v3608_v1  ;;  %1940 = vset.pattern.permute.xlu1 %v3602_v9 }
  0x2b   :  { %509 = vperm.xlu0 %1949, %v2174_v8   ;;  %209 = vperm.xlu1 %1940, %v31_v0  }
  0x2c   :  { %1941 = vset.pattern.permute.xlu2 %v3602_v9 }
  0x2d   :  { %213 = vperm.xlu2 %1941, %v32_v4  }
  0x33   :  { %1950 = vset.pattern.permute.xlu0 %v3600_v5  ;;  %1942 = vset.pattern.permute.xlu1 %v3612_v10 }
  0x34   :  { %125 = vperm.xlu0 %1950, %v31_v0   ;;  %237 = vperm.xlu1 %1942, %v31_v0  }
  0x35   :  { %1943 = vset.pattern.permute.xlu2 %v3612_v10 }
  0x36   :  { %241 = vperm.xlu2 %1943, %v32_v4   ;;  %v3621_v4 = vperm.slane %v2238_v22, 5 }
  0x3c   :  { %631 = vperm.xlu0 %1950, %v2174_v8   ;;  %1944 = vset.pattern.permute.xlu1 %v3604_v7 }
  0x3d   :  { %388 = vperm.xlu1 %1944, %v2190_v11  }
  0x3e   :  { %1946 = vset.pattern.permute.xlu2 %v3610_v2 }
  0x3f   :  { %444 = vperm.xlu2 %1946, %v2190_v11  }
  0x44   :  { %1957 = vset.pattern.permute.xlu0 %v3602_v9 }
  0x45   :  { %1947 = vset.pattern.permute.xlu1 %v3610_v2 }
  0x46   :  { %448 = vperm.xlu1 %1947, %v2174_v8  }
  0x47   :  { %1951 = vset.pattern.permute.xlu2 %v3606_v3 }
  0x48   :  { %566 = vperm.xlu2 %1951, %v2190_v11  }
  0x4e   :  { %1948 = vset.pattern.permute.xlu1 %v3608_v1 }
  0x4f   :  { %505 = vperm.xlu1 %1948, %v2190_v11  }
  0x50   :  { %1954 = vset.pattern.permute.xlu2 %v3598_v6 }
  0x51   :  { %688 = vperm.xlu2 %1954, %v2190_v11  }
  0x57   :  { %1952 = vset.pattern.permute.xlu1 %v3606_v3 }
  0x58   :  { %570 = vperm.xlu1 %1952, %v2174_v8  }
  0x59   :  { %1960 = vset.pattern.permute.xlu2 %v3610_v2  ;;  %v246_v2 = vperm.slane %v2238_v22, 7 }
  0x60   :  { %1953 = vset.pattern.permute.xlu1 %v3600_v5 }
  0x61   :  { %627 = vperm.xlu1 %1953, %v2190_v11  }
  0x64   :  { %v2211_v12 = vpop.permute.xlu2 %97 }
  0x69   :  { %1955 = vset.pattern.permute.xlu1 %v3598_v6  ;;  %v3618_v6 = vperm.slane %v2238_v22, 6 }
  0x6a   :  { %692 = vperm.xlu1 %1955, %v2174_v8  }
  0x6c   :  { %v102_v13 = vpop.permute.xlu2 %101 }
  0x6d   :  { %v112_v57 = vmul.f32 %v104_v24, %v102_v13  ;;  %v113_v58 = vmul.f32 %v105_v25, %v102_v13  ;;  %v114_v59 = vmul.f32 %v106_v26, %v102_v13  ;;  %v115_v60 = vmul.f32 %v107_v27, %v102_v13 }
  0x72   :  { %1956 = vset.pattern.permute.xlu1 %v3602_v9 }
  0x73   :  { %749 = vperm.xlu1 %1956, %v2190_v11  }
  0x75   :  { %v2217_v14 = vpop.permute.xlu2 %153 }
  0x7a   :  { %v2219_v15 = vpop.permute.xlu1 %69  ;;  %v2221_v16 = vpop.permute.xlu0 %48 }
  0x7e   :  { %v2223_v17 = vpop.permute.xlu2 %181 }
  0x82   :  { %v74_v18 = vpop.permute.xlu1 %73  ;;  %v54_v19 = vpop.permute.xlu0 %53 }
  0x83   :  { %v84_v38 = vmul.f32 %v76_v28, %v74_v18  ;;  %v85_v39 = vmul.f32 %v77_v29, %v74_v18  ;;  %v86_v40 = vmul.f32 %v78_v30, %v74_v18  ;;  %v87_v41 = vmul.f32 %v79_v31, %v74_v18 }
  0x84   :  { %v64_v42 = vmul.f32 %v56_v32, %v54_v19  ;;  %v65_v43 = vmul.f32 %v57_v33, %v54_v19  ;;  %v66_v44 = vmul.f32 %v58_v34, %v54_v19  ;;  %v67_v45 = vmul.f32 %v59_v35, %v54_v19 }
  0x85   :  { %v3620_v18 = vperm.slane %v2228_v20, 6  ;;  %v3619_v19 = vperm.slane %v2233_v21, 6 }
  0x86   :  { %v92_v61 = vadd.f32 %v84_v38, %v64_v42  ;;  %v93_v62 = vadd.f32 %v85_v39, %v65_v43  ;;  %v94_v63 = vadd.f32 %v86_v40, %v66_v44  ;;  %v95_v0 = vadd.f32 %v87_v41, %v67_v45 }
  0x87   :  { %v214_v46 = vpop.permute.xlu2 %213  ;;  %v191_v39 = vperm.slane %v2243_v23, 5  ;;  %v219_v40 = vperm.slane %v2243_v23, 6  ;;  %v244_v41 = vperm.slane %v2228_v20, 7  ;;  %v245_v42 = vperm.slane %v2233_v21, 7 }
  0x88   :  { %v120_v43 = vadd.f32 %v112_v57, %v92_v61  ;;  %v121_v44 = vadd.f32 %v113_v58, %v93_v62  ;;  %v122_v45 = vadd.f32 %v114_v59, %v94_v63  ;;  %v123_v7 = vadd.f32 %v115_v60, %v95_v0 }
  0x89   :  { %v224_v3 = vmul.f32 %v3620_v18, %v214_v46  ;;  %v225_v1 = vmul.f32 %v3619_v19, %v214_v46 }
  0x8b   :  { %v130_v51 = vpop.permute.xlu1 %129  ;;  %v186_v52 = vpop.permute.xlu0 %185 }
  0x8c   :  { %v140_v5 = vmul.f32 %v3617_v53, %v130_v51  ;;  %v141_v9 = vmul.f32 %v3616_v54, %v130_v51  ;;  %v142_v13 = vmul.f32 %v3615_v55, %v130_v51  ;;  %v143_v38 = vmul.f32 %v3614_v56, %v130_v51 }
  0x8d   :  { %v226_v51 = vmul.f32 %v3618_v6, %v214_v46  ;;  %v199_v63 = vmul.f32 %v191_v39, %v186_v52  ;;  %v247_v6 = vperm.slane %v2243_v23, 7 }
  0x8e   :  { %v148_v10 = vadd.f32 %v140_v5, %v120_v43  ;;  %v149_v56 = vadd.f32 %v141_v9, %v121_v44  ;;  %v150_v55 = vadd.f32 %v142_v13, %v122_v45  ;;  %v151_v54 = vadd.f32 %v143_v38, %v123_v7 }
  0x8f   :  { %v196_v5 = vmul.f32 %v188_v49, %v186_v52  ;;  %v197_v7 = vmul.f32 %v3622_v50, %v186_v52  ;;  %v198_v9 = vmul.f32 %v3621_v4, %v186_v52 }
  0x90   :  { %v242_v62 = vpop.permute.xlu2 %241 }
  0x91   :  { %v252_v44 = vmul.f32 %v244_v41, %v242_v62  ;;  %v253_v45 = vmul.f32 %v245_v42, %v242_v62 }
  0x94   :  { %v158_v53 = vpop.permute.xlu1 %157  ;;  %v2314_v57 = vpop.permute.xlu0 %393 }
  0x95   :  { %v168_v58 = vmul.f32 %v160_v36, %v158_v53  ;;  %v169_v59 = vmul.f32 %v161_v37, %v158_v53  ;;  %v170_v60 = vmul.f32 %v162_v47, %v158_v53  ;;  %v171_v61 = vmul.f32 %v163_v48, %v158_v53 }
  0x96   :  { %v227_v53 = vmul.f32 %v219_v40, %v214_v46  ;;  %v80_v46 = vmul.f32 %v76_v28, %v2219_v15 }
  0x97   :  { %v176_v0 = vadd.f32 %v168_v58, %v148_v10  ;;  %v177_v13 = vadd.f32 %v169_v59, %v149_v56  ;;  %v178_v38 = vadd.f32 %v170_v60, %v150_v55  ;;  %v179_v43 = vadd.f32 %v171_v61, %v151_v54 }
  0x98   :  { %v254_v10 = vmul.f32 %v246_v2, %v242_v62  ;;  %v81_v56 = vmul.f32 %v77_v29, %v2219_v15  ;;  %v82_v58 = vmul.f32 %v78_v30, %v2219_v15  ;;  %v83_v59 = vmul.f32 %v79_v31, %v2219_v15 }
  0x99   :  { %v204_v19 = vadd.f32 %v196_v5, %v176_v0  ;;  %v205_v18 = vadd.f32 %v197_v7, %v177_v13  ;;  %v206_v4 = vadd.f32 %v198_v9, %v178_v38  ;;  %v207_v50 = vadd.f32 %v199_v63, %v179_v43 }
  0x9a   :  { %v60_v29 = vmul.f32 %v56_v32, %v2221_v16  ;;  %v61_v30 = vmul.f32 %v57_v33, %v2221_v16  ;;  %v62_v15 = vmul.f32 %v58_v34, %v2221_v16  ;;  %v63_v31 = vmul.f32 %v59_v35, %v2221_v16 }
  0x9b   :  { %v232_v52 = vadd.f32 %v224_v3, %v204_v19  ;;  %v233_v54 = vadd.f32 %v225_v1, %v205_v18  ;;  %v234_v55 = vadd.f32 %v226_v51, %v206_v4  ;;  %v235_v1 = vadd.f32 %v227_v53, %v207_v50 }
  0x9c   :  { %v255_v3 = vmul.f32 %v247_v6, %v242_v62  ;;  %v108_v32 = vmul.f32 %v104_v24, %v2211_v12  ;;  %v109_v33 = vmul.f32 %v105_v25, %v2211_v12  ;;  %v110_v34 = vmul.f32 %v106_v26, %v2211_v12 }
  0x9d   :  { %v2353_v60 = vpop.permute.xlu0 %509  ;;  %v2357_v4 = vadd.f32 %v252_v44, %v232_v52  ;;  %v2359_v28 = vadd.f32 %v253_v45, %v233_v54  ;;  %v210_v50 = vpop.permute.xlu1 %209  ;;  %v2373_v18 = vadd.f32 %v254_v10, %v234_v55  ;;  %v111_v16 = vmul.f32 %v107_v27, %v2211_v12 }
  0x9e   :  { %v2389_v35 = vadd.f32 %v255_v3, %v235_v1  ;;  %v88_v61 = vadd.f32 %v80_v46, %v60_v29  ;;  %v89_v62 = vadd.f32 %v81_v56, %v61_v30  ;;  %v90_v5 = vadd.f32 %v82_v58, %v62_v15 }
  0x9f   :  { %v277_v19 = vadd.f32 %v2359_v28, %v2357_v4  ;;  %v91_v24 = vadd.f32 %v83_v59, %v63_v31  ;;  %v164_v25 = vmul.f32 %v160_v36, %v2217_v14  ;;  %v165_v26 = vmul.f32 %v161_v37, %v2217_v14 }
  0xa0   :  { %v166_v12 = vmul.f32 %v162_v47, %v2217_v14  ;;  %v116_v27 = vadd.f32 %v108_v32, %v88_v61  ;;  %v117_v9 = vadd.f32 %v109_v33, %v89_v62  ;;  %v118_v63 = vadd.f32 %v110_v34, %v90_v5 }
  0xa1   :  { %v278_v51 = vadd.f32 %v277_v19, %v2373_v18  ;;  %v119_v0 = vadd.f32 %v111_v16, %v91_v24  ;;  %v3648_v38 = vperm.slane %v2228_v20, 3  ;;  %v3649_v53 = vperm.slane %v2233_v21, 3 }
  0xa2   :  { %v3650_v44 = vperm.slane %v2238_v22, 3  ;;  %v3651_v37 = vperm.slane %v2243_v23, 3  ;;  %v167_v47 = vmul.f32 %v163_v48, %v2217_v14  ;;  %v192_v52 = vmul.f32 %v188_v49, %v2223_v17 }
  0xa3   :  { %v279_v7 = vadd.f32 %v278_v51, %v2389_v35  ;;  %v3652_v54 = vperm.slane %v2233_v21, 5  ;;  %v3653_v46 = vperm.slane %v2238_v22, 5  ;;  %v195_v14 = vmul.f32 %v191_v39, %v2223_v17 }
  0xa4   :  { %v3654_v48 = vperm.slane %v2228_v20, 6  ;;  %v3655_v30 = vperm.slane %v2233_v21, 6  ;;  %v3656_v31 = vperm.slane %v2238_v22, 6  ;;  %v223_v51 = vmul.f32 %v219_v40, %v210_v50 }
  0xa5   :  { %280 = vadd.xlane.f32.xlu1 %v279_v7  ;;  %v193_v55 = vmul.f32 %v3652_v54, %v2223_v17  ;;  %v194_v56 = vmul.f32 %v3653_v46, %v2223_v17  ;;  %v268_v23 = vmul.f32 %v2357_v4, %v2357_v4 }
  0xa6   :  { %v126_v13 = vpop.permute.xlu0 %125  ;;  %v238_v29 = vpop.permute.xlu1 %237  ;;  %v220_v49 = vmul.f32 %v3654_v48, %v210_v50  ;;  %v221_v15 = vmul.f32 %v3655_v30, %v210_v50  ;;  %v222_v19 = vmul.f32 %v3656_v31, %v210_v50  ;;  %v3623_v30 = vmov 8  }
  0xa7   :  { %v136_v43 = vmul.f32 %v3648_v38, %v126_v13  ;;  %v137_v36 = vmul.f32 %v3649_v53, %v126_v13  ;;  %v138_v45 = vmul.f32 %v3650_v44, %v126_v13  ;;  %v139_v10 = vmul.f32 %v3651_v37, %v126_v13  ;;  %1959 = vset.pattern.permute.xlu1 %v3623_v30 }
  0xa8   :  { %v248_v61 = vmul.f32 %v244_v41, %v238_v29  ;;  %v249_v17 = vmul.f32 %v245_v42, %v238_v29  ;;  %v250_v39 = vmul.f32 %v246_v2, %v238_v29  ;;  %v270_v44 = vmul.f32 %v2373_v18, %v2373_v18 }
  0xa9   :  { %v144_v58 = vadd.f32 %v136_v43, %v116_v27  ;;  %v145_v59 = vadd.f32 %v137_v36, %v117_v9  ;;  %v146_v1 = vadd.f32 %v138_v45, %v118_v63  ;;  %v147_v3 = vadd.f32 %v139_v10, %v119_v0 }
  0xaa   :  { %v269_v0 = vmul.f32 %v2359_v28, %v2359_v28  ;;  %v271_v37 = vmul.f32 %v2389_v35, %v2389_v35 }
  0xab   :  { %v172_v32 = vadd.f32 %v164_v25, %v144_v58  ;;  %v173_v33 = vadd.f32 %v165_v26, %v145_v59  ;;  %v174_v34 = vadd.f32 %v166_v12, %v146_v1  ;;  %v175_v16 = vadd.f32 %v167_v47, %v147_v3  ;;  %v2481_v58 = vpop.permute.xlu2 %444 }
  0xac   :  { %v251_v25 = vmul.f32 %v247_v6, %v238_v29  ;;  %v287_v36 = vadd.f32 %v269_v0, %v268_v23  ;;  %v3657_v47 = vmov 7  }
  0xad   :  { %v200_v62 = vadd.f32 %v192_v52, %v172_v32  ;;  %v201_v5 = vadd.f32 %v193_v55, %v173_v33  ;;  %v202_v24 = vadd.f32 %v194_v56, %v174_v34  ;;  %v203_v7 = vadd.f32 %v195_v14, %v175_v16 }
  0xae   :  { %v288_v45 = vadd.f32 %v287_v36, %v270_v44  ;;  %v3658_v52 = vmov 0   ;;  %v2489_v29 = vpop.permute.xlu0 %631 }
  0xaf   :  { %v228_v26 = vadd.f32 %v220_v49, %v200_v62  ;;  %v229_v12 = vadd.f32 %v221_v15, %v201_v5  ;;  %v230_v27 = vadd.f32 %v222_v19, %v202_v24  ;;  %v231_v40 = vadd.f32 %v223_v51, %v203_v7  ;;  %v2473_v54 = vpop.permute.xlu1 %388 }
  0xb0   :  { %v289_v10 = vadd.f32 %v288_v45, %v271_v37  ;;  %v3664_v37 = vmov 2  }
  0xb1   :  { %v2441_v50 = vadd.f32 %v248_v61, %v228_v26  ;;  %v2443_v20 = vadd.f32 %v249_v17, %v229_v12  ;;  %v2445_v21 = vadd.f32 %v250_v39, %v230_v27  ;;  %v2447_v41 = vadd.f32 %v251_v25, %v231_v40 }
  0xb2   :  { %v3663_v17 = vmov 1  }
  0xb3   :  { %v272_v2 = vadd.f32 %v2443_v20, %v2441_v50  ;;  %v264_v22 = vmul.f32 %v2441_v50, %v2441_v50  ;;  %v265_v6 = vmul.f32 %v2443_v20, %v2443_v20  ;;  %v266_v9 = vmul.f32 %v2445_v21, %v2445_v21  ;;  %v2485_v1 = vpop.permute.xlu2 %566 }
  0xb4   :  { %v267_v38 = vmul.f32 %v2447_v41, %v2447_v41 }
  0xb5   :  { %v273_v42 = vadd.f32 %v272_v2, %v2445_v21  ;;  %v282_v63 = vadd.f32 %v265_v6, %v264_v22  ;;  %v39_v6 = vld [vmem:[%s3594_s1 + $0x40] sm:$0xff] }
  0xb7   :  { %v274_v13 = vadd.f32 %v273_v42, %v2447_v41  ;;  %v283_v43 = vadd.f32 %v282_v63, %v266_v9 }
  0xb8   :  { %v2475_v55 = vpop.permute.xlu1 %448 }
  0xb9   :  { %275 = vadd.xlane.f32.xlu0 %v274_v13  ;;  %v284_v53 = vadd.f32 %v283_v43, %v267_v38  ;;  %v40_v38 = vld [vmem:[%s3594_s1 + $0x48] sm:$0xff] }
  0xbb   :  { %285 = vadd.xlane.f32.xlu2 %v284_v53  ;;  %v2491_v14 = vpop.permute.xlu2 %688 }
  0xbc   :  { %3661 = vst [vmem:[#allocation10_spill] sm:$0xff] %v2491_v14 }
  0xbe   :  { %871 = vperm.xlu1 %1959, %v2190_v11  }
  0xc1   :  { %v2477_v46 = vpop.permute.xlu1 %505 }
  0xc3   :  { %290 = vadd.xlane.f32.xlu2 %v289_v10 }
  0xc6   :  { %1962 = vset.pattern.permute.xlu1 %v3663_v17 }
  0xca   :  { %v2479_v56 = vpop.permute.xlu1 %570 }
  0xcd   :  { %753 = vperm.xlu0 %1957, %v2174_v8  }
  0xd3   :  { %v2483_v59 = vpop.permute.xlu1 %627 }
  0xd4   :  { %3659 = vst [vmem:[#allocation8_spill] sm:$0xff] %v2483_v59 }
  0xd5   :  { %1958 = vset.pattern.permute.xlu0 %v3657_v47 }
  0xd6   :  { %810 = vperm.xlu0 %1958, %v2190_v11  }
  0xdc   :  { %v2487_v3 = vpop.permute.xlu1 %692 }
  0xdd   :  { %3660 = vst [vmem:[#allocation9_spill] sm:$0xff] %v2487_v3 }
  0xde   :  { %1961 = vset.pattern.permute.xlu0 %v3658_v52 }
  0xe5   :  { %v2493_v48 = vpop.permute.xlu1 %749 }
  0xe6   :  { %3662 = vst [vmem:[#allocation11_spill] sm:$0xff] %v2493_v48 }
 0x118   :  { %v281_v33 = vpop.xlane.xlu1 %280 }
 0x119   :  { %v293_v16 = vmul.f32 0.001953125, %v281_v33 }
 0x11b   :  { %v297_v62 = vmul.f32 %v293_v16, %v293_v16 }
 0x12c   :  { %v276_v49 = vpop.xlane.xlu0 %275 }
 0x12d   :  { %v292_v15 = vmul.f32 0.001953125, %v276_v49 }
 0x12e   :  { %v286_v31 = vpop.xlane.xlu2 %285 }
 0x12f   :  { %v296_v19 = vmul.f32 %v292_v15, %v292_v15  ;;  %v294_v32 = vmul.f32 0.001953125, %v286_v31 }
 0x130   :  { %v2512_v31 = vpop.permute.xlu1 %871 }
 0x131   :  { %v298_v34 = vsub.f32 %v294_v32, %v296_v19  ;;  %3667 = vst [vmem:[#allocation14_spill] sm:$0xff] %v2512_v31 }
 0x133   :  { %v300_v51 = vmax.f32 %v298_v34, 0.0 }
 0x135   :  { %v302_v61 = vadd.f32 1e-05, %v300_v51 }
 0x136   :  { %v291_v39 = vpop.xlane.xlu2 %290 }
 0x137   :  { %2027 = vrsqrt.f32 %v302_v61  ;;  %v295_v5 = vmul.f32 0.001953125, %v291_v39  ;;  %vm310_vm1 = vweird.f32 %v302_v61 }
 0x139   :  { %v299_v24 = vsub.f32 %v295_v5, %v297_v62 }
 0x13b   :  { %v301_v7 = vmax.f32 %v299_v24, 0.0 }
 0x13d   :  { %v2028_v25 = vpop.eup %2027  ;;  %v303_v26 = vadd.f32 1e-05, %v301_v7 }
 0x13e   :  { %v305_v12 = vmul.f32 %v2028_v25, %v302_v61  ;;  %vm311_vm0 = vweird.f32 %v2028_v25 }
 0x13f   :  { %2029 = vrsqrt.f32 %v303_v26  ;;  %vm312_vm2 = vmor %vm310_vm1, %vm311_vm0  ;;  %vm320_vm4 = vweird.f32 %v303_v26  ;;  %v2508_v10 = vpop.permute.xlu0 %753 }
 0x140   :  { %v306_v11 = vmul.f32 %v2028_v25, %v305_v12  ;;  %3665 = vst [vmem:[#allocation12_spill] sm:$0xff] %v2508_v10 }
 0x142   :  { %v307_v27 = vmul.f32 0.5, %v306_v11 }
 0x144   :  { %v308_v40 = vsub.f32 1.5, %v307_v27 }
 0x145   :  { %v2030_v2 = vpop.eup %2029 }
 0x146   :  { %v315_v22 = vmul.f32 %v2030_v2, %v303_v26  ;;  %v309_v23 = vmul.f32 %v2028_v25, %v308_v40  ;;  %vm321_vm3 = vweird.f32 %v2030_v2 }
 0x147   :  { %vm322_vm5 = vmor %vm320_vm4, %vm321_vm3  ;;  %vm1056_vm4 = vcmask 7168  }
 0x148   :  { %v316_v42 = vmul.f32 %v2030_v2, %v315_v22  ;;  %v313_v9 = vsel %vm312_vm2, %v2028_v25, %v309_v23  ;;  %v2510_v49 = vpop.permute.xlu0 %810 }
 0x149   :  { %v324_v63 = vmul.f32 %v313_v9, %v39_v6  ;;  %3666 = vst [vmem:[#allocation13_spill] sm:$0xff] %v2510_v49 }
 0x14a   :  { %v317_v0 = vmul.f32 0.5, %v316_v42 }
 0x14b   :  { %340 = vperm.xlu2 %1960, %v324_v63   ;;  %v326_v45 = vmul.f32 %v324_v63, %v292_v15 }
 0x14c   :  { %v318_v13 = vsub.f32 1.5, %v317_v0 }
 0x14e   :  { %v319_v43 = vmul.f32 %v2030_v2, %v318_v13 }
 0x150   :  { %v323_v53 = vsel %vm322_vm5, %v2030_v2, %v319_v43 }
 0x151   :  { %v325_v36 = vmul.f32 %v323_v53, %v40_v38 }
 0x153   :  { %345 = vperm.xlu0 %1961, %v325_v36   ;;  %v327_v44 = vmul.f32 %v325_v36, %v293_v16  ;;  %1963 = vset.pattern.permute.xlu2 %v3663_v17 }
 0x155   :  { %332 = vrot.lane.b32.xlu1 %v327_v44, %s2102_s12 }
 0x15b   :  { %330 = vrot.lane.b32.xlu0 %v326_v45, %s2102_s12 }
 0x15c   :  { %1967 = vset.pattern.permute.xlu0 %v3664_v37 }
 0x1a5   :  { %v341_v15 = vpop.permute.xlu2 %340 }
 0x1a6   :  { %v348_v25 = vmul.f32 %v341_v15, %v2441_v50  ;;  %v351_v26 = vmul.f32 %v341_v15, %v2447_v41 }
 0x1c5   :  { %v346_v19 = vpop.permute.xlu0 %345 }
 0x1c6   :  { %v352_v51 = vmul.f32 %v346_v19, %v2357_v4  ;;  %v353_v5 = vmul.f32 %v346_v19, %v2359_v28  ;;  %v350_v4 = vmul.f32 %v341_v15, %v2445_v21  ;;  %v355_v23 = vmul.f32 %v346_v19, %v2389_v35 }
 0x1c7   :  { %v333_v32 = vpop.permute.xlu1 %332  ;;  %v354_v9 = vmul.f32 %v346_v19, %v2373_v18 }
 0x1c8   :  { %v337_v33 = vsub.f32 %v40_v38, %v333_v32  ;;  %v420_v32 = vlaneseq }
 0x1ca   :  { %363 = vperm.xlu2 %1963, %v337_v33  }
 0x1cd   :  { %v331_v34 = vpop.permute.xlu0 %330 }
 0x1ce   :  { %v336_v16 = vsub.f32 %v39_v6, %v331_v34  ;;  %v349_v6 = vmul.f32 %v341_v15, %v2443_v20  ;;  %v2658_v15 = vand.u32 127, %v420_v32 }
 0x1d0   :  { %358 = vperm.xlu1 %1962, %v336_v16   ;;  %vm422_vm6 = vcmp.lt.s32.totalorder %v2658_v15, 17  ;;  %vm483_vm7 = vcmp.lt.s32.totalorder %v2658_v15, 16  ;;  %vm544_vm8 = vcmp.lt.s32.totalorder %v2658_v15, 15  ;;  %vm605_vm9 = vcmp.lt.s32.totalorder %v2658_v15, 1 }
 0x1d1   :  { %vm666_vm10 = vcmp.lt.s32.totalorder %v2658_v15, 127  ;;  %vm727_vm11 = vcmp.lt.s32.totalorder %v2658_v15, 113  ;;  %vm788_vm12 = vcmp.lt.s32.totalorder %v2658_v15, 112  ;;  %vm849_vm13 = vcmp.lt.s32.totalorder %v2658_v15, 111 }
 0x1d2   :  { %1965 = vset.pattern.permute.xlu2 %v3623_v30 }
 0x1d8   :  { %1964 = vset.pattern.permute.xlu1 %v3657_v47 }
 0x224   :  { %v364_v61 = vpop.permute.xlu2 %363 }
 0x225   :  { %v370_v39 = vadd.f32 %v364_v61, %v352_v51  ;;  %v371_v24 = vadd.f32 %v364_v61, %v353_v5  ;;  %v373_v50 = vadd.f32 %v364_v61, %v355_v23  ;;  %v372_v35 = vadd.f32 %v364_v61, %v354_v9  ;;  %v2663_v51 = vld [vmem:[%s3595_s2 + $0x18] sm:$0xff] }
 0x226   :  { %3669 = vst [vmem:[#allocation16_spill] sm:$0xff] %v2663_v51  ;;  %v434_v61 = vperm.slane %v2663_v51, 0 }
 0x227   :  { %v2517_v62 = vmax.f32 %v370_v39, 0.0  ;;  %v2522_v7 = vmax.f32 %v371_v24, 0.0  ;;  %v2543_v41 = vmax.f32 %v373_v50, 0.0  ;;  %v2553_v20 = vmax.f32 %v372_v35, 0.0 }
 0x228   :  { %v495_v50 = vperm.slane %v2663_v51, 1 }
 0x229   :  { %406 = vrot.lane.b32.xlu1 %v2517_v62, %s2103_s13 }
 0x231   :  { %410 = vrot.lane.b32.xlu1 %v2522_v7, %s2103_s13 }
 0x242   :  { %v359_v12 = vpop.permute.xlu1 %358 }
 0x243   :  { %v366_v11 = vadd.f32 %v359_v12, %v348_v25  ;;  %v368_v27 = vadd.f32 %v359_v12, %v350_v4  ;;  %v369_v28 = vadd.f32 %v359_v12, %v351_v26  ;;  %v367_v21 = vadd.f32 %v359_v12, %v349_v6  ;;  %v2685_v4 = vld [vmem:[%s3595_s2 + $0x10] sm:$0xff] }
 0x244   :  { %v3670_v17 = vperm.slane %v2685_v4, 2 }
 0x245   :  { %v2529_v40 = vmax.f32 %v366_v11, 0.0  ;;  %v2531_v2 = vmax.f32 %v368_v27, 0.0  ;;  %v2533_v22 = vmax.f32 %v369_v28, 0.0  ;;  %v2545_v42 = vmax.f32 %v367_v21, 0.0 }
 0x246   :  { %v3625_v11 = vperm.slane %v2685_v4, 0  ;;  %v3627_v27 = vperm.slane %v2685_v4, 1 }
 0x247   :  { %3668 = vst [vmem:[#allocation15_spill] sm:$0xff] %v2529_v40  ;;  %416 = vrot.lane.b32.xlu1 %v2533_v22, %s2103_s13  ;;  %412 = vrot.lane.b32.xlu0 %v2531_v2, %s2103_s13  ;;  %v399_v32 = vmul.f32 %v2473_v54, %v2533_v22 }
 0x248   :  { %404 = vrot.lane.b32.xlu2 %v2529_v40, %s2103_s13 }
 0x24f   :  { %418 = vrot.lane.b32.xlu0 %v2543_v41, %s2103_s13  ;;  %471 = vrot.lane.b32.xlu1 %v2545_v42, %s2104_s14 }
 0x250   :  { %408 = vrot.lane.b32.xlu2 %v2545_v42, %s2103_s13 }
 0x257   :  { %477 = vrot.lane.b32.xlu1 %v2553_v20, %s2104_s14  ;;  %467 = vrot.lane.b32.xlu0 %v2529_v40, %s2104_s14 }
 0x258   :  { %414 = vrot.lane.b32.xlu2 %v2553_v20, %s2103_s13  ;;  %s2117_s13 = smov 3  }
 0x25f   :  { %530 = vrot.lane.b32.xlu1 %v2517_v62, %s2105_s15  ;;  %473 = vrot.lane.b32.xlu0 %v2522_v7, %s2104_s14 }
 0x260   :  { %469 = vrot.lane.b32.xlu2 %v2517_v62, %s2104_s14 }
 0x267   :  { %534 = vrot.lane.b32.xlu1 %v2522_v7, %s2105_s15  ;;  %479 = vrot.lane.b32.xlu0 %v2533_v22, %s2104_s14 }
 0x268   :  { %475 = vrot.lane.b32.xlu2 %v2531_v2, %s2104_s14 }
 0x26f   :  { %540 = vrot.lane.b32.xlu1 %v2533_v22, %s2105_s15  ;;  %536 = vrot.lane.b32.xlu0 %v2531_v2, %s2105_s15 }
 0x270   :  { %481 = vrot.lane.b32.xlu2 %v2543_v41, %s2104_s14  ;;  %s2118_s14 = smov 2  }
 0x277   :  { %593 = vrot.lane.b32.xlu1 %v2545_v42, %s2102_s12  ;;  %542 = vrot.lane.b32.xlu0 %v2543_v41, %s2105_s15 }
 0x278   :  { %528 = vrot.lane.b32.xlu2 %v2529_v40, %s2105_s15 }
 0x27f   :  { %599 = vrot.lane.b32.xlu1 %v2553_v20, %s2102_s12  ;;  %589 = vrot.lane.b32.xlu0 %v2529_v40, %s2102_s12 }
 0x280   :  { %532 = vrot.lane.b32.xlu2 %v2545_v42, %s2105_s15 }
 0x287   :  { %652 = vrot.lane.b32.xlu1 %v2517_v62, %s2106_s16  ;;  %595 = vrot.lane.b32.xlu0 %v2522_v7, %s2102_s12 }
 0x288   :  { %538 = vrot.lane.b32.xlu2 %v2553_v20, %s2105_s15 }
 0x28f   :  { %656 = vrot.lane.b32.xlu1 %v2522_v7, %s2106_s16  ;;  %601 = vrot.lane.b32.xlu0 %v2533_v22, %s2102_s12 }
 0x290   :  { %591 = vrot.lane.b32.xlu2 %v2517_v62, %s2102_s12 }
 0x297   :  { %662 = vrot.lane.b32.xlu1 %v2533_v22, %s2106_s16  ;;  %658 = vrot.lane.b32.xlu0 %v2531_v2, %s2106_s16 }
 0x298   :  { %597 = vrot.lane.b32.xlu2 %v2531_v2, %s2102_s12 }
 0x29b   :  { %v2610_v63 = vpop.permute.xlu1 %406 }
 0x29f   :  { %715 = vrot.lane.b32.xlu1 %v2545_v42, %s2107_s17  ;;  %664 = vrot.lane.b32.xlu0 %v2543_v41, %s2106_s16 }
 0x2a0   :  { %603 = vrot.lane.b32.xlu2 %v2543_v41, %s2102_s12 }
 0x2a2   :  { %v2608_v18 = vpop.permute.xlu2 %404 }
 0x2a3   :  { %v2626_v13 = vpop.permute.xlu1 %410 }
 0x2a7   :  { %721 = vrot.lane.b32.xlu1 %v2553_v20, %s2107_s17  ;;  %711 = vrot.lane.b32.xlu0 %v2529_v40, %s2107_s17 }
 0x2a8   :  { %650 = vrot.lane.b32.xlu2 %v2529_v40, %s2106_s16 }
 0x2aa   :  { %v2618_v0 = vpop.permute.xlu2 %408 }
 0x2af   :  { %776 = vrot.lane.b32.xlu1 %v2545_v42, %s2108_s18  ;;  %717 = vrot.lane.b32.xlu0 %v2522_v7, %s2107_s17 }
 0x2b0   :  { %654 = vrot.lane.b32.xlu2 %v2545_v42, %s2106_s16 }
 0x2b2   :  { %v2628_v38 = vpop.permute.xlu2 %414 }
 0x2b7   :  { %784 = vrot.lane.b32.xlu1 %v2533_v22, %s2108_s18  ;;  %723 = vrot.lane.b32.xlu0 %v2533_v22, %s2107_s17 }
 0x2b8   :  { %660 = vrot.lane.b32.xlu2 %v2553_v20, %s2106_s16 }
 0x2b9   :  { %v413_v43 = vpop.permute.xlu0 %412  ;;  %v2636_v53 = vpop.permute.xlu1 %416 }
 0x2ba   :  { %v2638_v36 = vpop.permute.xlu2 %469  ;;  %v423_v24 = vsel %vm422_vm6, %v413_v43, %v2636_v53  ;;  %v425_v12 = vsel %vm422_vm6, %v2618_v0, %v413_v43 }
 0x2bb   :  { %v438_v26 = vmul.f32 %v434_v61, %v423_v24  ;;  %v437_v28 = vmul.f32 %v3625_v11, %v425_v12 }
 0x2bd   :  { %v454_v6 = vmul.f32 %v2481_v58, %v438_v26  ;;  %v453_v12 = vmul.f32 %v2481_v58, %v437_v28 }
 0x2bf   :  { %841 = vrot.lane.b32.xlu1 %v2531_v2, %s2109_s19  ;;  %833 = vrot.lane.b32.xlu0 %v2529_v40, %s2109_s19  ;;  %v462_v30 = vadd.f32 %v454_v6, %v399_v32 }
 0x2c0   :  { %713 = vrot.lane.b32.xlu2 %v2517_v62, %s2107_s17 }
 0x2c1   :  { %v419_v44 = vpop.permute.xlu0 %418  ;;  %v2646_v45 = vpop.permute.xlu1 %471 }
 0x2c2   :  { %v476_v19 = vpop.permute.xlu2 %475  ;;  %v424_v28 = vsel %vm422_vm6, %v2628_v38, %v419_v44  ;;  %v430_v6 = vsel %vm422_vm6, %v419_v44, %v2610_v63 }
 0x2c3   :  { %v486_v23 = vsel %vm483_vm7, %v2646_v45, %v476_v19  ;;  %v442_v32 = vmul.f32 %v434_v61, %v424_v28 }
 0x2c4   :  { %v498_v26 = vmul.f32 %v3627_v27, %v486_v23 }
 0x2c6   :  { %v514_v23 = vmul.f32 %v2477_v46, %v498_v26 }
 0x2c7   :  { %778 = vrot.lane.b32.xlu1 %v2522_v7, %s2108_s18  ;;  %782 = vrot.lane.b32.xlu0 %v2553_v20, %s2108_s18 }
 0x2c8   :  { %719 = vrot.lane.b32.xlu2 %v2531_v2, %s2107_s17 }
 0x2c9   :  { %v2654_v33 = vpop.permute.xlu0 %467  ;;  %v2656_v34 = vpop.permute.xlu1 %477 }
 0x2ca   :  { %v482_v16 = vpop.permute.xlu2 %481 }
 0x2cb   :  { %v491_v47 = vsel %vm483_vm7, %v482_v16, %v2638_v36  ;;  %v485_v44 = vsel %vm483_vm7, %v2656_v34, %v482_v16 }
 0x2cc   :  { %v503_v48 = vmul.f32 %v495_v50, %v485_v44  ;;  %v428_v44 = vsel %vm422_vm6, %v2610_v63, %v2626_v13  ;;  %v3672_v63 = vperm.slane %v2685_v4, 0 }
 0x2cf   :  { %835 = vrot.lane.b32.xlu1 %v2517_v62, %s2109_s19  ;;  %839 = vrot.lane.b32.xlu0 %v2522_v7, %s2109_s19 }
 0x2d0   :  { %725 = vrot.lane.b32.xlu2 %v2543_v41, %s2107_s17  ;;  %s2119_s17 = smov 6  }
 0x2d1   :  { %v2673_v39 = vpop.permute.xlu0 %473  ;;  %v2675_v5 = vpop.permute.xlu1 %530 }
 0x2d2   :  { %v2680_v25 = vpop.permute.xlu2 %528 }
 0x2d7   :  { %814 = vperm.xlu1 %1964, %v2174_v8   ;;  %847 = vrot.lane.b32.xlu0 %v2543_v41, %s2109_s19 }
 0x2d8   :  { %772 = vrot.lane.b32.xlu2 %v2529_v40, %s2108_s18 }
 0x2d9   :  { %v480_v8 = vpop.permute.xlu0 %479  ;;  %v2705_v21 = vpop.permute.xlu1 %534 }
 0x2da   :  { %v484_v9 = vsel %vm483_vm7, %v476_v19, %v480_v8  ;;  %v2712_v35 = vsel %vm483_vm7, %v480_v8, %v2654_v33  ;;  %v2714_v43 = vpop.permute.xlu2 %532  ;;  %v2725_v19 = vld [vmem:[%s3595_s2] sm:$0xff]  ;;  %v398_v8 = vmul.f32 %v2473_v54, %v2531_v2 }
 0x2db   :  { %v499_v24 = vmul.f32 %v495_v50, %v484_v9  ;;  %v556_v9 = vperm.slane %v2663_v51, 2  ;;  %v3671_v16 = vperm.slane %v2725_v19, 1 }
 0x2dd   :  { %v515_v11 = vmul.f32 %v2477_v46, %v499_v24  ;;  %v500_v49 = vmul.f32 %v3671_v16, %v491_v47  ;;  %v2779_v47 = vld [vmem:[%s3595_s2 + $0x8] sm:$0xff]  ;;  %s2129_s2 = smov 14  }
 0x2df   :  { %v523_v52 = vadd.f32 %v515_v11, %v462_v30  ;;  %1966 = vset.pattern.permute.xlu1 %v3664_v37  ;;  %v461_v30 = vadd.f32 %v453_v12, %v398_v8  ;;  %v431_v11 = vperm.slane %v2725_v19, 0 }
 0x2e0   :  { %780 = vrot.lane.b32.xlu2 %v2531_v2, %s2108_s18 }
 0x2e1   :  { %v537_v24 = vpop.permute.xlu0 %536  ;;  %v2744_v27 = vpop.permute.xlu1 %540  ;;  %v439_v8 = vmul.f32 %v431_v11, %v430_v6  ;;  %v522_v31 = vadd.f32 %v514_v23, %v461_v30 }
 0x2e2   :  { %v547_v2 = vsel %vm544_vm8, %v2714_v43, %v537_v24  ;;  %v539_v26 = vpop.permute.xlu2 %538  ;;  %v545_v12 = vsel %vm544_vm8, %v537_v24, %v2744_v27  ;;  %v458_v24 = vmul.f32 %v2475_v55, %v442_v32  ;;  %v432_v32 = vperm.slane %v2779_v47, 0 }
 0x2e3   :  { %v559_v10 = vmul.f32 %v3670_v17, %v547_v2  ;;  %v560_v3 = vmul.f32 %v556_v9, %v545_v12  ;;  %v455_v51 = vmul.f32 %v2475_v55, %v439_v8  ;;  %v400_v17 = vmul.f32 %v2314_v57, %v2517_v62 }
 0x2e4   :  { %v426_v2 = vsel %vm422_vm6, %v2626_v13, %v2628_v38  ;;  %v487_v13 = vsel %vm483_vm7, %v2673_v39, %v2656_v34  ;;  %v489_v38 = vsel %vm483_vm7, %v2638_v36, %v2673_v39  ;;  %v548_v34 = vsel %vm544_vm8, %v2705_v21, %v539_v26 }
 0x2e5   :  { %v575_v14 = vmul.f32 %v2485_v1, %v559_v10  ;;  %v576_v59 = vmul.f32 %v2485_v1, %v560_v3  ;;  %v403_v3 = vmul.f32 %v2314_v57, %v2543_v41  ;;  %v516_v10 = vmul.f32 %v2353_v60, %v500_v49 }
 0x2e6   :  { %v463_v23 = vadd.f32 %v455_v51, %v400_v17  ;;  %v440_v17 = vmul.f32 %v432_v32, %v428_v44  ;;  %v3673_v39 = vperm.slane %v2685_v4, 1  ;;  %v402_v44 = vmul.f32 %v2314_v57, %v2553_v20 }
 0x2e7   :  { %v2768_v40 = vadd.f32 %v575_v14, %v522_v31  ;;  %v2770_v61 = vadd.f32 %v576_v59, %v523_v52  ;;  %v519_v14 = vmul.f32 %v2353_v60, %v503_v48  ;;  %v553_v52 = vperm.slane %v2725_v19, 2 }
 0x2e8   :  { %837 = vrot.lane.b32.xlu2 %v2545_v42, %s2109_s19  ;;  %v466_v30 = vadd.f32 %v458_v24, %v403_v3  ;;  %v524_v12 = vadd.f32 %v516_v10, %v463_v23  ;;  %v441_v3 = vmul.f32 %v3672_v63, %v426_v2  ;;  %v493_v10 = vperm.slane %v2779_v47, 1 }
 0x2e9   :  { %v543_v59 = vpop.permute.xlu0 %542  ;;  %v2786_v31 = vpop.permute.xlu1 %593  ;;  %v502_v23 = vmul.f32 %v3673_v39, %v487_v13 }
 0x2ea   :  { %v546_v50 = vsel %vm544_vm8, %v539_v26, %v543_v59  ;;  %v552_v28 = vsel %vm544_vm8, %v543_v59, %v2675_v5  ;;  %v2793_v6 = vpop.permute.xlu2 %591  ;;  %v527_v8 = vadd.f32 %v519_v14, %v466_v30  ;;  %v554_v14 = vperm.slane %v2779_v47, 2 }
 0x2eb   :  { %v561_v49 = vmul.f32 %v553_v52, %v552_v28  ;;  %v564_v48 = vmul.f32 %v556_v9, %v546_v50  ;;  %v550_v50 = vsel %vm544_vm8, %v2675_v5, %v2705_v21  ;;  %v456_v30 = vmul.f32 %v2475_v55, %v440_v17 }
 0x2ec   :  { %v562_v5 = vmul.f32 %v554_v14, %v550_v50  ;;  %v401_v26 = vmul.f32 %v2314_v57, %v2522_v7  ;;  %v615_v7 = vperm.slane %v2779_v47, 3  ;;  %v616_v17 = vperm.slane %v2685_v4, 3 }
 0x2ed   :  { %v577_v51 = vmul.f32 %v2479_v56, %v561_v49  ;;  %v580_v16 = vmul.f32 %v2479_v56, %v564_v48  ;;  %v457_v49 = vmul.f32 %v2475_v55, %v441_v3  ;;  %v3674_v48 = vperm.slane %v2685_v4, 2 }
 0x2ee   :  { %v578_v55 = vmul.f32 %v2479_v56, %v562_v5 }
 0x2ef   :  { %v2808_v24 = vadd.f32 %v577_v51, %v524_v12  ;;  %v2810_v9 = vadd.f32 %v580_v16, %v527_v8  ;;  %v563_v21 = vmul.f32 %v3674_v48, %v548_v34  ;;  %v518_v12 = vmul.f32 %v2353_v60, %v502_v23 }
 0x2f0   :  { %845 = vrot.lane.b32.xlu2 %v2533_v22, %s2109_s19  ;;  %v501_v22 = vmul.f32 %v493_v10, %v489_v38  ;;  %v464_v8 = vadd.f32 %v456_v30, %v401_v26  ;;  %v465_v51 = vadd.f32 %v457_v49, %v402_v44 }
 0x2f1   :  { %v2828_v59 = vpop.permute.xlu0 %589  ;;  %v2839_v36 = vpop.permute.xlu1 %599  ;;  %v579_v16 = vmul.f32 %v2479_v56, %v563_v21 }
 0x2f2   :  { %v2837_v28 = vpop.permute.xlu2 %597  ;;  %v517_v2 = vmul.f32 %v2353_v60, %v501_v22  ;;  %v526_v13 = vadd.f32 %v518_v12, %v465_v51  ;;  %v2049_v12 = vld [vmem:[%s3594_s1 + $0x18] sm:$0xff] }
 0x2f4   :  { %v587_v22 = vadd.f32 %v579_v16, %v526_v13 }
 0x2f8   :  { %774 = vrot.lane.b32.xlu2 %v2517_v62, %s2108_s18  ;;  %v525_v62 = vadd.f32 %v517_v2, %v464_v8 }
 0x2f9   :  { %v596_v57 = vpop.permute.xlu0 %595  ;;  %v2874_v50 = vpop.permute.xlu1 %652 }
 0x2fa   :  { %v609_v60 = vsel %vm605_vm9, %v596_v57, %v2839_v36  ;;  %v611_v63 = vsel %vm605_vm9, %v2793_v6, %v596_v57  ;;  %v2870_v3 = vpop.permute.xlu2 %603  ;;  %v586_v34 = vadd.f32 %v578_v55, %v525_v62  ;;  %v488_v62 = vsel %vm483_vm7, %v2654_v33, %v2646_v45 }
 0x2fb   :  { %v623_v38 = vmul.f32 %v615_v7, %v611_v63  ;;  %v624_v56 = vmul.f32 %v616_v17, %v609_v60  ;;  %v427_v60 = vsel %vm422_vm6, %v2608_v18, %v2618_v0  ;;  %v429_v63 = vsel %vm422_vm6, %v2636_v53, %v2608_v18 }
 0x2fc   :  { %v436_v13 = vmul.f32 %v432_v32, %v427_v60  ;;  %v497_v0 = vmul.f32 %v493_v10, %v488_v62  ;;  %v549_v18 = vsel %vm544_vm8, %v2680_v25, %v2714_v43  ;;  %v551_v53 = vsel %vm544_vm8, %v2744_v27, %v2680_v25 }
 0x2fd   :  { %v639_v39 = vmul.f32 %v2489_v29, %v623_v38  ;;  %v640_v23 = vmul.f32 %v2489_v29, %v624_v56  ;;  %v435_v56 = vmul.f32 %v431_v11, %v429_v63  ;;  %v3675_v11 = vperm.slane %v2725_v19, 1  ;;  %v3676_v63 = vld [vmem:[#allocation15_spill] sm:$0xff] }
 0x2fe   :  { %v452_v33 = vmul.f32 %v2481_v58, %v436_v13  ;;  %v610_v10 = vsel %vm605_vm9, %v2828_v59, %v2786_v31  ;;  %v397_v43 = vmul.f32 %v2473_v54, %v2545_v42  ;;  %v558_v25 = vmul.f32 %v554_v14, %v549_v18  ;;  %v3678_v18 = vld [vmem:[#allocation8_spill] sm:$0xff] }
 0x2ff   :  { %v2878_v30 = vadd.f32 %v639_v39, %v586_v34  ;;  %v2880_v49 = vadd.f32 %v640_v23, %v587_v22  ;;  %v496_v32 = vmul.f32 %v3675_v11, %v2712_v35  ;;  %v451_v27 = vmul.f32 %v2481_v58, %v435_v56  ;;  %v3677_v56 = vld [vmem:[#allocation16_spill] sm:$0xff] }
 0x300   :  { %786 = vrot.lane.b32.xlu2 %v2543_v41, %s2108_s18  ;;  %v513_v22 = vmul.f32 %v2477_v46, %v497_v0  ;;  %v557_v39 = vmul.f32 %v553_v52, %v551_v53  ;;  %v619_v23 = vmul.f32 %v615_v7, %v610_v10  ;;  %v460_v60 = vadd.f32 %v452_v33, %v397_v43  ;;  %s2120_s18 = smov 5  }
 0x301   :  { %v602_v48 = vpop.permute.xlu0 %601  ;;  %v2886_v21 = vpop.permute.xlu1 %656  ;;  %v396_v42 = vmul.f32 %v2473_v54, %v3676_v63  ;;  %v512_v14 = vmul.f32 %v2477_v46, %v496_v32  ;;  %v608_v58 = vsel %vm605_vm9, %v2786_v31, %v2837_v28  ;;  %v574_v52 = vmul.f32 %v2485_v1, %v558_v25 }
 0x302   :  { %v2884_v5 = vpop.permute.xlu2 %650  ;;  %v612_v35 = vsel %vm605_vm9, %v602_v48, %v2828_v59  ;;  %v606_v59 = vsel %vm605_vm9, %v2837_v28, %v602_v48  ;;  %v521_v54 = vadd.f32 %v513_v22, %v460_v60  ;;  %v573_v46 = vmul.f32 %v2485_v1, %v557_v39 }
 0x303   :  { %v459_v13 = vadd.f32 %v451_v27, %v396_v42  ;;  %v617_v0 = vperm.slane %v3677_v56, 3  ;;  %v635_v53 = vmul.f32 %v3678_v18, %v619_v23  ;;  %v620_v31 = vmul.f32 %v616_v17, %v608_v58 }
 0x304   :  { %v676_v33 = vperm.slane %v2779_v47, 4  ;;  %v582_v32 = vadd.f32 %v574_v52, %v521_v54  ;;  %v675_v17 = vperm.slane %v2725_v19, 4  ;;  %v3642_v27 = vperm.slane %v2685_v4, 4 }
 0x305   :  { %v520_v11 = vadd.f32 %v512_v14, %v459_v13  ;;  %v621_v28 = vmul.f32 %v617_v0, %v606_v59  ;;  %v3641_v22 = vperm.slane %v3677_v56, 4  ;;  %v636_v23 = vmul.f32 %v3678_v18, %v620_v31 }
 0x306   :  { %v3640_v42 = vperm.slane %v2725_v19, 5  ;;  %v3639_v14 = vperm.slane %v2779_v47, 5 }
 0x307   :  { %v581_v25 = vadd.f32 %v573_v46, %v520_v11  ;;  %v637_v63 = vmul.f32 %v3678_v18, %v621_v28  ;;  %v3646_v46 = vperm.slane %v2685_v4, 5 }
 0x308   :  { %843 = vrot.lane.b32.xlu2 %v2553_v20, %s2109_s19  ;;  %s2121_s19 = smov 4  }
 0x309   :  { %v2890_v44 = vpop.permute.xlu0 %658  ;;  %v2892_v2 = vpop.permute.xlu1 %662 }
 0x30a   :  { %v655_v26 = vpop.permute.xlu2 %654  ;;  %v667_v59 = vsel %vm666_vm10, %v2890_v44, %v2892_v2  ;;  %v673_v54 = vsel %vm666_vm10, %v2892_v2, %v2884_v5 }
 0x30b   :  { %v669_v48 = vsel %vm666_vm10, %v655_v26, %v2890_v44  ;;  %v671_v1 = vsel %vm666_vm10, %v2884_v5, %v655_v26  ;;  %v3643_v44 = vperm.slane %v2779_v47, 6  ;;  %v681_v5 = vmul.f32 %v3642_v27, %v667_v59 }
 0x30c   :  { %v679_v26 = vmul.f32 %v675_v17, %v671_v1  ;;  %v680_v60 = vmul.f32 %v676_v33, %v669_v48  ;;  %v3645_v1 = vperm.slane %v3677_v56, 5 }
 0x310   :  { %875 = vperm.xlu2 %1965, %v2049_v12   ;;  %v614_v12 = vperm.slane %v2725_v19, 3 }
 0x311   :  { %v2900_v41 = vpop.permute.xlu0 %664  ;;  %v2902_v51 = vpop.permute.xlu1 %715 }
 0x312   :  { %v2897_v8 = vpop.permute.xlu2 %660  ;;  %v618_v7 = vmul.f32 %v614_v12, %v612_v35  ;;  %v643_v35 = vadd.f32 %v635_v53, %v582_v32  ;;  %v3679_v53 = vld [vmem:[#allocation10_spill] sm:$0xff]  ;;  %v682_v32 = vmul.f32 %v3641_v22, %v673_v54  ;;  %v3680_v22 = vld [vmem:[#allocation11_spill] sm:$0xff] }
 0x313   :  { %v695_v31 = vmul.f32 %v3679_v53, %v679_v26  ;;  %v696_v11 = vmul.f32 %v3679_v53, %v680_v60 }
 0x314   :  { %v634_v10 = vmul.f32 %v3678_v18, %v618_v7  ;;  %v3644_v18 = vperm.slane %v2725_v19, 6 }
 0x316   :  { %v642_v52 = vadd.f32 %v634_v10, %v581_v25  ;;  %v858_v10 = vperm.slane %v2725_v19, 7 }
 0x318   :  { %1969 = vset.pattern.permute.xlu2 %v3664_v37 }
 0x319   :  { %v2908_v16 = vpop.permute.xlu0 %711  ;;  %v2910_v57 = vpop.permute.xlu1 %721 }
 0x31a   :  { %v2904_v55 = vpop.permute.xlu2 %713  ;;  %v732_v7 = vsel %vm727_vm11, %v2908_v16, %v2902_v51 }
 0x31b   :  { %v740_v2 = vmul.f32 %v3640_v42, %v732_v7  ;;  %v703_v7 = vadd.f32 %v695_v31, %v642_v52  ;;  %v799_v42 = vperm.slane %v2685_v4, 6 }
 0x31d   :  { %v756_v27 = vmul.f32 %v3680_v22, %v740_v2  ;;  %v3681_v2 = vld [vmem:[#allocation13_spill] sm:$0xff] }
 0x321   :  { %v2940_v45 = vpop.permute.xlu0 %717  ;;  %v777_v34 = vpop.permute.xlu1 %776 }
 0x322   :  { %v2906_v20 = vpop.permute.xlu2 %719 }
 0x323   :  { %v730_v13 = vsel %vm727_vm11, %v2902_v51, %v2906_v20 }
 0x324   :  { %v741_v48 = vmul.f32 %v3639_v14, %v730_v13  ;;  %v704_v13 = vadd.f32 %v696_v11, %v643_v35  ;;  %v800_v14 = vperm.slane %v3677_v56, 6 }
 0x329   :  { %v724_v43 = vpop.permute.xlu0 %723  ;;  %v785_v39 = vpop.permute.xlu1 %784 }
 0x32a   :  { %v2926_v38 = vpop.permute.xlu2 %725  ;;  %v728_v25 = vsel %vm727_vm11, %v2906_v20, %v724_v43  ;;  %v734_v26 = vsel %vm727_vm11, %v724_v43, %v2908_v16  ;;  %v757_v20 = vmul.f32 %v3680_v22, %v741_v48 }
 0x32b   :  { %v742_v35 = vmul.f32 %v3646_v46, %v728_v25  ;;  %v743_v52 = vmul.f32 %v3645_v1, %v734_v26  ;;  %v697_v25 = vmul.f32 %v3679_v53, %v681_v5  ;;  %v698_v26 = vmul.f32 %v3679_v53, %v682_v32  ;;  %v3682_v1 = vld [vmem:[#allocation14_spill] sm:$0xff] }
 0x32d   :  { %v758_v5 = vmul.f32 %v3680_v22, %v742_v35  ;;  %v759_v53 = vmul.f32 %v3680_v22, %v743_v52 }
 0x331   :  { %v834_v54 = vpop.permute.xlu0 %833  ;;  %v842_v43 = vpop.permute.xlu1 %841 }
 0x332   :  { %v2969_v62 = vpop.permute.xlu2 %772 }
 0x333   :  { %v793_v28 = vsel %vm788_vm12, %v2969_v62, %v777_v34  ;;  %v795_v16 = vsel %vm788_vm12, %v785_v39, %v2969_v62 }
 0x334   :  { %v801_v60 = vmul.f32 %v3644_v18, %v793_v28  ;;  %v764_v18 = vadd.f32 %v756_v27, %v703_v7 }
 0x336   :  { %v817_v48 = vmul.f32 %v3681_v2, %v801_v60  ;;  %v765_v60 = vadd.f32 %v757_v20, %v704_v13 }
 0x338   :  { %v825_v32 = vadd.f32 %v817_v48, %v764_v18 }
 0x33a   :  { %v781_v58 = vpop.permute.xlu2 %780 }
 0x33b   :  { %v791_v51 = vsel %vm788_vm12, %v777_v34, %v781_v58  ;;  %v3647_v34 = vperm.slane %v2779_v47, 7  ;;  %v789_v28 = vsel %vm788_vm12, %v781_v58, %v785_v39 }
 0x33c   :  { %v802_v59 = vmul.f32 %v3643_v44, %v791_v51  ;;  %v804_v44 = vmul.f32 %v800_v14, %v795_v16  ;;  %v861_v16 = vperm.slane %v3677_v56, 7 }
 0x33e   :  { %v818_v62 = vmul.f32 %v3681_v2, %v802_v59  ;;  %v820_v13 = vmul.f32 %v3681_v2, %v804_v44 }
 0x342   :  { %v838_v51 = vpop.permute.xlu2 %837 }
 0x343   :  { %v852_v31 = vsel %vm849_vm13, %v838_v51, %v842_v43  ;;  %v854_v11 = vsel %vm849_vm13, %v834_v54, %v838_v51  ;;  %v803_v51 = vmul.f32 %v799_v42, %v789_v28  ;;  %v860_v28 = vperm.slane %v2685_v4, 7 }
 0x344   :  { %v862_v39 = vmul.f32 %v858_v10, %v854_v11  ;;  %v863_v58 = vmul.f32 %v3647_v34, %v852_v31  ;;  %v644_v11 = vadd.f32 %v636_v23, %v2768_v40  ;;  %v645_v31 = vadd.f32 %v637_v63, %v2770_v61 }
 0x345   :  { %v826_v34 = vadd.f32 %v818_v62, %v765_v60  ;;  %v819_v20 = vmul.f32 %v3681_v2, %v803_v51  ;;  %v783_v2 = vpop.permute.xlu0 %782 }
 0x346   :  { %v878_v59 = vmul.f32 %v3682_v1, %v862_v39  ;;  %v879_v46 = vmul.f32 %v3682_v1, %v863_v58  ;;  %v705_v27 = vadd.f32 %v697_v25, %v644_v11  ;;  %v706_v7 = vadd.f32 %v698_v26, %v645_v31 }
 0x347   :  { %v613_v11 = vsel %vm605_vm9, %v2870_v3, %v2793_v6  ;;  %v672_v6 = vsel %vm666_vm10, %v2874_v50, %v2886_v21 }
 0x348   :  { %v3093_v39 = vadd.f32 %v878_v59, %v825_v32  ;;  %v3095_v40 = vadd.f32 %v879_v46, %v826_v34  ;;  %v766_v23 = vadd.f32 %v758_v5, %v705_v27  ;;  %v767_v63 = vadd.f32 %v759_v53, %v706_v7  ;;  %v779_v46 = vpop.permute.xlu1 %778 }
 0x349   :  { %v607_v32 = vsel %vm605_vm9, %v2839_v36, %v2870_v3  ;;  %v622_v27 = vmul.f32 %v614_v12, %v613_v11  ;;  %v668_v36 = vsel %vm666_vm10, %v2897_v8, %v2900_v41 }
 0x34a   :  { %v846_v61 = vpop.permute.xlu2 %845  ;;  %v828_v52 = vadd.f32 %v820_v13, %v767_v63  ;;  %v827_v48 = vadd.f32 %v819_v20, %v766_v23  ;;  %v902_v26 = vadd.f32 %v3095_v40, %v3093_v39  ;;  %v670_v13 = vsel %vm666_vm10, %v2886_v21, %v2897_v8 }
 0x34b   :  { %v850_v22 = vsel %vm849_vm13, %v842_v43, %v846_v61  ;;  %v856_v18 = vsel %vm849_vm13, %v846_v61, %v834_v54  ;;  %v894_v43 = vmul.f32 %v3093_v39, %v3093_v39  ;;  %v895_v54 = vmul.f32 %v3095_v40, %v3095_v40 }
 0x34c   :  { %v864_v35 = vmul.f32 %v860_v28, %v850_v22  ;;  %v865_v44 = vmul.f32 %v861_v16, %v856_v18  ;;  %v625_v12 = vmul.f32 %v617_v0, %v607_v32  ;;  %v638_v61 = vmul.f32 %v2489_v29, %v622_v27 }
 0x34d   :  { %v840_v20 = vpop.permute.xlu0 %839  ;;  %v683_v23 = vmul.f32 %v675_v17, %v672_v6  ;;  %v684_v63 = vmul.f32 %v676_v33, %v670_v13  ;;  %v674_v22 = vsel %vm666_vm10, %v2900_v41, %v2874_v50  ;;  %v3683_v8 = vperm.slane %v2685_v4, 4 }
 0x34e   :  { %v880_v34 = vmul.f32 %v3682_v1, %v864_v35  ;;  %v881_v62 = vmul.f32 %v3682_v1, %v865_v44  ;;  %v912_v1 = vadd.f32 %v895_v54, %v894_v43  ;;  %v733_v0 = vsel %vm727_vm11, %v2904_v55, %v2940_v45  ;;  %v3684_v44 = vld [vmem:[#allocation9_spill] sm:$0xff] }
 0x34f   :  { %v685_v18 = vmul.f32 %v3683_v8, %v668_v36  ;;  %v641_v35 = vmul.f32 %v2489_v29, %v625_v12  ;;  %v731_v33 = vsel %vm727_vm11, %v2940_v45, %v2910_v57  ;;  %v729_v50 = vsel %vm727_vm11, %v2910_v57, %v2926_v38 }
 0x350   :  { %v3111_v58 = vadd.f32 %v880_v34, %v827_v48  ;;  %v3113_v25 = vadd.f32 %v881_v62, %v828_v52  ;;  %v836_v3 = vpop.permute.xlu1 %835  ;;  %v735_v41 = vsel %vm727_vm11, %v2926_v38, %v2904_v55  ;;  %v646_v17 = vadd.f32 %v638_v61, %v2808_v24  ;;  %v3692_v61 = vld [vmem:[#allocation12_spill] sm:$0xff] }
 0x351   :  { %v699_v52 = vmul.f32 %v3684_v44, %v683_v23  ;;  %v3685_v29 = vperm.slane %v3677_v56, 4  ;;  %v700_v34 = vmul.f32 %v3684_v44, %v684_v63  ;;  %v701_v45 = vmul.f32 %v3684_v44, %v685_v18 }
 0x352   :  { %v775_v51 = vpop.permute.xlu2 %774  ;;  %v903_v60 = vadd.f32 %v902_v26, %v3111_v58  ;;  %v896_v59 = vmul.f32 %v3111_v58, %v3111_v58  ;;  %v897_v5 = vmul.f32 %v3113_v25, %v3113_v25  ;;  %v3686_v62 = vperm.slane %v2725_v19, 5 }
 0x353   :  { %v686_v48 = vmul.f32 %v3685_v29, %v674_v22  ;;  %v794_v57 = vsel %vm788_vm12, %v775_v51, %v779_v46  ;;  %v3687_v24 = vperm.slane %v2779_v47, 5  ;;  %v3688_v54 = vperm.slane %v2685_v4, 5 }
 0x354   :  { %v904_v31 = vadd.f32 %v903_v60, %v3113_v25  ;;  %v913_v53 = vadd.f32 %v912_v1, %v896_v59  ;;  %v744_v43 = vmul.f32 %v3686_v62, %v733_v0  ;;  %v3689_v60 = vperm.slane %v3677_v56, 5 }
 0x355   :  { %v745_v38 = vmul.f32 %v3687_v24, %v731_v33  ;;  %v746_v26 = vmul.f32 %v3688_v54, %v729_v50  ;;  %v792_v1 = vsel %vm788_vm12, %v779_v46, %v783_v2  ;;  %v649_v11 = vadd.f32 %v641_v35, %v2810_v9 }
 0x356   :  { %905 = vadd.xlane.f32.xlu1 %v904_v31  ;;  %v914_v7 = vadd.f32 %v913_v53, %v897_v5  ;;  %v747_v59 = vmul.f32 %v3689_v60, %v735_v41  ;;  %v848_v31 = vpop.permute.xlu0 %847  ;;  %v707_v5 = vadd.f32 %v699_v52, %v646_v17  ;;  %v3690_v32 = vperm.slane %v2725_v19, 6 }
 0x357   :  { %v702_v36 = vmul.f32 %v3684_v44, %v686_v48  ;;  %v708_v12 = vadd.f32 %v700_v34, %v2878_v30  ;;  %v3691_v9 = vperm.slane %v2779_v47, 6  ;;  %v760_v23 = vmul.f32 %v3692_v61, %v744_v43 }
 0x358   :  { %915 = vadd.xlane.f32.xlu0 %v914_v7  ;;  %v815_v53 = vpop.permute.xlu1 %814  ;;  %v805_v27 = vmul.f32 %v3690_v32, %v794_v57  ;;  %v761_v63 = vmul.f32 %v3692_v61, %v745_v38  ;;  %v762_v22 = vmul.f32 %v3692_v61, %v746_v26 }
 0x359   :  { %v806_v46 = vmul.f32 %v3691_v9, %v792_v1  ;;  %v710_v33 = vadd.f32 %v702_v36, %v649_v11  ;;  %v768_v50 = vadd.f32 %v760_v23, %v707_v5 }
 0x35a   :  { %v787_v21 = vpop.permute.xlu2 %786  ;;  %v821_v8 = vmul.f32 %v815_v53, %v805_v27  ;;  %v769_v41 = vadd.f32 %v761_v63, %v708_v12 }
 0x35b   :  { %v790_v55 = vsel %vm788_vm12, %v783_v2, %v787_v21  ;;  %v796_v7 = vsel %vm788_vm12, %v787_v21, %v775_v51  ;;  %v709_v2 = vadd.f32 %v701_v45, %v2880_v49  ;;  %v763_v51 = vmul.f32 %v3692_v61, %v747_v59 }
 0x35c   :  { %v807_v6 = vmul.f32 %v799_v42, %v790_v55  ;;  %v855_v42 = vsel %vm849_vm13, %v836_v3, %v840_v20  ;;  %v857_v21 = vsel %vm849_vm13, %v848_v31, %v836_v3  ;;  %v822_v30 = vmul.f32 %v815_v53, %v806_v46 }
 0x35d   :  { %v808_v49 = vmul.f32 %v800_v14, %v796_v7  ;;  %v770_v17 = vadd.f32 %v762_v22, %v709_v2  ;;  %v866_v44 = vmul.f32 %v858_v10, %v855_v42  ;;  %v869_v3 = vmul.f32 %v861_v16, %v857_v21  ;;  %v3262_v21 = vld [vmem:[%s3594_s1 + $0x40] sm:$0xff] }
 0x35e   :  { %v823_v18 = vmul.f32 %v815_v53, %v807_v6  ;;  %v3693_v14 = vperm.slane %v2779_v47, 7  ;;  %v771_v34 = vadd.f32 %v763_v51, %v710_v33  ;;  %v830_v15 = vadd.f32 %v822_v30, %v769_v41 }
 0x35f   :  { %v824_v52 = vmul.f32 %v815_v53, %v808_v49  ;;  %v3694_v2 = vmov 4   ;;  %v3695_v22 = vmov 6  }
 0x360   :  { %v831_v45 = vadd.f32 %v823_v18, %v770_v17  ;;  %v3696_v17 = vmov 1  }
 0x361   :  { %v832_v10 = vadd.f32 %v824_v52, %v771_v34 }
 0x362   :  { %v844_v13 = vpop.permute.xlu2 %843 }
 0x363   :  { %v851_v0 = vsel %vm849_vm13, %v844_v13, %v848_v31  ;;  %v853_v35 = vsel %vm849_vm13, %v840_v20, %v844_v13  ;;  %v829_v20 = vadd.f32 %v821_v8, %v768_v50  ;;  %v3252_v13 = vld [vmem:[%s3594_s1 + $0x20] sm:$0xf] }
 0x364   :  { %v867_v29 = vmul.f32 %v3693_v14, %v853_v35  ;;  %v868_v48 = vmul.f32 %v860_v28, %v851_v0  ;;  %v3697_v14 = vmov 3  }
 0x36a   :  { %v876_v62 = vpop.permute.xlu2 %875 }
 0x36b   :  { %v882_v43 = vmul.f32 %v876_v62, %v866_v44  ;;  %v883_v57 = vmul.f32 %v876_v62, %v867_v29  ;;  %v884_v55 = vmul.f32 %v876_v62, %v868_v48  ;;  %v885_v19 = vmul.f32 %v876_v62, %v869_v3 }
 0x36c   :  { %v2110_v3 = vmov 9  }
 0x36d   :  { %v3229_v24 = vadd.f32 %v882_v43, %v829_v20  ;;  %v3231_v56 = vadd.f32 %v883_v57, %v830_v15  ;;  %v3233_v16 = vadd.f32 %v884_v55, %v831_v45  ;;  %v3235_v47 = vadd.f32 %v885_v19, %v832_v10  ;;  %v2051_v43 = vld [vmem:[%s3594_s1 + $0x48] sm:$0xff] }
 0x36e   :  { %v3698_v45 = vmov 5   ;;  %v3699_v19 = vmov 8   ;;  %v3700_v10 = vmov 7  }
 0x36f   :  { %v907_v4 = vadd.f32 %v3231_v56, %v3229_v24  ;;  %v898_v28 = vmul.f32 %v3229_v24, %v3229_v24  ;;  %v899_v38 = vmul.f32 %v3231_v56, %v3231_v56  ;;  %v900_v26 = vmul.f32 %v3233_v16, %v3233_v16 }
 0x370   :  { %v901_v1 = vmul.f32 %v3235_v47, %v3235_v47 }
 0x371   :  { %v908_v54 = vadd.f32 %v907_v4, %v3233_v16  ;;  %v917_v60 = vadd.f32 %v899_v38, %v898_v28  ;;  %v2111_v4 = vmov 10   ;;  %v2112_v28 = vmov 11  }
 0x372   :  { %v2113_v38 = vmov 13  }
 0x373   :  { %v909_v59 = vadd.f32 %v908_v54, %v3235_v47  ;;  %v918_v11 = vadd.f32 %v917_v60, %v900_v26  ;;  %v2114_v54 = vmov 14   ;;  %v2115_v26 = vmov 15   ;;  %v36_v60 = vld [vmem:[%s3594_s1 + $0x28] sm:$0xff] }
 0x375   :  { %910 = vadd.xlane.f32.xlu2 %v909_v59  ;;  %v919_v31 = vadd.f32 %v918_v11, %v901_v1 }
 0x377   :  { %920 = vadd.xlane.f32.xlu1 %v919_v31  ;;  %v2116_v31 = vmov 12  }
 0x38d   :  { %1076 = vperm.xlu2 %1969, %v3252_v13  }
 0x395   :  { %1971 = vset.pattern.permute.xlu2 %v3694_v2 }
 0x396   :  { %1090 = vperm.xlu2 %1971, %v3252_v13  }
 0x39e   :  { %1973 = vset.pattern.permute.xlu2 %v3695_v22 }
 0x39f   :  { %1104 = vperm.xlu2 %1973, %v3252_v13  }
 0x3a7   :  { %1976 = vset.pattern.permute.xlu2 %v2110_v3 }
 0x3c9   :  { %v906_v5 = vpop.xlane.xlu1 %905 }
 0x3ca   :  { %v922_v53 = vmul.f32 0.001953125, %v906_v5 }
 0x3cb   :  { %v916_v32 = vpop.xlane.xlu0 %915 }
 0x3cc   :  { %v926_v27 = vmul.f32 %v922_v53, %v922_v53  ;;  %v924_v7 = vmul.f32 0.001953125, %v916_v32 }
 0x3ce   :  { %v928_v6 = vsub.f32 %v924_v7, %v926_v27  ;;  %v3701_v7 = vmov 0  }
 0x3d0   :  { %v930_v36 = vmax.f32 %v928_v6, 0.0  ;;  %v37_v6 = vld [vmem:[%s3594_s1 + $0x30] sm:$0xff] }
 0x3d2   :  { %v932_v12 = vadd.f32 1e-05, %v930_v36 }
 0x3d4   :  { %2031 = vrsqrt.f32 %v932_v12  ;;  %vm940_vm15 = vweird.f32 %v932_v12 }
 0x3da   :  { %v2032_v9 = vpop.eup %2031 }
 0x3db   :  { %v935_v46 = vmul.f32 %v2032_v9, %v932_v12  ;;  %vm941_vm14 = vweird.f32 %v2032_v9 }
 0x3dc   :  { %vm942_vm0 = vmor %vm940_vm15, %vm941_vm14 }
 0x3dd   :  { %v936_v61 = vmul.f32 %v2032_v9, %v935_v46 }
 0x3df   :  { %v937_v23 = vmul.f32 0.5, %v936_v61 }
 0x3e1   :  { %v938_v63 = vsub.f32 1.5, %v937_v23 }
 0x3e3   :  { %v939_v51 = vmul.f32 %v2032_v9, %v938_v63 }
 0x3e5   :  { %v943_v42 = vsel %vm942_vm0, %v2032_v9, %v939_v51 }
 0x3e6   :  { %v954_v30 = vmul.f32 %v3262_v21, %v943_v42 }
 0x3e8   :  { %v911_v49 = vpop.xlane.xlu2 %910  ;;  %970 = vperm.xlu1 %1966, %v954_v30   ;;  %v956_v8 = vmul.f32 %v954_v30, %v922_v53 }
 0x3e9   :  { %v923_v18 = vmul.f32 0.001953125, %v911_v49 }
 0x3ea   :  { %960 = vrot.lane.b32.xlu0 %v956_v8, %s2102_s12  ;;  %v921_v0 = vpop.xlane.xlu1 %920 }
 0x3eb   :  { %v927_v35 = vmul.f32 %v923_v18, %v923_v18  ;;  %v925_v33 = vmul.f32 0.001953125, %v921_v0 }
 0x3ed   :  { %v929_v50 = vsub.f32 %v925_v33, %v927_v35 }
 0x3ef   :  { %v931_v41 = vmax.f32 %v929_v50, 0.0 }
 0x3f0   :  { %1968 = vset.pattern.permute.xlu1 %v3696_v17  ;;  %v3297_v59 = vpop.permute.xlu2 %1076 }
 0x3f1   :  { %v933_v44 = vadd.f32 1e-05, %v931_v41  ;;  %1069 = vperm.xlu1 %1968, %v3252_v13  }
 0x3f3   :  { %2033 = vrsqrt.f32 %v933_v44  ;;  %vm950_vm2 = vweird.f32 %v933_v44 }
 0x3f8   :  { %v3300_v1 = vpop.permute.xlu2 %1090 }
 0x3f9   :  { %v2034_v52 = vpop.eup %2033  ;;  %1970 = vset.pattern.permute.xlu1 %v3697_v14 }
 0x3fa   :  { %v945_v29 = vmul.f32 %v2034_v52, %v933_v44  ;;  %1083 = vperm.xlu1 %1970, %v3252_v13   ;;  %vm951_vm1 = vweird.f32 %v2034_v52 }
 0x3fb   :  { %vm952_vm3 = vmor %vm950_vm2, %vm951_vm1 }
 0x3fc   :  { %v946_v48 = vmul.f32 %v2034_v52, %v945_v29 }
 0x3fe   :  { %v947_v34 = vmul.f32 0.5, %v946_v48 }
 0x400   :  { %v948_v15 = vsub.f32 1.5, %v947_v34  ;;  %v3302_v11 = vpop.permute.xlu2 %1104 }
 0x402   :  { %v949_v20 = vmul.f32 %v2034_v52, %v948_v15  ;;  %1972 = vset.pattern.permute.xlu1 %v3698_v45 }
 0x403   :  { %1097 = vperm.xlu1 %1972, %v3252_v13  }
 0x404   :  { %v953_v62 = vsel %vm952_vm3, %v2034_v52, %v949_v20 }
 0x405   :  { %v955_v57 = vmul.f32 %v2051_v43, %v953_v62 }
 0x407   :  { %975 = vperm.xlu0 %1967, %v955_v57   ;;  %v957_v55 = vmul.f32 %v955_v57, %v923_v18 }
 0x409   :  { %962 = vrot.lane.b32.xlu2 %v957_v55, %s2102_s12 }
 0x40b   :  { %1975 = vset.pattern.permute.xlu1 %v3699_v19 }
 0x40c   :  { %1118 = vperm.xlu1 %1975, %v3252_v13  }
 0x40f   :  { %1974 = vset.pattern.permute.xlu0 %v3700_v10 }
 0x410   :  { %1111 = vperm.xlu0 %1974, %v3252_v13  }
 0x411   :  { %1125 = vperm.xlu2 %1976, %v3252_v13  }
 0x414   :  { %1977 = vset.pattern.permute.xlu1 %v2111_v4 }
 0x415   :  { %1132 = vperm.xlu1 %1977, %v3252_v13  }
 0x418   :  { %1979 = vset.pattern.permute.xlu0 %v2116_v31 }
 0x419   :  { %1978 = vset.pattern.permute.xlu2 %v2112_v28  ;;  %1146 = vperm.xlu0 %1979, %v3252_v13  }
 0x41a   :  { %1139 = vperm.xlu2 %1978, %v3252_v13  }
 0x41d   :  { %1981 = vset.pattern.permute.xlu1 %v2113_v38 }
 0x41e   :  { %1153 = vperm.xlu1 %1981, %v3252_v13  }
 0x421   :  { %1980 = vset.pattern.permute.xlu0 %v3701_v7 }
 0x422   :  { %1982 = vset.pattern.permute.xlu2 %v2114_v54  ;;  %1063 = vperm.xlu0 %1980, %v3252_v13  }
 0x423   :  { %1160 = vperm.xlu2 %1982, %v3252_v13  }
 0x426   :  { %1983 = vset.pattern.permute.xlu1 %v2115_v26 }
 0x427   :  { %1167 = vperm.xlu1 %1983, %v3252_v13  }
 0x42a   :  { %1200 = vperm.xlu0 %1980, %v37_v6  }
 0x42b   :  { %1984 = vset.pattern.permute.xlu2 %v3697_v14 }
 0x42f   :  { %1986 = vset.pattern.permute.xlu1 %v3696_v17 }
 0x430   :  { %1207 = vperm.xlu1 %1986, %v36_v60  }
 0x432   :  { %1991 = vset.pattern.permute.xlu0 %v3697_v14 }
 0x433   :  { %1233 = vperm.xlu0 %1991, %v36_v60  }
 0x438   :  { %1988 = vset.pattern.permute.xlu1 %v3697_v14 }
 0x43b   :  { %1994 = vset.pattern.permute.xlu0 %v3696_v17 }
 0x45a   :  { %v971_v13 = vpop.permute.xlu1 %970 }
 0x45b   :  { %v978_v42 = vmul.f32 %v971_v13, %v3093_v39  ;;  %v980_v30 = vmul.f32 %v971_v13, %v3111_v58  ;;  %v981_v49 = vmul.f32 %v971_v13, %v3113_v25 }
 0x45c   :  { %v961_v5 = vpop.permute.xlu0 %960 }
 0x45d   :  { %v966_v53 = vsub.f32 %v3262_v21, %v961_v5  ;;  %v979_v21 = vmul.f32 %v971_v13, %v3095_v40 }
 0x45f   :  { %988 = vperm.xlu2 %1984, %v966_v53  }
 0x463   :  { %v963_v32 = vpop.permute.xlu2 %962  ;;  %v3321_v36 = vpop.permute.xlu1 %1069 }
 0x464   :  { %v967_v27 = vsub.f32 %v2051_v43, %v963_v32 }
 0x466   :  { %993 = vperm.xlu1 %1988, %v967_v27  }
 0x467   :  { %1985 = vset.pattern.permute.xlu2 %v3701_v7 }
 0x468   :  { %1195 = vperm.xlu2 %1985, %v36_v60  }
 0x46b   :  { %v3325_v9 = vpop.permute.xlu2 %1125 }
 0x46c   :  { %v3323_v12 = vpop.permute.xlu1 %1083 }
 0x46e   :  { %1989 = vset.pattern.permute.xlu1 %v3664_v37 }
 0x46f   :  { %1220 = vperm.xlu1 %1989, %v36_v60  }
 0x470   :  { %1987 = vset.pattern.permute.xlu2 %v3696_v17 }
 0x471   :  { %1211 = vperm.xlu2 %1987, %v37_v6  }
 0x474   :  { %v3329_v61 = vpop.permute.xlu2 %1139 }
 0x475   :  { %v3327_v46 = vpop.permute.xlu1 %1097 }
 0x477   :  { %1992 = vset.pattern.permute.xlu1 %v3697_v14 }
 0x478   :  { %1237 = vperm.xlu1 %1992, %v37_v6  }
 0x479   :  { %1990 = vset.pattern.permute.xlu2 %v3664_v37 }
 0x47a   :  { %1224 = vperm.xlu2 %1990, %v37_v6  }
 0x47d   :  { %v3333_v63 = vpop.permute.xlu2 %1160 }
 0x47e   :  { %v3331_v23 = vpop.permute.xlu1 %1118 }
 0x480   :  { %1996 = vset.pattern.permute.xlu1 %v3664_v37 }
 0x482   :  { %1993 = vset.pattern.permute.xlu2 %v3701_v7 }
 0x487   :  { %v3335_v51 = vpop.permute.xlu1 %1132 }
 0x490   :  { %v3341_v50 = vpop.permute.xlu1 %1153 }
 0x499   :  { %v3349_v32 = vpop.permute.xlu1 %1167 }
 0x4b9   :  { %v989_v8 = vpop.permute.xlu2 %988 }
 0x4ba   :  { %v996_v18 = vadd.f32 %v989_v8, %v978_v42  ;;  %v997_v0 = vadd.f32 %v989_v8, %v979_v21  ;;  %v998_v35 = vadd.f32 %v989_v8, %v980_v30  ;;  %v999_v33 = vadd.f32 %v989_v8, %v981_v49  ;;  %v3357_v42 = vpop.permute.xlu1 %1207  ;;  %v976_v21 = vpop.permute.xlu0 %975 }
 0x4bb   :  { %v982_v30 = vmul.f32 %v976_v21, %v3229_v24  ;;  %v983_v49 = vmul.f32 %v976_v21, %v3231_v56  ;;  %v984_v8 = vmul.f32 %v976_v21, %v3233_v16 }
 0x4bc   :  { %v1004_v41 = vadd.f32 3.0, %v996_v18  ;;  %v1005_v44 = vadd.f32 3.0, %v997_v0  ;;  %v1006_v52 = vadd.f32 3.0, %v998_v35  ;;  %v1007_v29 = vadd.f32 3.0, %v999_v33 }
 0x4be   :  { %v1012_v48 = vmax.f32 %v1004_v41, 0.0  ;;  %v1013_v34 = vmax.f32 %v1005_v44, 0.0  ;;  %v1014_v39 = vmax.f32 %v1006_v52, 0.0  ;;  %v1015_v15 = vmax.f32 %v1007_v29, 0.0 }
 0x4c0   :  { %v1020_v40 = vmin.f32 %v1012_v48, 6.0  ;;  %v1021_v20 = vmin.f32 %v1013_v34, 6.0  ;;  %v1022_v58 = vmin.f32 %v1014_v39, 6.0  ;;  %v1023_v62 = vmin.f32 %v1015_v15, 6.0 }
 0x4c2   :  { %v1028_v25 = vmul.f32 %v1020_v40, %v996_v18  ;;  %v1029_v43 = vmul.f32 %v1021_v20, %v997_v0  ;;  %v1030_v57 = vmul.f32 %v1022_v58, %v998_v35  ;;  %v1031_v55 = vmul.f32 %v1023_v62, %v999_v33 }
 0x4c3   :  { %v985_v18 = vmul.f32 %v976_v21, %v3235_v47 }
 0x4c4   :  { %v3343_v60 = vmul.f32 0.16666667, %v1028_v25  ;;  %v3345_v5 = vmul.f32 0.16666667, %v1029_v43  ;;  %v3347_v53 = vmul.f32 0.16666667, %v1030_v57 }
 0x4c5   :  { %v3351_v27 = vmul.f32 0.16666667, %v1031_v55 }
 0x4c6   :  { %v1044_v6 = vadd.f32 %v3345_v5, %v3343_v60 }
 0x4c7   :  { %v1050_v13 = vadd.f32 %v3351_v27, %v3347_v53 }
 0x4c8   :  { %1045 = vadd.xlane.f32.xlu2 %v1044_v6 }
 0x4c9   :  { %1051 = vadd.xlane.f32.xlu1 %v1050_v13 }
 0x4d8   :  { %v994_v0 = vpop.permute.xlu1 %993 }
 0x4d9   :  { %v1000_v35 = vadd.f32 %v994_v0, %v982_v30  ;;  %v1001_v33 = vadd.f32 %v994_v0, %v983_v49  ;;  %v1002_v41 = vadd.f32 %v994_v0, %v984_v8  ;;  %v1003_v44 = vadd.f32 %v994_v0, %v985_v18  ;;  %v3375_v49 = vpop.permute.xlu2 %1195  ;;  %v1112_v0 = vpop.permute.xlu0 %1111 }
 0x4db   :  { %v1008_v52 = vadd.f32 3.0, %v1000_v35  ;;  %v1009_v29 = vadd.f32 3.0, %v1001_v33  ;;  %v1010_v48 = vadd.f32 3.0, %v1002_v41  ;;  %v1011_v34 = vadd.f32 3.0, %v1003_v44 }
 0x4dd   :  { %v1016_v39 = vmax.f32 %v1008_v52, 0.0  ;;  %v1017_v15 = vmax.f32 %v1009_v29, 0.0  ;;  %v1018_v40 = vmax.f32 %v1010_v48, 0.0  ;;  %v1019_v20 = vmax.f32 %v1011_v34, 0.0 }
 0x4df   :  { %v1024_v24 = vmin.f32 %v1016_v39, 6.0  ;;  %v1025_v58 = vmin.f32 %v1017_v15, 6.0  ;;  %v1026_v56 = vmin.f32 %v1018_v40, 6.0  ;;  %v1027_v62 = vmin.f32 %v1019_v20, 6.0 }
 0x4e1   :  { %v1032_v16 = vmul.f32 %v1024_v24, %v1000_v35  ;;  %v1033_v25 = vmul.f32 %v1025_v58, %v1001_v33  ;;  %v1034_v47 = vmul.f32 %v1026_v56, %v1002_v41  ;;  %v1035_v43 = vmul.f32 %v1027_v62, %v1003_v44  ;;  %v3377_v8 = vpop.permute.xlu2 %1211  ;;  %v3379_v18 = vpop.permute.xlu1 %1220 }
 0x4e2   :  { %v1147_v41 = vpop.permute.xlu0 %1146 }
 0x4e3   :  { %v3363_v57 = vmul.f32 0.16666667, %v1032_v16  ;;  %v3365_v55 = vmul.f32 0.16666667, %v1033_v25  ;;  %v3367_v6 = vmul.f32 0.16666667, %v1034_v47 }
 0x4e4   :  { %v3369_v13 = vmul.f32 0.16666667, %v1035_v43 }
 0x4e5   :  { %v1047_v21 = vadd.f32 %v3365_v55, %v3363_v57 }
 0x4e6   :  { %v1053_v30 = vadd.f32 %v3369_v13, %v3367_v6 }
 0x4e7   :  { %1048 = vadd.xlane.f32.xlu0 %v1047_v21 }
 0x4e8   :  { %1054 = vadd.xlane.f32.xlu2 %v1053_v30 }
 0x4e9   :  { %v3381_v35 = vpop.permute.xlu2 %1224 }
 0x4ea   :  { %v3383_v33 = vpop.permute.xlu1 %1237  ;;  %v1064_v34 = vpop.permute.xlu0 %1063 }
 0x4f2   :  { %v3387_v56 = vpop.permute.xlu0 %1200 }
 0x4fa   :  { %v3391_v30 = vpop.permute.xlu0 %1233 }
 0x53b   :  { %v1046_v44 = vpop.xlane.xlu2 %1045 }
 0x53c   :  { %v1052_v52 = vpop.xlane.xlu1 %1051 }
 0x53d   :  { %v1057_v29 = vsel %vm1056_vm4, %v1046_v44, %v1052_v52 }
 0x53e   :  { %v1059_v48 = vmul.f32 0.00390625, %v1057_v29 }
 0x540   :  { %v1066_v39 = vperm.slane %v1059_v48, 0  ;;  %v1072_v15 = vperm.slane %v1059_v48, 1  ;;  %v1079_v24 = vperm.slane %v1059_v48, 2  ;;  %v1086_v16 = vperm.slane %v1059_v48, 3 }
 0x541   :  { %v1093_v43 = vperm.slane %v1059_v48, 4  ;;  %v1100_v52 = vperm.slane %v1059_v48, 5 }
 0x542   :  { %v1067_v40 = vmul.f32 %v1066_v39, %v1064_v34  ;;  %v1073_v20 = vmul.f32 %v1072_v15, %v3321_v36  ;;  %v1080_v62 = vmul.f32 %v1079_v24, %v3297_v59  ;;  %v1087_v47 = vmul.f32 %v1086_v16, %v3323_v12 }
 0x543   :  { %v1094_v44 = vmul.f32 %v1093_v43, %v3300_v1  ;;  %v1101_v36 = vmul.f32 %v1100_v52, %v3327_v46  ;;  %v1107_v34 = vperm.slane %v1059_v48, 6  ;;  %v1114_v59 = vperm.slane %v1059_v48, 7 }
 0x544   :  { %v1074_v58 = vadd.f32 %v1073_v20, %v1067_v40 }
 0x545   :  { %v1108_v40 = vmul.f32 %v1107_v34, %v3302_v11 }
 0x546   :  { %v1081_v25 = vadd.f32 %v1080_v62, %v1074_v58  ;;  %v1115_v62 = vmul.f32 %v1114_v59, %v1112_v0 }
 0x548   :  { %v1088_v21 = vadd.f32 %v1087_v47, %v1081_v25 }
 0x54a   :  { %v1095_v29 = vadd.f32 %v1094_v44, %v1088_v21 }
 0x54c   :  { %v1102_v39 = vadd.f32 %v1101_v36, %v1095_v29 }
 0x54e   :  { %v1109_v12 = vadd.f32 %v1108_v40, %v1102_v39 }
 0x550   :  { %v1116_v47 = vadd.f32 %v1115_v62, %v1109_v12 }
 0x55a   :  { %v1049_v15 = vpop.xlane.xlu0 %1048 }
 0x55b   :  { %v1055_v20 = vpop.xlane.xlu2 %1054 }
 0x55c   :  { %v1058_v24 = vsel %vm1056_vm4, %v1049_v15, %v1055_v20 }
 0x55d   :  { %v1060_v58 = vmul.f32 0.00390625, %v1058_v24 }
 0x55f   :  { %v1121_v16 = vperm.slane %v1060_v58, 0  ;;  %v1128_v25 = vperm.slane %v1060_v58, 1  ;;  %v1135_v43 = vperm.slane %v1060_v58, 2  ;;  %v1142_v44 = vperm.slane %v1060_v58, 3 }
 0x560   :  { %v1149_v48 = vperm.slane %v1060_v58, 4  ;;  %v1156_v34 = vperm.slane %v1060_v58, 5  ;;  %v1163_v15 = vperm.slane %v1060_v58, 6 }
 0x561   :  { %v1122_v1 = vmul.f32 %v1121_v16, %v3331_v23  ;;  %v1129_v46 = vmul.f32 %v1128_v25, %v3325_v9  ;;  %v1136_v11 = vmul.f32 %v1135_v43, %v3335_v51  ;;  %v1143_v36 = vmul.f32 %v1142_v44, %v3329_v61 }
 0x562   :  { %v1150_v0 = vmul.f32 %v1149_v48, %v1147_v41  ;;  %v1157_v59 = vmul.f32 %v1156_v34, %v3341_v50  ;;  %v1170_v23 = vperm.slane %v1060_v58, 7  ;;  %v1164_v24 = vmul.f32 %v1163_v15, %v3333_v63 }
 0x563   :  { %v1123_v21 = vadd.f32 %v1122_v1, %v1116_v47 }
 0x564   :  { %v1171_v12 = vmul.f32 %v1170_v23, %v3349_v32 }
 0x565   :  { %v1130_v52 = vadd.f32 %v1129_v46, %v1123_v21 }
 0x567   :  { %v1137_v29 = vadd.f32 %v1136_v11, %v1130_v52 }
 0x569   :  { %v1144_v39 = vadd.f32 %v1143_v36, %v1137_v29 }
 0x56b   :  { %v1151_v40 = vadd.f32 %v1150_v0, %v1144_v39 }
 0x56d   :  { %v1158_v20 = vadd.f32 %v1157_v59, %v1151_v40 }
 0x56f   :  { %v1165_v9 = vadd.f32 %v1164_v24, %v1158_v20 }
 0x571   :  { %v1172_v62 = vadd.f32 %v1171_v12, %v1165_v9 }
 0x573   :  { %v1889_v51 = vmul.f32 -1.442695, %v1172_v62 }
 0x575   :  { %2035 = vpow2.f32 %v1889_v51 }
 0x57b   :  { %v2036_v16 = vpop.eup %2035 }
 0x57c   :  { %v1176_v25 = vadd.f32 1.0, %v2036_v16 }
 0x57e   :  { %2037 = vrcp.f32 %v1176_v25  ;;  %v1188_v1 = vand.u32 2147483648, %v1176_v25  ;;  %v1186_v50 = vand.u32 2147483647, %v1176_v25  ;;  %vm1182_vm6 = vweird.f32 %v1176_v25 }
 0x580   :  { %v1189_v63 = vor.u32 1.1754944e-38, %v1188_v1  ;;  %vm1187_vm8 = vcmp.eq.f32.partialorder %v1186_v50, 8.507059e+37 }
 0x584   :  { %v2038_v61 = vpop.eup %2037 }
 0x585   :  { %v1178_v47 = vmul.f32 %v2038_v61, %v1176_v25  ;;  %vm1183_vm5 = vweird.f32 %v2038_v61 }
 0x586   :  { %vm1184_vm7 = vmor %vm1182_vm6, %vm1183_vm5 }
 0x587   :  { %v1179_v41 = vsub.f32 1.0, %v1178_v47 }
 0x589   :  { %v1180_v43 = vmul.f32 %v2038_v61, %v1179_v41 }
 0x58b   :  { %v1181_v58 = vadd.f32 %v2038_v61, %v1180_v43 }
 0x58d   :  { %v1185_v21 = vsel %vm1184_vm7, %v2038_v61, %v1181_v58 }
 0x58e   :  { %v1190_v32 = vsel %vm1187_vm8, %v1189_v63, %v1185_v21 }
 0x58f   :  { %v1192_v46 = vmul.f32 %v1190_v32, %v1172_v62 }
 0x591   :  { %v1203_v44 = vperm.slane %v1192_v46, 0  ;;  %v1214_v52 = vperm.slane %v1192_v46, 1  ;;  %v1227_v11 = vperm.slane %v1192_v46, 2  ;;  %v1240_v36 = vperm.slane %v1192_v46, 3 }
 0x593   :  { %v1204_v48 = vmul.f32 %v1203_v44, %v3375_v49  ;;  %v1215_v29 = vmul.f32 %v1214_v52, %v3357_v42  ;;  %v1228_v39 = vmul.f32 %v1227_v11, %v3379_v18  ;;  %v1205_v0 = vmul.f32 %v1203_v44, %v3387_v56 }
 0x594   :  { %v1216_v15 = vmul.f32 %v1214_v52, %v3377_v8  ;;  %v1241_v59 = vmul.f32 %v1240_v36, %v3391_v30  ;;  %v1229_v9 = vmul.f32 %v1227_v11, %v3381_v35  ;;  %v1242_v42 = vmul.f32 %v1240_v36, %v3383_v33 }
 0x595   :  { %v1217_v34 = vadd.f32 %v1215_v29, %v1204_v48 }
 0x596   :  { %v1218_v20 = vadd.f32 %v1216_v15, %v1205_v0 }
 0x597   :  { %v1230_v40 = vadd.f32 %v1228_v39, %v1217_v34 }
 0x598   :  { %v1231_v49 = vadd.f32 %v1229_v9, %v1218_v20 }
 0x599   :  { %v1243_v23 = vadd.f32 %v1241_v59, %v1230_v40 }
 0x59a   :  { %v3412_v12 = vadd.f32 %v1242_v42, %v1231_v49 }
 0x59b   :  { %v1890_v24 = vmul.f32 -1.442695, %v1243_v23 }
 0x59c   :  { %v1891_v56 = vmul.f32 -1.442695, %v3412_v12 }
 0x59d   :  { %2039 = vpow2.f32 %v1890_v24 }
 0x5a3   :  { %v2040_v62 = vpop.eup %2039 }
 0x5a4   :  { %v1251_v18 = vadd.f32 1.0, %v2040_v62 }
 0x5a6   :  { %2041 = vrcp.f32 %v1251_v18  ;;  %v1264_v25 = vand.u32 2147483648, %v1251_v18  ;;  %v1262_v35 = vand.u32 2147483647, %v1251_v18  ;;  %vm1258_vm10 = vweird.f32 %v1251_v18 }
 0x5a7   :  { %2043 = vpow2.f32 %v1891_v56  ;;  %v3437_v56 = vld [vmem:[%s3594_s1 + $0x38] sm:$0xff] }
 0x5a8   :  { %v1265_v33 = vor.u32 1.1754944e-38, %v1264_v25  ;;  %vm1263_vm12 = vcmp.eq.f32.partialorder %v1262_v35, 8.507059e+37 }
 0x5ac   :  { %v2042_v8 = vpop.eup %2041 }
 0x5ad   :  { %v1254_v51 = vmul.f32 %v2042_v8, %v1251_v18  ;;  %v2044_v30 = vpop.eup %2043  ;;  %vm1259_vm9 = vweird.f32 %v2042_v8 }
 0x5ae   :  { %v1252_v47 = vadd.f32 1.0, %v2044_v30  ;;  %vm1260_vm11 = vmor %vm1258_vm10, %vm1259_vm9 }
 0x5af   :  { %v1255_v16 = vsub.f32 1.0, %v1254_v51 }
 0x5b0   :  { %2045 = vrcp.f32 %v1252_v47  ;;  %v1279_v0 = vand.u32 2147483648, %v1252_v47  ;;  %vm1273_vm14 = vweird.f32 %v1252_v47  ;;  %v1277_v15 = vand.u32 2147483647, %v1252_v47 }
 0x5b1   :  { %v1256_v61 = vmul.f32 %v2042_v8, %v1255_v16 }
 0x5b2   :  { %v1280_v59 = vor.u32 1.1754944e-38, %v1279_v0  ;;  %vm1278_vm0 = vcmp.eq.f32.partialorder %v1277_v15, 8.507059e+37 }
 0x5b3   :  { %v1257_v41 = vadd.f32 %v2042_v8, %v1256_v61 }
 0x5b5   :  { %v1261_v1 = vsel %vm1260_vm11, %v2042_v8, %v1257_v41 }
 0x5b6   :  { %v1266_v43 = vsel %vm1263_vm12, %v1265_v33, %v1261_v1  ;;  %v2046_v32 = vpop.eup %2045 }
 0x5b7   :  { %v3415_v50 = vmul.f32 %v1266_v43, %v1243_v23  ;;  %v1269_v46 = vmul.f32 %v2046_v32, %v1252_v47  ;;  %vm1274_vm13 = vweird.f32 %v2046_v32 }
 0x5b8   :  { %vm1275_vm15 = vmor %vm1273_vm14, %vm1274_vm13 }
 0x5b9   :  { %v1330_v58 = vperm.slane %v3415_v50, 3  ;;  %v1313_v63 = vperm.slane %v3415_v50, 2  ;;  %v1296_v21 = vperm.slane %v3415_v50, 1  ;;  %v1381_v44 = vperm.slane %v3415_v50, 6 }
 0x5ba   :  { %v1364_v52 = vperm.slane %v3415_v50, 5  ;;  %v1347_v11 = vperm.slane %v3415_v50, 4  ;;  %v1270_v48 = vsub.f32 1.0, %v1269_v46  ;;  %v1285_v36 = vperm.slane %v3415_v50, 0 }
 0x5bb   :  { %1332 = vrot.lane.b32.xlu2 %v1330_v58, %s2117_s13  ;;  %1315 = vrot.lane.b32.xlu0 %v1313_v63, %s2118_s14  ;;  %v1398_v34 = vperm.slane %v3415_v50, 7  ;;  %v1575_v51 = vmul.f32 %v1296_v21, %v3437_v56 }
 0x5bc   :  { %1298 = vrot.lane.b32.xlu1 %v1296_v21, %s2102_s12  ;;  %v1271_v29 = vmul.f32 %v2046_v32, %v1270_v48  ;;  %v1286_v30 = vmul.f32 %v1285_v36, %v3437_v56 }
 0x5be   :  { %v1272_v39 = vadd.f32 %v2046_v32, %v1271_v29 }
 0x5c0   :  { %v1276_v40 = vsel %vm1275_vm15, %v2046_v32, %v1272_v39 }
 0x5c1   :  { %v1281_v23 = vsel %vm1278_vm0, %v1280_v59, %v1276_v40 }
 0x5c2   :  { %v1284_v20 = vmul.f32 %v1281_v23, %v3412_v12 }
 0x5c3   :  { %1383 = vrot.lane.b32.xlu2 %v1381_v44, %s2119_s17  ;;  %1366 = vrot.lane.b32.xlu0 %v1364_v52, %s2120_s18 }
 0x5c4   :  { %1349 = vrot.lane.b32.xlu1 %v1347_v11, %s2121_s19  ;;  %v1432_v24 = vperm.slane %v1284_v20, 1  ;;  %v1449_v9 = vperm.slane %v1284_v20, 2  ;;  %v1415_v49 = vperm.slane %v1284_v20, 0  ;;  %v1483_v42 = vperm.slane %v1284_v20, 4 }
 0x5c5   :  { %v1500_v62 = vperm.slane %v1284_v20, 5  ;;  %v1466_v18 = vperm.slane %v1284_v20, 3  ;;  %v1534_v12 = vperm.slane %v1284_v20, 7  ;;  %v1517_v8 = vperm.slane %v1284_v20, 6 }
 0x5cb   :  { %1617 = vrot.lane.b32.xlu0 %v1347_v11, %s2117_s13  ;;  %1562 = vrot.lane.b32.xlu2 %v1285_v36, %s2106_s16  ;;  %s2123_s16 = smov 9  }
 0x5cc   :  { %1400 = vrot.lane.b32.xlu1 %v1398_v34, %s2122_s20 }
 0x5d3   :  { %1662 = vrot.lane.b32.xlu0 %v1398_v34, %s2119_s17  ;;  %1602 = vrot.lane.b32.xlu2 %v1330_v58, %s2118_s14  ;;  %s1879_s17 = sshll.u32 %s3597_s4, 4  ;;  %s1880_s17 = int_to_ptr.hbm [resolvable:$true] %s1879_s17 }
 0x5d4   :  { %1587 = vrot.lane.b32.xlu1 %v1313_v63, %s2102_s12 }
 0x5db   :  { %1434 = vrot.lane.b32.xlu0 %v1432_v24, %s2123_s16  ;;  %1647 = vrot.lane.b32.xlu2 %v1381_v44, %s2120_s18 }
 0x5dc   :  { %1632 = vrot.lane.b32.xlu1 %v1364_v52, %s2121_s19 }
 0x5e3   :  { %1707 = vrot.lane.b32.xlu0 %v1449_v9, %s2123_s16  ;;  %1677 = vrot.lane.b32.xlu2 %v1415_v49, %s2122_s20 }
 0x5e4   :  { %1417 = vrot.lane.b32.xlu1 %v1415_v49, %s2124_s3 }
 0x5eb   :  { %1485 = vrot.lane.b32.xlu0 %v1483_v42, %s2125_s21  ;;  %1451 = vrot.lane.b32.xlu2 %v1449_v9, %s2126_s22 }
 0x5ec   :  { %1692 = vrot.lane.b32.xlu1 %v1432_v24, %s2124_s3 }
 0x5f3   :  { %1752 = vrot.lane.b32.xlu0 %v1500_v62, %s2125_s21  ;;  %1722 = vrot.lane.b32.xlu2 %v1466_v18, %s2126_s22 }
 0x5f4   :  { %1468 = vrot.lane.b32.xlu1 %v1466_v18, %s2127_s23  ;;  %v1292_v18 = vperm.slane %v3343_v60, 0 }
 0x5fb   :  { %1536 = vrot.lane.b32.xlu0 %v1534_v12, %s2105_s15  ;;  %1502 = vrot.lane.b32.xlu2 %v1500_v62, %s2128_s24 }
 0x5fc   :  { %1737 = vrot.lane.b32.xlu1 %v1483_v42, %s2127_s23 }
 0x603   :  { %1578 = vperm.xlu0 %1994, %v1575_v51   ;;  %1767 = vrot.lane.b32.xlu2 %v1517_v8, %s2128_s24 }
 0x604   :  { %1519 = vrot.lane.b32.xlu1 %v1517_v8, %s2129_s2 }
 0x60b   :  { %1289 = vperm.xlu2 %1993, %v1286_v30   ;;  %1997 = vset.pattern.permute.xlu0 %v3697_v14 }
 0x60c   :  { %1782 = vrot.lane.b32.xlu1 %v1534_v12, %s2129_s2  ;;  %v1293_v12 = vperm.slane %v3345_v5, 0 }
 0x613   :  { %1995 = vset.pattern.permute.xlu2 %v3696_v17 }
 0x615   :  { %v1333_v16 = vpop.permute.xlu2 %1332 }
 0x616   :  { %v1335_v25 = vmul.f32 %v1333_v16, %v3437_v56 }
 0x618   :  { %1338 = vperm.xlu0 %1997, %v1335_v25  }
 0x61d   :  { %v1384_v61 = vpop.permute.xlu2 %1383 }
 0x61e   :  { %v1386_v35 = vmul.f32 %v1384_v61, %v3437_v56 }
 0x620   :  { %2000 = vset.pattern.permute.xlu0 %v3695_v22 }
 0x621   :  { %1389 = vperm.xlu0 %2000, %v1386_v35  }
 0x625   :  { %v1563_v47 = vpop.permute.xlu2 %1562 }
 0x626   :  { %v1565_v48 = vmul.f32 %v1563_v47, %v3437_v56 }
 0x62d   :  { %v1316_v41 = vpop.permute.xlu0 %1315  ;;  %v1603_v33 = vpop.permute.xlu2 %1602 }
 0x62e   :  { %v1318_v1 = vmul.f32 %v1316_v41, %v3437_v56  ;;  %v1299_v43 = vpop.permute.xlu1 %1298  ;;  %v1605_v0 = vmul.f32 %v1603_v33, %v3437_v56 }
 0x62f   :  { %v1301_v50 = vmul.f32 %v1299_v43, %v3437_v56 }
 0x630   :  { %1321 = vperm.xlu1 %1996, %v1318_v1  }
 0x631   :  { %1304 = vperm.xlu2 %1995, %v1301_v50  }
 0x635   :  { %v1367_v58 = vpop.permute.xlu0 %1366  ;;  %v1648_v63 = vpop.permute.xlu2 %1647 }
 0x636   :  { %v1369_v21 = vmul.f32 %v1367_v58, %v3437_v56  ;;  %v1350_v32 = vpop.permute.xlu1 %1349  ;;  %v1650_v46 = vmul.f32 %v1648_v63, %v3437_v56  ;;  %v1307_v63 = vperm.slane %v3343_v60, 1 }
 0x637   :  { %v1352_v22 = vmul.f32 %v1350_v32, %v3437_v56 }
 0x638   :  { %1999 = vset.pattern.permute.xlu1 %v3698_v45  ;;  %1653 = vperm.xlu0 %2000, %v1650_v46  }
 0x639   :  { %1998 = vset.pattern.permute.xlu2 %v3694_v2  ;;  %1372 = vperm.xlu1 %1999, %v1369_v21   ;;  %v1308_v21 = vperm.slane %v3345_v5, 1 }
 0x63a   :  { %1355 = vperm.xlu2 %1998, %v1352_v22  }
 0x63d   :  { %v1618_v44 = vpop.permute.xlu0 %1617  ;;  %v1678_v52 = vpop.permute.xlu2 %1677 }
 0x63e   :  { %v1401_v11 = vpop.permute.xlu1 %1400  ;;  %v1680_v8 = vmul.f32 %v1678_v52, %v3437_v56 }
 0x63f   :  { %v1403_v49 = vmul.f32 %v1401_v11, %v3437_v56 }
 0x640   :  { %2010 = vset.pattern.permute.xlu0 %v2110_v3 }
 0x641   :  { %2002 = vset.pattern.permute.xlu1 %v3664_v37  ;;  %v1620_v37 = vmul.f32 %v1618_v44, %v3437_v56 }
 0x642   :  { %2001 = vset.pattern.permute.xlu2 %v3701_v7 }
 0x643   :  { %1568 = vperm.xlu2 %2001, %v1565_v48  }
 0x645   :  { %v1663_v29 = vpop.permute.xlu0 %1662  ;;  %v1452_v36 = vpop.permute.xlu2 %1451 }
 0x646   :  { %v1588_v34 = vpop.permute.xlu1 %1587  ;;  %v1454_v61 = vmul.f32 %v1452_v36, %v3437_v56 }
 0x647   :  { %v1590_v39 = vmul.f32 %v1588_v34, %v3437_v56 }
 0x649   :  { %1593 = vperm.xlu1 %2002, %v1590_v39  }
 0x64b   :  { %2003 = vset.pattern.permute.xlu2 %v3697_v14 }
 0x64c   :  { %1608 = vperm.xlu2 %2003, %v1605_v0  }
 0x64d   :  { %v1435_v15 = vpop.permute.xlu0 %1434  ;;  %v1723_v40 = vpop.permute.xlu2 %1722 }
 0x64e   :  { %v1437_v59 = vmul.f32 %v1435_v15, %v3437_v56  ;;  %v1633_v23 = vpop.permute.xlu1 %1632  ;;  %v1725_v14 = vmul.f32 %v1723_v40, %v3437_v56  ;;  %v1325_v15 = vperm.slane %v3345_v5, 2 }
 0x64f   :  { %v1635_v20 = vmul.f32 %v1633_v23, %v3437_v56  ;;  %v1342_v23 = vperm.slane %v3345_v5, 3 }
 0x650   :  { %1440 = vperm.xlu0 %2010, %v1437_v59   ;;  %v1341_v59 = vperm.slane %v3343_v60, 3 }
 0x651   :  { %2004 = vset.pattern.permute.xlu1 %v3694_v2  ;;  %v1665_v2 = vmul.f32 %v1663_v29, %v3437_v56 }
 0x652   :  { %1623 = vperm.xlu1 %2004, %v1620_v37  }
 0x654   :  { %2005 = vset.pattern.permute.xlu2 %v3698_v45 }
 0x655   :  { %1638 = vperm.xlu2 %2005, %v1635_v20   ;;  %v1503_v24 = vpop.permute.xlu2 %1502  ;;  %v1708_v47 = vpop.permute.xlu0 %1707  ;;  %v1359_v20 = vperm.slane %v3345_v5, 4 }
 0x656   :  { %v1418_v9 = vpop.permute.xlu1 %1417  ;;  %v1710_v41 = vmul.f32 %v1708_v47, %v3437_v56  ;;  %v1505_v58 = vmul.f32 %v1503_v24, %v3437_v56 }
 0x657   :  { %v1420_v45 = vmul.f32 %v1418_v9, %v3437_v56 }
 0x658   :  { %2015 = vset.pattern.permute.xlu0 %v2112_v28 }
 0x659   :  { %1728 = vperm.xlu0 %2015, %v1725_v14  }
 0x65a   :  { %2006 = vset.pattern.permute.xlu1 %v3700_v10 }
 0x65b   :  { %1406 = vperm.xlu1 %2006, %v1403_v49  }
 0x65d   :  { %2007 = vset.pattern.permute.xlu2 %v3700_v10  ;;  %v1768_v42 = vpop.permute.xlu2 %1767 }
 0x65e   :  { %v1693_v62 = vpop.permute.xlu1 %1692  ;;  %1668 = vperm.xlu2 %2007, %v1665_v2   ;;  %v1770_v52 = vmul.f32 %v1768_v42, %v3437_v56 }
 0x65f   :  { %v1695_v25 = vmul.f32 %v1693_v62, %v3437_v56 }
 0x661   :  { %2020 = vset.pattern.permute.xlu0 %v2114_v54 }
 0x663   :  { %2008 = vset.pattern.permute.xlu1 %v3699_v19 }
 0x664   :  { %1423 = vperm.xlu1 %2008, %v1420_v45  }
 0x665   :  { %v1290_v51 = vpop.permute.xlu2 %1289 }
 0x666   :  { %v1469_v30 = vpop.permute.xlu1 %1468  ;;  %2009 = vset.pattern.permute.xlu2 %v3699_v19  ;;  %v1294_v10 = vmul.f32 %v1292_v18, %v1290_v51  ;;  %v1295_v16 = vmul.f32 %v1293_v12, %v1290_v51  ;;  %v1375_v12 = vperm.slane %v3343_v60, 5 }
 0x667   :  { %1683 = vperm.xlu2 %2009, %v1680_v8   ;;  %v1471_v33 = vmul.f32 %v1469_v30, %v3437_v56  ;;  %v1376_v8 = vperm.slane %v3345_v5, 5 }
 0x66c   :  { %2011 = vset.pattern.permute.xlu1 %v2110_v3  ;;  %v1486_v3 = vpop.permute.xlu0 %1485 }
 0x66d   :  { %1698 = vperm.xlu1 %2011, %v1695_v25   ;;  %v1488_v43 = vmul.f32 %v1486_v3, %v3437_v56 }
 0x66e   :  { %v1738_v35 = vpop.permute.xlu1 %1737 }
 0x66f   :  { %2012 = vset.pattern.permute.xlu2 %v2111_v4  ;;  %v1740_v50 = vmul.f32 %v1738_v35, %v3437_v56 }
 0x670   :  { %1457 = vperm.xlu2 %2012, %v1454_v61  }
 0x675   :  { %2013 = vset.pattern.permute.xlu1 %v2111_v4  ;;  %v1753_v4 = vpop.permute.xlu0 %1752 }
 0x676   :  { %1713 = vperm.xlu1 %2013, %v1710_v41   ;;  %v1520_v19 = vpop.permute.xlu1 %1519 }
 0x677   :  { %v1522_v1 = vmul.f32 %v1520_v19, %v3437_v56 }
 0x678   :  { %2014 = vset.pattern.permute.xlu2 %v2112_v28  ;;  %v1755_v28 = vmul.f32 %v1753_v4, %v3437_v56  ;;  %v1581_v4 = vperm.slane %v3347_v53, 1 }
 0x679   :  { %1525 = vperm.xlu0 %2020, %v1522_v1   ;;  %1474 = vperm.xlu2 %2014, %v1471_v33  }
 0x67d   :  { %v1537_v11 = vpop.permute.xlu0 %1536 }
 0x67e   :  { %2016 = vset.pattern.permute.xlu1 %v2116_v31  ;;  %v1539_v48 = vmul.f32 %v1537_v11, %v3437_v56  ;;  %v1783_v29 = vpop.permute.xlu1 %1782 }
 0x67f   :  { %1491 = vperm.xlu1 %2016, %v1488_v43   ;;  %v1785_v36 = vmul.f32 %v1783_v29, %v3437_v56  ;;  %v1571_v43 = vperm.slane %v3347_v53, 0  ;;  %v1611_v29 = vperm.slane %v3347_v53, 3 }
 0x681   :  { %2017 = vset.pattern.permute.xlu2 %v2116_v31  ;;  %2026 = vset.pattern.permute.xlu0 %v3696_v17 }
 0x682   :  { %1743 = vperm.xlu2 %2017, %v1740_v50   ;;  %v1572_v50 = vperm.slane %v3351_v27, 0 }
 0x685   :  { %v1579_v34 = vpop.permute.xlu0 %1578 }
 0x687   :  { %2018 = vset.pattern.permute.xlu1 %v2113_v38 }
 0x688   :  { %1508 = vperm.xlu1 %2018, %v1505_v58   ;;  %v1582_v58 = vperm.slane %v3351_v27, 1 }
 0x68a   :  { %2019 = vset.pattern.permute.xlu2 %v2113_v38 }
 0x68b   :  { %1758 = vperm.xlu2 %2019, %v1755_v28   ;;  %v1305_v32 = vpop.permute.xlu2 %1304 }
 0x68c   :  { %v1309_v31 = vmul.f32 %v1307_v63, %v1305_v32  ;;  %v1310_v46 = vmul.f32 %v1308_v21, %v1305_v32  ;;  %v1596_v32 = vperm.slane %v3347_v53, 2 }
 0x68d   :  { %v1339_v0 = vpop.permute.xlu0 %1338 }
 0x68e   :  { %v1311_v22 = vadd.f32 %v1309_v31, %v1294_v10  ;;  %v1312_v44 = vadd.f32 %v1310_v46, %v1295_v16  ;;  %v1344_v24 = vmul.f32 %v1342_v23, %v1339_v0  ;;  %v1392_v10 = vperm.slane %v3343_v60, 6 }
 0x68f   :  { %v1393_v16 = vperm.slane %v3345_v5, 6  ;;  %v1597_v31 = vperm.slane %v3351_v27, 2  ;;  %v1641_v23 = vperm.slane %v3347_v53, 5 }
 0x690   :  { %2021 = vset.pattern.permute.xlu1 %v2114_v54  ;;  %v1324_v54 = vperm.slane %v3343_v60, 2 }
 0x691   :  { %1773 = vperm.xlu1 %2021, %v1770_v52  }
 0x693   :  { %2022 = vset.pattern.permute.xlu2 %v2115_v26 }
 0x694   :  { %1542 = vperm.xlu2 %2022, %v1539_v48   ;;  %v1356_v38 = vpop.permute.xlu2 %1355 }
 0x695   :  { %v1361_v42 = vmul.f32 %v1359_v20, %v1356_v38  ;;  %v1390_v51 = vpop.permute.xlu0 %1389 }
 0x696   :  { %v1394_v35 = vmul.f32 %v1392_v10, %v1390_v51  ;;  %v1395_v47 = vmul.f32 %v1393_v16, %v1390_v51  ;;  %v1686_v10 = vperm.slane %v3367_v6, 0  ;;  %v1687_v16 = vperm.slane %v3369_v13, 0 }
 0x699   :  { %2023 = vset.pattern.permute.xlu1 %v2115_v26  ;;  %v1358_v26 = vperm.slane %v3343_v60, 4 }
 0x69a   :  { %1788 = vperm.xlu1 %2023, %v1785_v36   ;;  %v1612_v36 = vperm.slane %v3351_v27, 3 }
 0x69b   :  { %v1360_v2 = vmul.f32 %v1358_v26, %v1356_v38 }
 0x69c   :  { %2025 = vset.pattern.permute.xlu2 %v3696_v17  ;;  %v1343_v17 = vmul.f32 %v1341_v59, %v1339_v0  ;;  %v1627_v59 = vperm.slane %v3351_v27, 4 }
 0x69d   :  { %v1569_v39 = vpop.permute.xlu2 %1568 }
 0x69e   :  { %v1573_v63 = vmul.f32 %v1571_v43, %v1569_v39  ;;  %v1574_v21 = vmul.f32 %v1572_v50, %v1569_v39  ;;  %v1626_v39 = vperm.slane %v3347_v53, 4 }
 0x6a2   :  { %v1322_v40 = vpop.permute.xlu1 %1321  ;;  %2024 = vset.pattern.permute.xlu1 %v3701_v7 }
 0x6a3   :  { %v1326_v56 = vmul.f32 %v1324_v54, %v1322_v40  ;;  %v1327_v37 = vmul.f32 %v1325_v15, %v1322_v40 }
 0x6a5   :  { %v1328_v9 = vadd.f32 %v1326_v56, %v1311_v22  ;;  %v1329_v14 = vadd.f32 %v1327_v37, %v1312_v44  ;;  %v1583_v22 = vmul.f32 %v1581_v4, %v1579_v34  ;;  %v1584_v44 = vmul.f32 %v1582_v58, %v1579_v34 }
 0x6a6   :  { %v1609_v49 = vpop.permute.xlu2 %1608  ;;  %v1642_v34 = vperm.slane %v3351_v27, 5 }
 0x6a7   :  { %v1345_v62 = vadd.f32 %v1343_v17, %v1328_v9  ;;  %v1346_v45 = vadd.f32 %v1344_v24, %v1329_v14  ;;  %v1585_v48 = vadd.f32 %v1583_v22, %v1573_v63  ;;  %v1586_v38 = vadd.f32 %v1584_v44, %v1574_v21 }
 0x6a8   :  { %v1613_v15 = vmul.f32 %v1611_v29, %v1609_v49  ;;  %v1614_v40 = vmul.f32 %v1612_v36, %v1609_v49  ;;  %v1656_v9 = vperm.slane %v3347_v53, 6  ;;  %v1657_v14 = vperm.slane %v3351_v27, 6 }
 0x6a9   :  { %v1362_v7 = vadd.f32 %v1360_v2, %v1345_v62  ;;  %v1363_v18 = vadd.f32 %v1361_v42, %v1346_v45  ;;  %v1443_v44 = vperm.slane %v3363_v57, 1  ;;  %v1461_v29 = vperm.slane %v3365_v55, 2 }
 0x6aa   :  { %v1654_v2 = vpop.permute.xlu0 %1653 }
 0x6ab   :  { %v1373_v30 = vpop.permute.xlu1 %1372 }
 0x6ac   :  { %v1377_v25 = vmul.f32 %v1375_v12, %v1373_v30  ;;  %v1378_v61 = vmul.f32 %v1376_v8, %v1373_v30  ;;  %v1658_v12 = vmul.f32 %v1656_v9, %v1654_v2  ;;  %v1659_v8 = vmul.f32 %v1657_v14, %v1654_v2 }
 0x6ae   :  { %v1379_v41 = vadd.f32 %v1377_v25, %v1362_v7  ;;  %v1380_v19 = vadd.f32 %v1378_v61, %v1363_v18  ;;  %v1671_v7 = vperm.slane %v3347_v53, 7  ;;  %v1672_v18 = vperm.slane %v3351_v27, 7 }
 0x6af   :  { %v1639_v33 = vpop.permute.xlu2 %1638 }
 0x6b0   :  { %v3518_v1 = vadd.f32 %v1394_v35, %v1379_v41  ;;  %v3520_v3 = vadd.f32 %v1395_v47, %v1380_v19  ;;  %v1643_v49 = vmul.f32 %v1641_v23, %v1639_v33  ;;  %v1644_v42 = vmul.f32 %v1642_v34, %v1639_v33 }
 0x6b1   :  { %v1409_v41 = vperm.slane %v3343_v60, 7  ;;  %v1410_v19 = vperm.slane %v3345_v5, 7  ;;  %v1427_v60 = vperm.slane %v3365_v55, 0 }
 0x6b8   :  { %v1669_v28 = vpop.permute.xlu2 %1668 }
 0x6b9   :  { %v1673_v25 = vmul.f32 %v1671_v7, %v1669_v28  ;;  %v1674_v61 = vmul.f32 %v1672_v18, %v1669_v28  ;;  %v1716_v18 = vperm.slane %v3367_v6, 2 }
 0x6bb   :  { %v1594_v46 = vpop.permute.xlu1 %1593 }
 0x6bc   :  { %v1598_v52 = vmul.f32 %v1596_v32, %v1594_v46  ;;  %v1599_v11 = vmul.f32 %v1597_v31, %v1594_v46  ;;  %v1426_v46 = vperm.slane %v3363_v57, 0 }
 0x6be   :  { %v1600_v0 = vadd.f32 %v1598_v52, %v1585_v48  ;;  %v1601_v54 = vadd.f32 %v1599_v11, %v1586_v38  ;;  %v1444_v52 = vperm.slane %v3365_v55, 1  ;;  %v1460_v38 = vperm.slane %v3363_v57, 2 }
 0x6c0   :  { %v1615_v26 = vadd.f32 %v1613_v15, %v1600_v0  ;;  %v1616_v20 = vadd.f32 %v1614_v40, %v1601_v54  ;;  %v1477_v15 = vperm.slane %v3363_v57, 3  ;;  %v1478_v40 = vperm.slane %v3365_v55, 3 }
 0x6c1   :  { %v1684_v56 = vpop.permute.xlu2 %1683 }
 0x6c2   :  { %v1688_v33 = vmul.f32 %v1686_v10, %v1684_v56  ;;  %v1689_v53 = vmul.f32 %v1687_v16, %v1684_v56  ;;  %v1441_v22 = vpop.permute.xlu0 %1440  ;;  %v1732_v10 = vperm.slane %v3369_v13, 3 }
 0x6c3   :  { %v1446_v0 = vmul.f32 %v1444_v52, %v1441_v22 }
 0x6c4   :  { %v1624_v37 = vpop.permute.xlu1 %1623 }
 0x6c5   :  { %v1628_v17 = vmul.f32 %v1626_v39, %v1624_v37  ;;  %v1629_v24 = vmul.f32 %v1627_v59, %v1624_v37 }
 0x6c7   :  { %v1630_v62 = vadd.f32 %v1628_v17, %v1615_v26  ;;  %v1631_v45 = vadd.f32 %v1629_v24, %v1616_v20  ;;  %v1701_v17 = vperm.slane %v3367_v6, 1  ;;  %v1702_v24 = vperm.slane %v3369_v13, 1 }
 0x6c9   :  { %v1645_v51 = vadd.f32 %v1643_v49, %v1630_v62  ;;  %v1646_v30 = vadd.f32 %v1644_v42, %v1631_v45 }
 0x6ca   :  { %v1458_v4 = vpop.permute.xlu2 %1457 }
 0x6cb   :  { %v1660_v35 = vadd.f32 %v1658_v12, %v1645_v51  ;;  %v1661_v47 = vadd.f32 %v1659_v8, %v1646_v30  ;;  %v1462_v39 = vmul.f32 %v1460_v38, %v1458_v4  ;;  %v1463_v59 = vmul.f32 %v1461_v29, %v1458_v4  ;;  %v1729_v8 = vpop.permute.xlu0 %1728 }
 0x6cc   :  { %v1717_v12 = vperm.slane %v3369_v13, 2  ;;  %v1731_v30 = vperm.slane %v3367_v6, 3  ;;  %v1511_v29 = vperm.slane %v3363_v57, 5 }
 0x6cd   :  { %v1407_v43 = vpop.permute.xlu1 %1406  ;;  %v1675_v27 = vadd.f32 %v1673_v25, %v1660_v35  ;;  %v1676_v50 = vadd.f32 %v1674_v61, %v1661_v47  ;;  %v1746_v61 = vperm.slane %v3367_v6, 4  ;;  %v1747_v35 = vperm.slane %v3369_v13, 4 }
 0x6ce   :  { %v1411_v58 = vmul.f32 %v1409_v41, %v1407_v43  ;;  %v1412_v63 = vmul.f32 %v1410_v19, %v1407_v43  ;;  %v1733_v47 = vmul.f32 %v1731_v30, %v1729_v8  ;;  %v1734_v41 = vmul.f32 %v1732_v10, %v1729_v8 }
 0x6cf   :  { %v1690_v21 = vadd.f32 %v1688_v33, %v1675_v27  ;;  %v1691_v32 = vadd.f32 %v1689_v53, %v1676_v50  ;;  %v1761_v53 = vperm.slane %v3367_v6, 5  ;;  %v1762_v43 = vperm.slane %v3369_v13, 5 }
 0x6d0   :  { %v1413_v31 = vadd.f32 %v1411_v58, %v3518_v1  ;;  %v1414_v28 = vadd.f32 %v1412_v63, %v3520_v3  ;;  %v1445_v1 = vmul.f32 %v1443_v44, %v1441_v22  ;;  %v1791_v30 = vperm.slane %v3367_v6, 7 }
 0x6d1   :  { %v1792_v10 = vperm.slane %v3369_v13, 7 }
 0x6d3   :  { %v1475_v36 = vpop.permute.xlu2 %1474 }
 0x6d4   :  { %v1479_v56 = vmul.f32 %v1477_v15, %v1475_v36  ;;  %v1480_v37 = vmul.f32 %v1478_v40, %v1475_v36  ;;  %v1512_v36 = vperm.slane %v3365_v55, 5 }
 0x6d6   :  { %v1424_v5 = vpop.permute.xlu1 %1423 }
 0x6d7   :  { %v1428_v11 = vmul.f32 %v1426_v46, %v1424_v5  ;;  %v1429_v48 = vmul.f32 %v1427_v60, %v1424_v5  ;;  %v1494_v46 = vperm.slane %v3363_v57, 4  ;;  %v1495_v60 = vperm.slane %v3365_v55, 4 }
 0x6d9   :  { %v1430_v3 = vadd.f32 %v1428_v11, %v1413_v31  ;;  %v1431_v54 = vadd.f32 %v1429_v48, %v1414_v28 }
 0x6db   :  { %v1447_v23 = vadd.f32 %v1445_v1, %v1430_v3  ;;  %v1448_v34 = vadd.f32 %v1446_v0, %v1431_v54  ;;  %v1528_v3 = vperm.slane %v3363_v57, 6  ;;  %v1529_v54 = vperm.slane %v3365_v55, 6 }
 0x6dc   :  { %v1744_v62 = vpop.permute.xlu2 %1743 }
 0x6dd   :  { %v1464_v26 = vadd.f32 %v1462_v39, %v1447_v23  ;;  %v1465_v20 = vadd.f32 %v1463_v59, %v1448_v34  ;;  %v1748_v50 = vmul.f32 %v1746_v61, %v1744_v62  ;;  %v1749_v4 = vmul.f32 %v1747_v35, %v1744_v62 }
 0x6de   :  { %v1545_v39 = vperm.slane %v3363_v57, 7  ;;  %v1546_v59 = vperm.slane %v3365_v55, 7 }
 0x6df   :  { %v1699_v9 = vpop.permute.xlu1 %1698  ;;  %v1481_v14 = vadd.f32 %v1479_v56, %v1464_v26  ;;  %v1482_v2 = vadd.f32 %v1480_v37, %v1465_v20 }
 0x6e0   :  { %v1703_v49 = vmul.f32 %v1701_v17, %v1699_v9  ;;  %v1704_v42 = vmul.f32 %v1702_v24, %v1699_v9 }
 0x6e2   :  { %v1705_v45 = vadd.f32 %v1703_v49, %v1690_v21  ;;  %v1706_v7 = vadd.f32 %v1704_v42, %v1691_v32  ;;  %v1776_v49 = vperm.slane %v3367_v6, 6  ;;  %v1777_v42 = vperm.slane %v3369_v13, 6 }
 0x6e5   :  { %v1759_v27 = vpop.permute.xlu2 %1758 }
 0x6e6   :  { %v1763_v21 = vmul.f32 %v1761_v53, %v1759_v27  ;;  %v1764_v32 = vmul.f32 %v1762_v43, %v1759_v27 }
 0x6e8   :  { %v1714_v51 = vpop.permute.xlu1 %1713 }
 0x6e9   :  { %v1718_v16 = vmul.f32 %v1716_v18, %v1714_v51  ;;  %v1719_v25 = vmul.f32 %v1717_v12, %v1714_v51 }
 0x6eb   :  { %v1720_v19 = vadd.f32 %v1718_v16, %v1705_v45  ;;  %v1721_v33 = vadd.f32 %v1719_v25, %v1706_v7  ;;  %v1526_v1 = vpop.permute.xlu0 %1525 }
 0x6ec   :  { %v1530_v34 = vmul.f32 %v1528_v3, %v1526_v1  ;;  %v1531_v56 = vmul.f32 %v1529_v54, %v1526_v1 }
 0x6ed   :  { %v1735_v58 = vadd.f32 %v1733_v47, %v1720_v19  ;;  %v1736_v63 = vadd.f32 %v1734_v41, %v1721_v33 }
 0x6ee   :  { %v1543_v23 = vpop.permute.xlu2 %1542 }
 0x6ef   :  { %v1750_v31 = vadd.f32 %v1748_v50, %v1735_v58  ;;  %v1751_v28 = vadd.f32 %v1749_v4, %v1736_v63  ;;  %v1547_v20 = vmul.f32 %v1545_v39, %v1543_v23  ;;  %v1548_v17 = vmul.f32 %v1546_v59, %v1543_v23 }
 0x6f1   :  { %v1492_v22 = vpop.permute.xlu1 %1491  ;;  %v1765_v5 = vadd.f32 %v1763_v21, %v1750_v31  ;;  %v1766_v44 = vadd.f32 %v1764_v32, %v1751_v28 }
 0x6f2   :  { %v1496_v52 = vmul.f32 %v1494_v46, %v1492_v22  ;;  %v1497_v11 = vmul.f32 %v1495_v60, %v1492_v22 }
 0x6f4   :  { %v1498_v48 = vadd.f32 %v1496_v52, %v1481_v14  ;;  %v1499_v38 = vadd.f32 %v1497_v11, %v1482_v2  ;;  %v41_v52 = vld [vmem:[%s3594_s1 + $0x50] sm:$0xff] }
 0x6fa   :  { %v1509_v0 = vpop.permute.xlu1 %1508 }
 0x6fb   :  { %v1513_v15 = vmul.f32 %v1511_v29, %v1509_v0  ;;  %v1514_v40 = vmul.f32 %v1512_v36, %v1509_v0 }
 0x6fd   :  { %v1515_v37 = vadd.f32 %v1513_v15, %v1498_v48  ;;  %v1516_v26 = vadd.f32 %v1514_v40, %v1499_v38 }
 0x6ff   :  { %v1532_v24 = vadd.f32 %v1530_v34, %v1515_v37  ;;  %v1533_v9 = vadd.f32 %v1531_v56, %v1516_v26  ;;  %v1849_v37 = vstv %s1848_s28  ;;  %v1865_v26 = vstv %s1892_s29 }
 0x701   :  { %v1549_v14 = vadd.f32 %v1547_v20, %v1532_v24  ;;  %v1550_v2 = vadd.f32 %v1548_v17, %v1533_v9 }
 0x703   :  { %v1774_v62 = vpop.permute.xlu1 %1773  ;;  %v1553_v45 = vadd.f32 %v1550_v2, %v1549_v14  ;;  %v1551_v57 = vmul.f32 %v1549_v14, %v1549_v14  ;;  %v1552_v7 = vmul.f32 %v1550_v2, %v1550_v2 }
 0x704   :  { %v1778_v55 = vmul.f32 %v1776_v49, %v1774_v62  ;;  %v1779_v18 = vmul.f32 %v1777_v42, %v1774_v62  ;;  %v1846_v49 = vld [vmem:[%s3593_s0] sm:$0xff]  ;;  %v1863_v42 = vld [vmem:[%s3593_s0 + $0x18] sm:$0xff] }
 0x705   :  { %1554 = vadd.xlane.f32.xlu2 %v1553_v45  ;;  %v1556_v12 = vadd.f32 %v1552_v7, %v1551_v57 }
 0x706   :  { %v1780_v8 = vadd.f32 %v1778_v55, %v1765_v5  ;;  %v1781_v51 = vadd.f32 %v1779_v18, %v1766_v44 }
 0x707   :  { %1557 = vadd.xlane.f32.xlu1 %v1556_v12 }
 0x70c   :  { %v1789_v16 = vpop.permute.xlu1 %1788 }
 0x70d   :  { %v1793_v25 = vmul.f32 %v1791_v30, %v1789_v16  ;;  %v1794_v61 = vmul.f32 %v1792_v10, %v1789_v16 }
 0x70f   :  { %v1795_v35 = vadd.f32 %v1793_v25, %v1780_v8  ;;  %v1796_v47 = vadd.f32 %v1794_v61, %v1781_v51 }
 0x711   :  { %v1799_v41 = vadd.f32 %v1796_v47, %v1795_v35  ;;  %v1797_v19 = vmul.f32 %v1795_v35, %v1795_v35  ;;  %v1798_v33 = vmul.f32 %v1796_v47, %v1796_v47 }
 0x713   :  { %1800 = vadd.xlane.f32.xlu0 %v1799_v41  ;;  %v1802_v53 = vadd.f32 %v1798_v33, %v1797_v19 }
 0x715   :  { %1803 = vadd.xlane.f32.xlu2 %v1802_v53 }
 0x778   :  { %v1555_v43 = vpop.xlane.xlu2 %1554 }
 0x77a   :  { %v1558_v4 = vpop.xlane.xlu1 %1557 }
 0x786   :  { %v1801_v27 = vpop.xlane.xlu0 %1800 }
 0x787   :  { %v1805_v50 = vadd.f32 %v1801_v27, %v1555_v43 }
 0x788   :  { %v1804_v58 = vpop.xlane.xlu2 %1803 }
 0x789   :  { %v1807_v63 = vmul.f32 0.001953125, %v1805_v50  ;;  %v1806_v6 = vadd.f32 %v1804_v58, %v1558_v4 }
 0x78b   :  { %v1809_v21 = vmul.f32 %v1807_v63, %v1807_v63  ;;  %v1808_v13 = vmul.f32 0.001953125, %v1806_v6 }
 0x78d   :  { %v1810_v32 = vsub.f32 %v1808_v13, %v1809_v21 }
 0x78f   :  { %v1811_v31 = vmax.f32 %v1810_v32, 0.0 }
 0x791   :  { %v1812_v28 = vadd.f32 1e-05, %v1811_v31 }
 0x793   :  { %2047 = vrsqrt.f32 %v1812_v28  ;;  %vm1819_vm2 = vweird.f32 %v1812_v28 }
 0x799   :  { %v2048_v46 = vpop.eup %2047 }
 0x79a   :  { %v1814_v60 = vmul.f32 %v2048_v46, %v1812_v28  ;;  %vm1820_vm1 = vweird.f32 %v2048_v46 }
 0x79b   :  { %vm1821_vm3 = vmor %vm1819_vm2, %vm1820_vm1 }
 0x79c   :  { %v1815_v22 = vmul.f32 %v2048_v46, %v1814_v60 }
 0x79e   :  { %v1816_v5 = vmul.f32 0.5, %v1815_v22 }
 0x7a0   :  { %v1817_v44 = vsub.f32 1.5, %v1816_v5 }
 0x7a2   :  { %v1818_v11 = vmul.f32 %v2048_v46, %v1817_v44 }
 0x7a4   :  { %v1822_v48 = vsel %vm1821_vm3, %v2048_v46, %v1818_v11 }
 0x7a5   :  { %v1823_v38 = vmul.f32 %v1822_v48, %v41_v52 }
 0x7a7   :  { %1832 = vperm.xlu1 %2024, %v1823_v38   ;;  %v1824_v29 = vmul.f32 %v1823_v38, %v1807_v63 }
 0x7a9   :  { %1826 = vrot.lane.b32.xlu0 %v1824_v29, %s2102_s12 }
 0x819   :  { %v1833_v0 = vpop.permute.xlu1 %1832 }
 0x81a   :  { %v1835_v3 = vmul.f32 %v1833_v0, %v1549_v14  ;;  %v1836_v54 = vmul.f32 %v1833_v0, %v1550_v2  ;;  %v1856_v15 = vmul.f32 %v1833_v0, %v1795_v35  ;;  %v1857_v40 = vmul.f32 %v1833_v0, %v1796_v47  ;;  %v1847_v14 = vld [vmem:[%s3593_s0 + $0x8] sm:$0xff]  ;;  %v1862_v2 = vld [vmem:[%s3593_s0 + $0x10] sm:$0xff] }
 0x81b   :  { %v1827_v36 = vpop.permute.xlu0 %1826 }
 0x81c   :  { %v1829_v1 = vsub.f32 %v41_v52, %v1827_v36 }
 0x81e   :  { %1839 = vperm.xlu2 %2025, %v1829_v1  }
 0x878   :  { %v1840_v39 = vpop.permute.xlu2 %1839 }
 0x879   :  { %v1842_v59 = vadd.f32 %v1840_v39, %v1835_v3  ;;  %v1843_v23 = vadd.f32 %v1840_v39, %v1836_v54  ;;  %v1858_v34 = vadd.f32 %v1856_v15, %v1840_v39  ;;  %v1859_v56 = vadd.f32 %v1857_v40, %v1840_v39 }
 0x87b   :  { %v1844_v20 = vmax.f32 %v1842_v59, 0.0  ;;  %v1845_v17 = vmax.f32 %v1843_v23, 0.0  ;;  %v1860_v24 = vmax.f32 %v1858_v34, 0.0  ;;  %v1861_v9 = vmax.f32 %v1859_v56, 0.0 }
 0x87d   :  { %v1850_v62 = vmul.f32 %v1849_v37, %v1844_v20  ;;  %v1851_v45 = vmul.f32 %v1849_v37, %v1845_v17  ;;  %v1866_v57 = vmul.f32 %v1865_v26, %v1860_v24  ;;  %v1867_v7 = vmul.f32 %v1865_v26, %v1861_v9 }
 0x87f   :  { %v1852_v55 = vadd.f32 %v1850_v62, %v1846_v49  ;;  %v1853_v18 = vadd.f32 %v1851_v45, %v1847_v14  ;;  %v1868_v12 = vadd.f32 %v1866_v57, %v1862_v2  ;;  %v1869_v8 = vadd.f32 %v1867_v7, %v1863_v42 }
 0x881   :  { %1854 = vst [vmem:[#allocation5] sm:$0xff] %v1852_v55 }
 0x882   :  { %1855 = vst [vmem:[#allocation5 + $0x8] sm:$0xff] %v1853_v18 }
 0x883   :  { %1870 = vst [vmem:[#allocation5 + $0x10] sm:$0xff] %v1868_v12 }
 0x884   :  { %1871 = vst [vmem:[#allocation5 + $0x18] sm:$0xff] %v1869_v8 }
 0x885   :  { %1882 = dma.vmem_to_hbm [thread:$0]  %s1878_s11, 512, %s1880_s17, [#allocation3]  }
 0x886   :  { %2090 = dma.done.wait [#allocation3], 512  }
 0x887   :  { %2091 = vsyncadd [#allocation3], 4294966784 }
 0x888   :  { %1887 = vsyncpa [#allocation3], 1 }
 0x889   :  { %1888 = vsyncpa [#allocation4], 1 }

</bundles_post_ra>
